<compile_context>
chip_gen: v7x
topology: tpu7x:2x2x1
jax: 0.10.0
libtpu: 0.0.40
codegen_flags: <defaults>
</compile_context>

<pallas_src>
import functools

import jax
import jax.numpy as jnp
from jax.experimental import pallas as pl
from jax.experimental.pallas import tpu as pltpu

NEG_SLOPE = 0.01      # nn.LeakyReLU() default
BN_EPS = 1e-5         # nn.BatchNorm2d default
NUM_CLASSES = 10
LATENT = 100
LATENT_PAD = 128      # contraction dim padded to a lane multiple

_VMEM = pl.BlockSpec(memory_space=pltpu.MemorySpace.VMEM)

_FUSED_VMEM_BUDGET = 8 << 20   # single-block BN path cap (safe under v5e 16 MiB)
_TILE_BYTES_BUDGET = 2 << 20   # per-block x-tile budget for the M-tiled paths
_WIDE_BYTES_BUDGET = 4 << 20   # per-block budget for dense / head blocks


# ----------------------------- Pallas kernels ------------------------------

def _linear_kernel(x_ref, w_ref, b_ref, o_ref):
    """o = x @ w + b (f32 accumulate, bf16 store)."""
    y = jnp.dot(x_ref[...], w_ref[...], preferred_element_type=jnp.float32)
    o_ref[...] = (y + b_ref[...]).astype(o_ref.dtype)


def _tanh_head_kernel(x_ref, w_ref, b_ref, o_ref):
    """o[:, 0] = tanh((x @ w + b)[:, 0]).

    w is zero-padded to 128 output lanes (full-width MXU pass costs the same
    as a 1-wide one); only column 0 is live, so only column 0 is stored."""
    y = jnp.dot(x_ref[...], w_ref[...], preferred_element_type=jnp.float32)
    y = y + b_ref[...]
    o_ref[...] = jnp.tanh(y[:, 0:1]).astype(o_ref.dtype)


def _matmul_bn_lrelu_fused_kernel(x_ref, w_ref, b_ref, g_ref, bt_ref, o_ref):
    """o = LeakyReLU(BatchNorm(x @ w + b)), single block (small-batch path).

    Training-mode BN over the M axis (rows = B*H*W); one-pass variance
    E[x^2]-mean^2 in f32, clamped at 0 to avoid NaN from cancellation."""
    y = jnp.dot(x_ref[...], w_ref[...], preferred_element_type=jnp.float32)
    y = y + b_ref[...]
    mean = jnp.mean(y, axis=0, keepdims=True)
    var = jnp.maximum(jnp.mean(y * y, axis=0, keepdims=True) - mean * mean, 0.0)
    scale = g_ref[...] * jax.lax.rsqrt(var + BN_EPS)
    shift = bt_ref[...] - mean * scale
    z = y * scale + shift
    o_ref[...] = jnp.where(z > 0, z, NEG_SLOPE * z).astype(o_ref.dtype)


def _matmul_stats_kernel(x_ref, w_ref, b_ref, y_ref, s1_ref, s2_ref,
                         acc1, acc2):
    """Pass A of the M-tiled BN path: y = x @ w + b (stored bf16 per tile) and
    per-column sum / sumsq accumulated in VMEM scratch across the M grid."""
    y = jnp.dot(x_ref[...], w_ref[...], preferred_element_type=jnp.float32)
    y = y + b_ref[...]
    y_ref[...] = y.astype(y_ref.dtype)

    @pl.when(pl.program_id(0) == 0)
    def _():
        acc1[...] = jnp.zeros_like(acc1)
        acc2[...] = jnp.zeros_like(acc2)

    acc1[...] += jnp.sum(y, axis=0, keepdims=True)
    acc2[...] += jnp.sum(y * y, axis=0, keepdims=True)

    @pl.when(pl.program_id(0) == pl.num_programs(0) - 1)
    def _():
        s1_ref[...] = acc1[...]
        s2_ref[...] = acc2[...]


def _bn_lrelu_apply_kernel(y_ref, s1_ref, s2_ref, g_ref, bt_ref, o_ref, *, inv_m):
    """Pass B of the M-tiled BN path: normalize with batch stats + LeakyReLU."""
    y = y_ref[...].astype(jnp.float32)
    mean = s1_ref[...] * inv_m
    var = jnp.maximum(s2_ref[...] * inv_m - mean * mean, 0.0)
    scale = g_ref[...] * jax.lax.rsqrt(var + BN_EPS)
    shift = bt_ref[...] - mean * scale
    z = y * scale + shift
    o_ref[...] = jnp.where(z > 0, z, NEG_SLOPE * z).astype(o_ref.dtype)


# ------------------------------ tiling policy --------------------------------

def _largest_divisor_tile(total, unit, cap):
    """Largest multiple of `unit` that divides `total` and is <= cap.

    Falls back to `total` (one full block) when total <= cap or no divisor
    exists (full-extent blocks are always legal)."""
    if total <= cap:
        return total
    t = (cap // unit) * unit
    while t >= unit:
        if total % t == 0:
            return t
        t -= unit
    # TODO(synk): pad `total` instead of a single large block for odd shapes.
    return total


# ------------------------------ Pallas wrappers -------------------------------

def pallas_linear(x, w, b, *, out_dtype=jnp.bfloat16):
    """x @ w + b, N-tiled; x [M,K] bf16, w [K,N] bf16, b [1,N] f32."""
    M, K = x.shape
    _, N = w.shape
    cap_n = max(128, _WIDE_BYTES_BUDGET // max(1, (K + M) * 2))
    tile_n = _largest_divisor_tile(N, 128, cap_n)
    grid = (N // tile_n,)
    return pl.pallas_call(
        _linear_kernel,
        out_shape=jax.ShapeDtypeStruct((M, N), out_dtype),
        grid_spec=pltpu.PrefetchScalarGridSpec(
            num_scalar_prefetch=0, grid=grid,
            in_specs=[pl.BlockSpec((M, K), lambda j: (0, 0)),
                      pl.BlockSpec((K, tile_n), lambda j: (0, j)),
                      pl.BlockSpec((1, tile_n), lambda j: (0, j))],
            out_specs=pl.BlockSpec((M, tile_n), lambda j: (0, j))),
        compiler_params=pltpu.CompilerParams(
            dimension_semantics=("parallel",)),
    )(x, w, b)


def pallas_tanh_head(cols, w, b):
    """tanh((cols @ w + b)[:, :1]); M-tiled; output is the (M,1) live column."""
    M, K = cols.shape
    _, N = w.shape
    cap_m = max(8, _WIDE_BYTES_BUDGET // (K * 2))
    tile_m = _largest_divisor_tile(M, 8, cap_m)
    grid = (M // tile_m,)
    return pl.pallas_call(
        _tanh_head_kernel,
        out_shape=jax.ShapeDtypeStruct((M, 1), jnp.float32),
        grid_spec=pltpu.PrefetchScalarGridSpec(
            num_scalar_prefetch=0, grid=grid,
            in_specs=[pl.BlockSpec((tile_m, K), lambda i: (i, 0)),
                      pl.BlockSpec((K, N), lambda i: (0, 0)),
                      pl.BlockSpec((1, N), lambda i: (0, 0))],
            out_specs=pl.BlockSpec((tile_m, 1), lambda i: (i, 0))),
        compiler_params=pltpu.CompilerParams(
            dimension_semantics=("parallel",)),
    )(cols, w, b)


def pallas_matmul_bn_lrelu(cols, w, b, g, bt, *, out_dtype=jnp.bfloat16):
    """LeakyReLU(BatchNorm(cols @ w + b)) with batch-size-aware tiling.

    Note: BN uses training-mode batch statistics of this call; if the batch
    were sharded across devices the stats would be per-shard."""
    M, K = cols.shape
    _, N = w.shape

    fused_bytes = M * K * 2 + K * N * 2 + M * N * 6 + N * 16
    if fused_bytes <= _FUSED_VMEM_BUDGET:
        # Small batch: one fused single-block kernel (4-call forward total).
        return pl.pallas_call(
            _matmul_bn_lrelu_fused_kernel,
            out_shape=jax.ShapeDtypeStruct((M, N), out_dtype),
            in_specs=[_VMEM] * 5,
            out_specs=_VMEM,
        )(cols, w, b, g, bt)

    # Large batch: M-tiled accumulator-BN, two passes; bounded VMEM, pipelined.
    cap_m = max(8, _TILE_BYTES_BUDGET // (K * 2))
    tile_m = _largest_divisor_tile(M, 8, cap_m)
    grid = (M // tile_m,)

    y, s1, s2 = pl.pallas_call(
        _matmul_stats_kernel,
        out_shape=(jax.ShapeDtypeStruct((M, N), jnp.bfloat16),
                   jax.ShapeDtypeStruct((1, N), jnp.float32),
                   jax.ShapeDtypeStruct((1, N), jnp.float32)),
        grid_spec=pltpu.PrefetchScalarGridSpec(
            num_scalar_prefetch=0, grid=grid,
            in_specs=[pl.BlockSpec((tile_m, K), lambda i: (i, 0)),
                      pl.BlockSpec((K, N), lambda i: (0, 0)),
                      pl.BlockSpec((1, N), lambda i: (0, 0))],
            out_specs=[pl.BlockSpec((tile_m, N), lambda i: (i, 0)),
                       pl.BlockSpec((1, N), lambda i: (0, 0)),
                       pl.BlockSpec((1, N), lambda i: (0, 0))],
            scratch_shapes=[pltpu.VMEM((1, N), jnp.float32),
                            pltpu.VMEM((1, N), jnp.float32)]),
        compiler_params=pltpu.CompilerParams(
            dimension_semantics=("arbitrary",)),
    )(cols, w, b)

    return pl.pallas_call(
        functools.partial(_bn_lrelu_apply_kernel, inv_m=1.0 / M),
        out_shape=jax.ShapeDtypeStruct((M, N), out_dtype),
        grid_spec=pltpu.PrefetchScalarGridSpec(
            num_scalar_prefetch=0, grid=grid,
            in_specs=[pl.BlockSpec((tile_m, N), lambda i: (i, 0)),
                      pl.BlockSpec((1, N), lambda i: (0, 0)),
                      pl.BlockSpec((1, N), lambda i: (0, 0)),
                      pl.BlockSpec((1, N), lambda i: (0, 0)),
                      pl.BlockSpec((1, N), lambda i: (0, 0))],
            out_specs=pl.BlockSpec((tile_m, N), lambda i: (i, 0))),
        compiler_params=pltpu.CompilerParams(
            dimension_semantics=("parallel",)),
    )(y, s1, s2, g, bt)


# ------------------------------- JAX glue -----------------------------------

def _deconv_as_conv_input(x_nhwc, *, k, stride, pad, out_pad):
    """Dilate by `stride` and pad so a stride-1 correlation with the flipped
    kernel is exactly ConvTranspose2d(stride, padding=pad, output_padding)."""
    B, H, W, C = x_nhwc.shape
    if stride > 1:
        Hd, Wd = (H - 1) * stride + 1, (W - 1) * stride + 1
        xd = jnp.zeros((B, Hd, Wd, C), x_nhwc.dtype)
        xd = xd.at[:, ::stride, ::stride, :].set(x_nhwc)
    else:
        xd = x_nhwc
    lo, hi = k - 1 - pad, k - 1 - pad + out_pad
    return jnp.pad(xd, ((0, 0), (lo, hi), (lo, hi), (0, 0)))


def _im2col(xp_nhwc, k):
    """k x k stride-1 patches; feature order (kh, kw, cin). -> [B*Ho*Wo, k*k*C].
    Activations are bf16, so the materialized patch matrix is bf16 as well."""
    B, Hp, Wp, C = xp_nhwc.shape
    Ho, Wo = Hp - k + 1, Wp - k + 1
    cols = [xp_nhwc[:, kh:kh + Ho, kw:kw + Wo, :]
            for kh in range(k) for kw in range(k)]
    patches = jnp.stack(cols, axis=3)               # [B, Ho, Wo, k*k, C]
    return patches.reshape(B * Ho * Wo, k * k * C), Ho, Wo


def deconv_bn_lrelu(x_nhwc, wm, b, g, bt, *, k, stride, pad, out_pad):
    xp = _deconv_as_conv_input(x_nhwc, k=k, stride=stride, pad=pad,
                               out_pad=out_pad)
    cols, Ho, Wo = _im2col(xp, k)
    y = pallas_matmul_bn_lrelu(cols, wm, b, g, bt)
    return y.reshape(x_nhwc.shape[0], Ho, Wo, -1)


# ------------------------------- parameters ---------------------------------

def _convtranspose_weight_to_matrix(w_t):
    """[Cin, Cout, k, k] ConvTranspose2d weight -> [(kh,kw,cin), Cout] matrix
    (spatially flipped, channels swapped) matching _im2col's patch order."""
    Cin, Cout, k, _ = w_t.shape
    w = w_t[:, :, ::-1, ::-1]
    return jnp.transpose(w, (2, 3, 0, 1)).reshape(k * k * Cin, Cout)


def init_params(key):
    """Parameters in native PyTorch layouts."""
    ks = jax.random.split(key, 8)
    s = 0.05
    p = {
        "embed_w":   jax.random.normal(ks[0], (NUM_CLASSES, LATENT)) * s,
        "dense_w":   jax.random.normal(ks[1], (7 * 7 * 256, LATENT)) * s,  # [out,in]
        "dense_b":   jnp.zeros((7 * 7 * 256,)),
        "deconv1_w": jax.random.normal(ks[2], (256, 128, 3, 3)) * s,  # [Cin,Cout,k,k]
        "deconv1_b": jnp.zeros((128,)),
        "bn1_g": jnp.ones((128,)), "bn1_b": jnp.zeros((128,)),
        "deconv2_w": jax.random.normal(ks[3], (128, 64, 3, 3)) * s,
        "deconv2_b": jnp.zeros((64,)),
        "bn2_g": jnp.ones((64,)), "bn2_b": jnp.zeros((64,)),
        "deconv3_w": jax.random.normal(ks[4], (64, 1, 3, 3)) * s,
        "deconv3_b": jnp.zeros((1,)),
    }
    return {k: v.astype(jnp.float32) for k, v in p.items()}


def _row(v, n=None):
    """Flatten to a (1, N) f32 row, zero-padding the lane dim to n if given."""
    v = v.reshape(1, -1).astype(jnp.float32)
    if n is not None and v.shape[1] < n:
        v = jnp.pad(v, ((0, 0), (0, n - v.shape[1])))
    return v


def prepare_params(p):
    """One-time host-side reorders + dtype casts so the forward does no runtime
    transposes/astype on parameters and every matmul tile is lane-dense."""
    q = {"embed_w": p["embed_w"]}

    # Dense: [out,in] -> [in,out]; columns permuted from torch's (c,h,w) order
    # to NHWC-flat (h,w,c); K zero-padded 100 -> 128; pre-cast to bf16.
    wm = p["dense_w"].T.reshape(LATENT, 256, 7, 7)
    wm = jnp.transpose(wm, (0, 2, 3, 1)).reshape(LATENT, 7 * 7 * 256)
    q["dense_wm"] = jnp.pad(
        wm, ((0, LATENT_PAD - LATENT), (0, 0))).astype(jnp.bfloat16)
    q["dense_bm"] = _row(
        jnp.transpose(p["dense_b"].reshape(256, 7, 7), (1, 2, 0)).reshape(-1))

    # Layer1 (Cout = 128, already lane-dense).
    q["deconv1_wm"] = _convtranspose_weight_to_matrix(
        p["deconv1_w"]).astype(jnp.bfloat16)                         # [2304,128]
    q["deconv1_b"] = _row(p["deconv1_b"])
    q["bn1_g"], q["bn1_b"] = _row(p["bn1_g"]), _row(p["bn1_b"])

    # Layer2: zero-pad Cout 64 -> 128 so stores and the BN epilogue are
    # lane-dense (padded channels come out exactly 0: gamma=0, beta=0).
    w2 = _convtranspose_weight_to_matrix(p["deconv2_w"])             # [1152, 64]
    q["deconv2_wm"] = jnp.pad(w2, ((0, 0), (0, 64))).astype(jnp.bfloat16)
    q["deconv2_b"] = _row(p["deconv2_b"], 128)
    q["bn2_g"], q["bn2_b"] = _row(p["bn2_g"], 128), _row(p["bn2_b"], 128)

    # Layer3 head: pad Cin 64 -> 128 (zero rows match layer2's zero padded
    # channels, so no wrapper-side channel slice) and Cout 1 -> 128 (zero
    # columns; kernel only tanh-es / stores column 0).
    w3 = jnp.pad(p["deconv3_w"], ((0, 64), (0, 0), (0, 0), (0, 0)))
    w3 = _convtranspose_weight_to_matrix(w3)                         # [1152, 1]
    q["deconv3_wm"] = jnp.pad(w3, ((0, 0), (0, 127))).astype(jnp.bfloat16)
    q["deconv3_bm"] = _row(p["deconv3_b"], 128)
    return q


# -------------------------------- forward -----------------------------------

def generator_forward(p, label, z):
    """label: [B] int32, z: [B, 100] f32.  Returns [B, 1, 28, 28] f32 in [-1,1]."""
    B = label.shape[0]
    x = p["embed_w"][label] * z                                      # [B,100] f32
    x = jnp.pad(x, ((0, 0), (0, LATENT_PAD - LATENT))).astype(jnp.bfloat16)

    # dense -> [B, 7*7*256] already NHWC-flat (pre-permuted weights), bf16 out.
    h = pallas_linear(x, p["dense_wm"], p["dense_bm"]).reshape(B, 7, 7, 256)

    # layer1: ConvT(256->128, s2, p1, op1) + BN + LeakyReLU  -> [B,14,14,128]
    h = deconv_bn_lrelu(h, p["deconv1_wm"], p["deconv1_b"],
                        p["bn1_g"], p["bn1_b"],
                        k=3, stride=2, pad=1, out_pad=1)

    # layer2: ConvT(128->64, s1, p1) + BN + LeakyReLU (64 padded to 128 lanes,
    # padded channels are exactly zero)                      -> [B,14,14,128]
    h = deconv_bn_lrelu(h, p["deconv2_wm"], p["deconv2_b"],
                        p["bn2_g"], p["bn2_b"],
                        k=3, stride=1, pad=1, out_pad=0)

    # layer3: ConvT(64->1, s2, p1, op1) + Tanh                -> [B,28,28,1]
    xp = _deconv_as_conv_input(h, k=3, stride=2, pad=1, out_pad=1)   # [B,30,30,128]
    cols, Ho, Wo = _im2col(xp, 3)                                    # [B*784,1152]
    y = pallas_tanh_head(cols, p["deconv3_wm"], p["deconv3_bm"])     # [B*784, 1]
    y = y.reshape(B, Ho, Wo, 1)
    return jnp.transpose(y, (0, 3, 1, 2))                            # NCHW


if __name__ == "__main__":
    key = jax.random.PRNGKey(0)
    kp, kl, kz = jax.random.split(key, 3)

    params = prepare_params(init_params(kp))
    B = 2
    label = jax.random.randint(kl, (B,), 0, NUM_CLASSES, dtype=jnp.int32)
    # torch.randn is drawn inside forward(); generated deterministically here.
    z = jax.random.normal(kz, (B, LATENT), dtype=jnp.float32)

    out = jax.block_until_ready(generator_forward(params, label, z))

    assert out.shape == (B, 1, 28, 28), out.shape
    assert bool(jnp.all(jnp.isfinite(out)))
    assert bool(jnp.max(jnp.abs(out)) <= 1.0 + 1e-6)   # tanh output range
    print("KERNEL_OK")
</pallas_src>

<mosaic_0001>
module attributes {stable_mosaic.version = 11 : i64} {
  func.func @_linear_kernel(%arg0: i32, %arg1: memref<2x128xbf16, #tpu.memory_space<vmem>>, %arg2: memref<128x12544xbf16, #tpu.memory_space<vmem>>, %arg3: memref<1x12544xf32, #tpu.memory_space<vmem>>, %arg4: memref<2x12544xbf16, #tpu.memory_space<vmem>>) attributes {dimension_semantics = [#tpu.dimension_semantics<parallel>], iteration_bounds = array<i64: 1>, scalar_prefetch = 0 : i64, scratch_operands = 0 : i64, tpu.core_type = #tpu.core_type<tc>, window_params = [{pipeline_mode = #tpu.pipeline_mode<synchronous>, transform_indices = @transform_0, window_bounds = array<i64: 2, 128>}, {transform_indices = @transform_1, window_bounds = array<i64: 128, 12544>}, {transform_indices = @transform_2, window_bounds = array<i64: 1, 12544>}, {transform_indices = @transform_3, window_bounds = array<i64: 2, 12544>}]} {
    %c0 = arith.constant 0 : index
    %c0_0 = arith.constant 0 : index
    %0 = vector.load %arg1[%c0, %c0_0] : memref<2x128xbf16, #tpu.memory_space<vmem>>, vector<2x128xbf16>
    %c0_1 = arith.constant 0 : index
    %c0_2 = arith.constant 0 : index
    %1 = vector.load %arg2[%c0_1, %c0_2] : memref<128x12544xbf16, #tpu.memory_space<vmem>>, vector<128x12544xbf16>
    %cst = arith.constant dense<0.000000e+00> : vector<2x12544xf32>
    %2 = tpu.matmul %0, %1, %cst {dimension_numbers = #tpu.dot_dimension_numbers<[1], [0], [0], [1], [0, 0, 1, 1], [], []>} : vector<2x128xbf16>, vector<128x12544xbf16>, vector<2x12544xf32> -> vector<2x12544xf32>
    %c0_3 = arith.constant 0 : index
    %c0_4 = arith.constant 0 : index
    %3 = vector.load %arg3[%c0_3, %c0_4] : memref<1x12544xf32, #tpu.memory_space<vmem>>, vector<1x12544xf32>
    %4 = vector.broadcast %3 : vector<1x12544xf32> to vector<2x12544xf32>
    %5 = arith.addf %2, %4 : vector<2x12544xf32>
    %6 = arith.truncf %5 : vector<2x12544xf32> to vector<2x12544xbf16>
    %c0_5 = arith.constant 0 : index
    %c0_6 = arith.constant 0 : index
    %7 = vector.load %arg4[%c0_5, %c0_6] : memref<2x12544xbf16, #tpu.memory_space<vmem>>, vector<2x12544xbf16>
    tpu.vector_store %arg4[%c0_5, %c0_6], %6 {strides = array<i32>} : memref<2x12544xbf16, #tpu.memory_space<vmem>>, vector<2x12544xbf16>,
    return
  }
  func.func @transform_0(%arg0: i32) -> (i32, i32) {
    %c0_i32 = arith.constant 0 : i32
    %c0_i32_0 = arith.constant 0 : i32
    %c0_i32_1 = arith.constant 0 : i32
    return %c0_i32, %c0_i32_0 : i32, i32
  }
  func.func @transform_1(%arg0: i32) -> (i32, i32) {
    %c0_i32 = arith.constant 0 : i32
    %c0_i32_0 = arith.constant 0 : i32
    return %c0_i32, %arg0 : i32, i32
  }
  func.func @transform_2(%arg0: i32) -> (i32, i32) {
    %c0_i32 = arith.constant 0 : i32
    %c0_i32_0 = arith.constant 0 : i32
    return %c0_i32, %arg0 : i32, i32
  }
  func.func @transform_3(%arg0: i32) -> (i32, i32) {
    %c0_i32 = arith.constant 0 : i32
    %c0_i32_0 = arith.constant 0 : i32
    return %c0_i32, %arg0 : i32, i32
  }
}

</mosaic_0001>

<bundles_post_ra>
// kernel: tpu_custom_call.1
= control target key start
LH: loop header
LB: loop body
LE: loop exit
PB: predicated region body
PF: predicated region fallthrough
CT: control target
= control target key end

     0   :  { %8 = vsyncpa [#allocation3], 0  ;;  %s10792_s0 = inlined_call_operand.hbm [shape: bf16[2,128], index: 0, kind: input, shape index: {}]   ;;  %s10793_s1 = inlined_call_operand.hbm [shape: bf16[128,12544], index: 1, kind: input, shape index: {}]   ;;  %s10794_s2 = inlined_call_operand.hbm [shape: f32[1,12544], index: 2, kind: input, shape index: {}]   ;;  %s10795_s3 = inlined_call_operand.hbm [shape: bf16[2,12544], index: 3, kind: output, shape index: {}]  }
   0x1   :  { %9 = vsyncpa [#allocation6], 0 }
   0x2   :  { %10 = vsyncpa [#allocation4], 0  ;;  %s10240_s12 = smov [#allocation5]   ;;  %s10146_s16 = scalar_lea.hbm %s10793_s1, 100352 }
   0x3   :  { %s26_s13 = sshll.u32 %s10240_s12, 4  ;;  %p10147_p0 = scmp.ne.s32.totalorder %s10793_s1, %s10146_s16  ;;  %s27_s13 = int_to_ptr.vmem [resolvable:$true] %s26_s13 }
   0x4   :  { %p10150_p1 = scmp.lt.u32.totalorder %s10146_s16, %s10793_s1 }
   0x6   :  { %p10152_p2 = pnand %p10150_p1, %p10147_p0 }
   0x8   :  { %10155 = shalt.err (!%p10152_p2)
}
   0x9   :  { %s10156_s21 = scalar_lea.vmem %s27_s13, 100352  ;;  %p10161_p4 = scmp.lt.s32.totalorder %s27_s13, %s27_s13 }
   0xa   :  { %p10157_p3 = scmp.ne.s32.totalorder %s27_s13, %s10156_s21  ;;  %p10162_p5 = scmp.lt.s32.totalorder %s10156_s21, %s10156_s21 }
   0xc   :  { %p10163_p6 = por %p10162_p5, %p10161_p4 }
   0xe   :  { %p10164_p7 = pnand %p10163_p6, %p10157_p3 }
  0x10   :  { %10167 = shalt.err (!%p10164_p7)
}
  0x11   :  { %s10241_s22 = smov 6272   ;;  %s10242_s23 = smov 392  }
  0x12   :  { %32 = dma.hbm_to_vmem [thread:$0]  %s10793_s1, 100352, %s27_s13, [#allocation6], %s10241_s22, %s10241_s22, %s10242_s23  }
  0x13   :  { %s10243_s26 = smov [#allocation2]   ;;  %s10244_s28 = smov [#allocation7]  }
  0x14   :  { %s17_s27 = sshll.u32 %s10243_s26, 4  ;;  %s39_s29 = sshll.u32 %s10244_s28, 4  ;;  %s18_s27 = int_to_ptr.vmem [resolvable:$true] %s17_s27  ;;  %s40_s29 = int_to_ptr.vmem [resolvable:$true] %s39_s29 }
  0x15   :  { %s10168_s5 = scalar_lea.hbm %s10792_s0, 16 }
  0x16   :  { %p10169_p8 = scmp.ne.s32.totalorder %s10792_s0, %s10168_s5  ;;  %p10172_p9 = scmp.lt.u32.totalorder %s10168_s5, %s10792_s0 }
  0x18   :  { %p10174_p10 = pnand %p10172_p9, %p10169_p8 }
  0x1a   :  { %10177 = shalt.err (!%p10174_p10)
}
  0x1b   :  { %s10178_s1 = scalar_lea.vmem %s18_s27, 16  ;;  %s10182_s10 = scalar_lea.vmem %s18_s27, 32 }
  0x1c   :  { %p10179_p11 = scmp.ne.s32.totalorder %s18_s27, %s10178_s1  ;;  %p10183_p12 = scmp.lt.s32.totalorder %s18_s27, %s18_s27 }
  0x1d   :  { %p10184_p13 = scmp.lt.s32.totalorder %s10182_s10, %s10178_s1 }
  0x1f   :  { %p10185_p0 = por %p10184_p13, %p10183_p12 }
  0x21   :  { %p10186_p1 = pnand %p10185_p0, %p10179_p11 }
  0x23   :  { %10189 = shalt.err (!%p10186_p1)
}
  0x24   :  { %20 = dma.hbm_to_vmem [thread:$0]  %s10792_s0, 16, %s18_s27, [#allocation3]  }
  0x25   :  { %s10190_s15 = scalar_lea.hbm %s10794_s2, 1568 }
  0x26   :  { %p10191_p2 = scmp.ne.s32.totalorder %s10794_s2, %s10190_s15  ;;  %p10194_p3 = scmp.lt.u32.totalorder %s10190_s15, %s10794_s2 }
  0x28   :  { %p10196_p4 = pnand %p10194_p3, %p10191_p2 }
  0x2a   :  { %10199 = shalt.err (!%p10196_p4)
}
  0x2b   :  { %s10200_s20 = scalar_lea.vmem %s40_s29, 1568  ;;  %p10205_p6 = scmp.lt.s32.totalorder %s40_s29, %s40_s29 }
  0x2c   :  { %p10201_p5 = scmp.ne.s32.totalorder %s40_s29, %s10200_s20  ;;  %p10206_p7 = scmp.lt.s32.totalorder %s10200_s20, %s10200_s20 }
  0x2e   :  { %p10207_p8 = por %p10206_p7, %p10205_p6 }
  0x30   :  { %p10208_p9 = pnand %p10207_p8, %p10201_p5 }
  0x32   :  { %10211 = shalt.err (!%p10208_p9)
}
  0x33   :  { %42 = dma.hbm_to_vmem [thread:$0]  %s10794_s2, 1568, %s40_s29, [#allocation6]  }
  0x34   :  { %10234 = dma.done.wait [#allocation3], 16  }
  0x35   :  { %10235 = vsyncadd [#allocation3], 4294967280 }
  0x36   :  { %10236 = dma.done.wait [#allocation6], 101920  }
  0x37   :  { %10237 = vsyncadd [#allocation6], 4294865376  ;;  %v10245_v0 = vmov 0   ;;  %v8966_v1 = vld [vmem:[#allocation5 + $0x4] ss:$392 sps:$4 sm:$0xff]   ;;  %s10247_s2 = smov [#allocation8]  }
  0x38   :  { %5306 = vmatprep.mubr.bf16.mxu0 %v10245_v0  ;;  %5347 = vmatprep.mubr.bf16.mxu1 %v10245_v0  ;;  %v8968_v2 = vld [vmem:[#allocation5 + $0xc] ss:$392 sps:$4 sm:$0xff]   ;;  %v8970_v3 = vld [vmem:[#allocation5] ss:$392 sps:$4 sm:$0xff]   ;;  %v8974_v6 = vld [vmem:[#allocation5 + $0x31c] ss:$392 sps:$4 sm:$0xff]  }
  0x39   :  { %5274 = vmatprep.subr.bf16.mxu0 %v8966_v1  ;;  %v8971_v4 = vld [vmem:[#allocation5 + $0x8] ss:$392 sps:$4 sm:$0xff]   ;;  %5315 = vmatprep.subr.bf16.mxu1 %v8968_v2  ;;  %v8972_v5 = vld [vmem:[#allocation5 + $0x314] ss:$392 sps:$4 sm:$0xff]   ;;  %v8977_v8 = vld [vmem:[#allocation5 + $0x318] ss:$392 sps:$4 sm:$0xff]  }
  0x3a   :  { %5275 = vmatpush1.bf16.msra.mxu0 %v8970_v3  ;;  %5316 = vmatpush1.bf16.msra.mxu1 %v8971_v4  ;;  %v8976_v7 = vld [vmem:[#allocation5 + $0x310] ss:$392 sps:$4 sm:$0xff]   ;;  %v8978_v9 = vld [vmem:[#allocation5 + $0x624] ss:$392 sps:$4 sm:$0xff]   ;;  %v8982_v11 = vld [vmem:[#allocation5 + $0x620] ss:$392 sps:$4 sm:$0xff]  }
  0x3b   :  { %5276 = vmatprep.subr.bf16.mxu0 %v8972_v5  ;;  %5317 = vmatprep.subr.bf16.mxu1 %v8974_v6  ;;  %v8980_v10 = vld [vmem:[#allocation5 + $0x62c] ss:$392 sps:$4 sm:$0xff]   ;;  %v8983_v12 = vld [vmem:[#allocation5 + $0x628] ss:$392 sps:$4 sm:$0xff]   ;;  %v8986_v14 = vld [vmem:[#allocation5 + $0x93c] ss:$392 sps:$4 sm:$0xff]  }
  0x3c   :  { %v8984_v13 = vld [vmem:[#allocation5 + $0x934] ss:$392 sps:$4 sm:$0xff]   ;;  %v8988_v15 = vld [vmem:[#allocation5 + $0x930] ss:$392 sps:$4 sm:$0xff]   ;;  %v8990_v17 = vld [vmem:[#allocation5 + $0xc44] ss:$392 sps:$4 sm:$0xff]  }
  0x3d   :  { %v8989_v16 = vld [vmem:[#allocation5 + $0x938] ss:$392 sps:$4 sm:$0xff]   ;;  %v8992_v18 = vld [vmem:[#allocation5 + $0xc4c] ss:$392 sps:$4 sm:$0xff]   ;;  %v8995_v20 = vld [vmem:[#allocation5 + $0xc48] ss:$392 sps:$4 sm:$0xff]  }
  0x3e   :  { %5277 = vmatpush1.bf16.msra.mxu0 %v8976_v7  ;;  %5318 = vmatpush1.bf16.msra.mxu1 %v8977_v8  ;;  %v8994_v19 = vld [vmem:[#allocation5 + $0xc40] ss:$392 sps:$4 sm:$0xff]   ;;  %v8996_v21 = vld [vmem:[#allocation5 + $0xf54] ss:$392 sps:$4 sm:$0xff]   ;;  %v9000_v23 = vld [vmem:[#allocation5 + $0xf50] ss:$392 sps:$4 sm:$0xff]  }
  0x3f   :  { %5278 = vmatprep.subr.bf16.mxu0 %v8978_v9  ;;  %5319 = vmatprep.subr.bf16.mxu1 %v8980_v10  ;;  %v8998_v22 = vld [vmem:[#allocation5 + $0xf5c] ss:$392 sps:$4 sm:$0xff]   ;;  %v9001_v24 = vld [vmem:[#allocation5 + $0xf58] ss:$392 sps:$4 sm:$0xff]   ;;  %v9004_v26 = vld [vmem:[#allocation5 + $0x126c] ss:$392 sps:$4 sm:$0xff]  }
  0x40   :  { %v9002_v25 = vld [vmem:[#allocation5 + $0x1264] ss:$392 sps:$4 sm:$0xff]   ;;  %v9006_v27 = vld [vmem:[#allocation5 + $0x1260] ss:$392 sps:$4 sm:$0xff]   ;;  %v9008_v29 = vld [vmem:[#allocation5 + $0x1574] ss:$392 sps:$4 sm:$0xff]  }
  0x41   :  { %v9007_v28 = vld [vmem:[#allocation5 + $0x1268] ss:$392 sps:$4 sm:$0xff]   ;;  %v9010_v30 = vld [vmem:[#allocation5 + $0x157c] ss:$392 sps:$4 sm:$0xff]   ;;  %v9013_v32 = vld [vmem:[#allocation5 + $0x1578] ss:$392 sps:$4 sm:$0xff]  }
  0x42   :  { %5279 = vmatpush1.bf16.msra.mxu0 %v8982_v11  ;;  %5320 = vmatpush1.bf16.msra.mxu1 %v8983_v12  ;;  %v9012_v31 = vld [vmem:[#allocation5 + $0x1570] ss:$392 sps:$4 sm:$0xff]   ;;  %v9016_v33 = vld [vmem:[#allocation5 + $0x14] ss:$392 sps:$4 sm:$0xff]   ;;  %v9022_v38 = vld [vmem:[#allocation5 + $0x324] ss:$392 sps:$4 sm:$0xff]  }
  0x43   :  { %5280 = vmatprep.subr.bf16.mxu0 %v8984_v13  ;;  %5321 = vmatprep.subr.bf16.mxu1 %v8986_v14  ;;  %v9019_v34 = vld [vmem:[#allocation5 + $0x1c] ss:$392 sps:$4 sm:$0xff]   ;;  %v9014_v36 = vld [vmem:[#allocation5 + $0x10] ss:$392 sps:$4 sm:$0xff]   ;;  %v9025_v39 = vld [vmem:[#allocation5 + $0x32c] ss:$392 sps:$4 sm:$0xff]  }
  0x44   :  { %v10306_v35 = vld [vmem:[#allocation2] sm:$0x1]  ;;  %v9017_v37 = vld [vmem:[#allocation5 + $0x18] ss:$392 sps:$4 sm:$0xff]   ;;  %v9023_v41 = vld [vmem:[#allocation5 + $0x328] ss:$392 sps:$4 sm:$0xff]  }
  0x45   :  { %v9020_v40 = vld [vmem:[#allocation5 + $0x320] ss:$392 sps:$4 sm:$0xff]   ;;  %v9028_v42 = vld [vmem:[#allocation5 + $0x634] ss:$392 sps:$4 sm:$0xff]   ;;  %v9026_v44 = vld [vmem:[#allocation5 + $0x630] ss:$392 sps:$4 sm:$0xff]  }
  0x46   :  { %5281 = vmatpush1.bf16.msra.mxu0 %v8988_v15  ;;  %5322 = vmatpush1.bf16.msra.mxu1 %v8989_v16  ;;  %v9031_v43 = vld [vmem:[#allocation5 + $0x63c] ss:$392 sps:$4 sm:$0xff]   ;;  %v9029_v45 = vld [vmem:[#allocation5 + $0x638] ss:$392 sps:$4 sm:$0xff]   ;;  %v9037_v47 = vld [vmem:[#allocation5 + $0x94c] ss:$392 sps:$4 sm:$0xff]  }
  0x47   :  { %5282 = vmatprep.subr.bf16.mxu0 %v8990_v17  ;;  %5323 = vmatprep.subr.bf16.mxu1 %v8992_v18  ;;  %v9034_v46 = vld [vmem:[#allocation5 + $0x944] ss:$392 sps:$4 sm:$0xff]   ;;  %v9032_v48 = vld [vmem:[#allocation5 + $0x940] ss:$392 sps:$4 sm:$0xff]   ;;  %v9040_v50 = vld [vmem:[#allocation5 + $0xc54] ss:$392 sps:$4 sm:$0xff]  }
  0x48   :  { %v9035_v49 = vld [vmem:[#allocation5 + $0x948] ss:$392 sps:$4 sm:$0xff]   ;;  %v9043_v51 = vld [vmem:[#allocation5 + $0xc5c] ss:$392 sps:$4 sm:$0xff]   ;;  %v9041_v53 = vld [vmem:[#allocation5 + $0xc58] ss:$392 sps:$4 sm:$0xff]  }
  0x49   :  { %v9038_v52 = vld [vmem:[#allocation5 + $0xc50] ss:$392 sps:$4 sm:$0xff]   ;;  %v9046_v54 = vld [vmem:[#allocation5 + $0xf64] ss:$392 sps:$4 sm:$0xff]   ;;  %v9044_v56 = vld [vmem:[#allocation5 + $0xf60] ss:$392 sps:$4 sm:$0xff]  }
  0x4a   :  { %5283 = vmatpush1.bf16.msra.mxu0 %v8994_v19  ;;  %5324 = vmatpush1.bf16.msra.mxu1 %v8995_v20  ;;  %v9049_v55 = vld [vmem:[#allocation5 + $0xf6c] ss:$392 sps:$4 sm:$0xff]   ;;  %v9047_v57 = vld [vmem:[#allocation5 + $0xf68] ss:$392 sps:$4 sm:$0xff]   ;;  %v9055_v59 = vld [vmem:[#allocation5 + $0x127c] ss:$392 sps:$4 sm:$0xff]  }
  0x4b   :  { %5284 = vmatprep.subr.bf16.mxu0 %v8996_v21  ;;  %5325 = vmatprep.subr.bf16.mxu1 %v8998_v22  ;;  %v9052_v58 = vld [vmem:[#allocation5 + $0x1274] ss:$392 sps:$4 sm:$0xff]   ;;  %v9050_v60 = vld [vmem:[#allocation5 + $0x1270] ss:$392 sps:$4 sm:$0xff]   ;;  %v9058_v62 = vld [vmem:[#allocation5 + $0x1584] ss:$392 sps:$4 sm:$0xff]  }
  0x4c   :  { %v9053_v61 = vld [vmem:[#allocation5 + $0x1278] ss:$392 sps:$4 sm:$0xff]   ;;  %v9061_v63 = vld [vmem:[#allocation5 + $0x158c] ss:$392 sps:$4 sm:$0xff]   ;;  %v9059_v2 = vld [vmem:[#allocation5 + $0x1588] ss:$392 sps:$4 sm:$0xff]  }
  0x4d   :  { %v9056_v1 = vld [vmem:[#allocation5 + $0x1580] ss:$392 sps:$4 sm:$0xff]   ;;  %v9064_v3 = vld [vmem:[#allocation5 + $0x24] ss:$392 sps:$4 sm:$0xff]   ;;  %v9070_v7 = vld [vmem:[#allocation5 + $0x334] ss:$392 sps:$4 sm:$0xff]  }
  0x4e   :  { %5285 = vmatpush1.bf16.msra.mxu0 %v9000_v23  ;;  %5326 = vmatpush1.bf16.msra.mxu1 %v9001_v24  ;;  %v9067_v4 = vld [vmem:[#allocation5 + $0x2c] ss:$392 sps:$4 sm:$0xff]   ;;  %v9062_v5 = vld [vmem:[#allocation5 + $0x20] ss:$392 sps:$4 sm:$0xff]   ;;  %v9073_v8 = vld [vmem:[#allocation5 + $0x33c] ss:$392 sps:$4 sm:$0xff]  }
  0x4f   :  { %5286 = vmatprep.subr.bf16.mxu0 %v9002_v25  ;;  %5327 = vmatprep.subr.bf16.mxu1 %v9004_v26  ;;  %v9065_v6 = vld [vmem:[#allocation5 + $0x28] ss:$392 sps:$4 sm:$0xff]   ;;  %v9071_v10 = vld [vmem:[#allocation5 + $0x338] ss:$392 sps:$4 sm:$0xff]   ;;  %v9076_v11 = vld [vmem:[#allocation5 + $0x644] ss:$392 sps:$4 sm:$0xff]  }
  0x50   :  { %v9068_v9 = vld [vmem:[#allocation5 + $0x330] ss:$392 sps:$4 sm:$0xff]   ;;  %v9079_v12 = vld [vmem:[#allocation5 + $0x64c] ss:$392 sps:$4 sm:$0xff]   ;;  %v9074_v13 = vld [vmem:[#allocation5 + $0x640] ss:$392 sps:$4 sm:$0xff]  }
  0x51   :  { %v9077_v14 = vld [vmem:[#allocation5 + $0x648] ss:$392 sps:$4 sm:$0xff]   ;;  %v9082_v15 = vld [vmem:[#allocation5 + $0x954] ss:$392 sps:$4 sm:$0xff]   ;;  %v9083_v18 = vld [vmem:[#allocation5 + $0x958] ss:$392 sps:$4 sm:$0xff]  }
  0x52   :  { %5287 = vmatpush1.bf16.msra.mxu0 %v9006_v27  ;;  %5328 = vmatpush1.bf16.msra.mxu1 %v9007_v28  ;;  %v9085_v16 = vld [vmem:[#allocation5 + $0x95c] ss:$392 sps:$4 sm:$0xff]   ;;  %v9080_v17 = vld [vmem:[#allocation5 + $0x950] ss:$392 sps:$4 sm:$0xff]   ;;  %v9091_v20 = vld [vmem:[#allocation5 + $0xc6c] ss:$392 sps:$4 sm:$0xff]  }
  0x53   :  { %5288 = vmatprep.subr.bf16.mxu0 %v9008_v29  ;;  %5329 = vmatprep.subr.bf16.mxu1 %v9010_v30  ;;  %v9088_v19 = vld [vmem:[#allocation5 + $0xc64] ss:$392 sps:$4 sm:$0xff]   ;;  %v9086_v21 = vld [vmem:[#allocation5 + $0xc60] ss:$392 sps:$4 sm:$0xff]   ;;  %v9094_v23 = vld [vmem:[#allocation5 + $0xf74] ss:$392 sps:$4 sm:$0xff]  }
  0x54   :  { %v9089_v22 = vld [vmem:[#allocation5 + $0xc68] ss:$392 sps:$4 sm:$0xff]   ;;  %v9097_v24 = vld [vmem:[#allocation5 + $0xf7c] ss:$392 sps:$4 sm:$0xff]   ;;  %v9095_v26 = vld [vmem:[#allocation5 + $0xf78] ss:$392 sps:$4 sm:$0xff]  }
  0x55   :  { %v9092_v25 = vld [vmem:[#allocation5 + $0xf70] ss:$392 sps:$4 sm:$0xff]   ;;  %v9100_v27 = vld [vmem:[#allocation5 + $0x1284] ss:$392 sps:$4 sm:$0xff]   ;;  %v9098_v29 = vld [vmem:[#allocation5 + $0x1280] ss:$392 sps:$4 sm:$0xff]  }
  0x56   :  { %5289 = vmatpush1.bf16.msra.mxu0 %v9012_v31  ;;  %5330 = vmatpush1.bf16.msra.mxu1 %v9013_v32  ;;  %v9103_v28 = vld [vmem:[#allocation5 + $0x128c] ss:$392 sps:$4 sm:$0xff]   ;;  %v9101_v30 = vld [vmem:[#allocation5 + $0x1288] ss:$392 sps:$4 sm:$0xff]   ;;  %v9109_v32 = vld [vmem:[#allocation5 + $0x159c] ss:$392 sps:$4 sm:$0xff]  }
  0x57   :  { %5356 = vmatprep.subr.bf16.mxu0 %v9016_v33  ;;  %5397 = vmatprep.subr.bf16.mxu1 %v9019_v34  ;;  %v9106_v31 = vld [vmem:[#allocation5 + $0x1594] ss:$392 sps:$4 sm:$0xff]   ;;  %v9104_v33 = vld [vmem:[#allocation5 + $0x1590] ss:$392 sps:$4 sm:$0xff]   ;;  %s8114_s22 = sshll.u32 %s10247_s2, 4  ;;  %s8115_s22 = int_to_ptr.vmem [resolvable:$true] %s8114_s22 }
  0x58   :  { %v9107_v34 = vld [vmem:[#allocation5 + $0x1598] ss:$392 sps:$4 sm:$0xff]   ;;  %s10212_s23 = scalar_lea.vmem %s8115_s22, 1568  ;;  %p10217_p11 = scmp.lt.s32.totalorder %s8115_s22, %s8115_s22 }
  0x59   :  { %5307 = vmatmul.mubr.bf16.vlgmr.msra.gmra.mrb[0].mxu0 %v10306_v35  ;;  %5348 = vmatmul.mubr.bf16.vlgmr.msra.gmra.mrb[0].mxu1 %v10306_v35  ;;  %p10213_p10 = scmp.ne.s32.totalorder %s8115_s22, %s10212_s23  ;;  %p10218_p12 = scmp.lt.s32.totalorder %s10212_s23, %s10212_s23 }
  0x5a   :  { %5357 = vmatpush1.bf16.msra.mxu0 %v9014_v36  ;;  %5398 = vmatpush1.bf16.msra.mxu1 %v9017_v37  ;;  %v9112_v36 = vld [vmem:[#allocation5 + $0x34] ss:$392 sps:$4 sm:$0xff]  }
  0x5b   :  { %5358 = vmatprep.subr.bf16.mxu0 %v9022_v38  ;;  %5399 = vmatprep.subr.bf16.mxu1 %v9025_v39  ;;  %v9115_v37 = vld [vmem:[#allocation5 + $0x3c] ss:$392 sps:$4 sm:$0xff]   ;;  %v9110_v38 = vld [vmem:[#allocation5 + $0x30] ss:$392 sps:$4 sm:$0xff]   ;;  %p10219_p13 = por %p10218_p12, %p10217_p11 }
  0x5c   :  { %5388 = vmatprep.mubr.bf16.mxu0 %v10245_v0  ;;  %5429 = vmatprep.mubr.bf16.mxu1 %v10245_v0  ;;  %v9113_v39 = vld [vmem:[#allocation5 + $0x38] ss:$392 sps:$4 sm:$0xff]  }
  0x5d   :  { %p10220_p0 = pnand %p10219_p13, %p10213_p10 }
  0x5e   :  { %5359 = vmatpush1.bf16.msra.mxu0 %v9020_v40  ;;  %5400 = vmatpush1.bf16.msra.mxu1 %v9023_v41  ;;  %v9118_v40 = vld [vmem:[#allocation5 + $0x344] ss:$392 sps:$4 sm:$0xff]  }
  0x5f   :  { %5360 = vmatprep.subr.bf16.mxu0 %v9028_v42  ;;  %5401 = vmatprep.subr.bf16.mxu1 %v9031_v43  ;;  %v9121_v41 = vld [vmem:[#allocation5 + $0x34c] ss:$392 sps:$4 sm:$0xff]   ;;  %v9116_v42 = vld [vmem:[#allocation5 + $0x340] ss:$392 sps:$4 sm:$0xff]  }
  0x60   :  { %v9119_v43 = vld [vmem:[#allocation5 + $0x348] ss:$392 sps:$4 sm:$0xff]  }
  0x62   :  { %5361 = vmatpush1.bf16.msra.mxu0 %v9026_v44  ;;  %5402 = vmatpush1.bf16.msra.mxu1 %v9029_v45  ;;  %v9124_v44 = vld [vmem:[#allocation5 + $0x654] ss:$392 sps:$4 sm:$0xff]  }
  0x63   :  { %5362 = vmatprep.subr.bf16.mxu0 %v9034_v46  ;;  %5403 = vmatprep.subr.bf16.mxu1 %v9037_v47  ;;  %v9127_v45 = vld [vmem:[#allocation5 + $0x65c] ss:$392 sps:$4 sm:$0xff]   ;;  %v9122_v46 = vld [vmem:[#allocation5 + $0x650] ss:$392 sps:$4 sm:$0xff]  }
  0x64   :  { %v9125_v47 = vld [vmem:[#allocation5 + $0x658] ss:$392 sps:$4 sm:$0xff]  }
  0x66   :  { %5363 = vmatpush1.bf16.msra.mxu0 %v9032_v48  ;;  %5404 = vmatpush1.bf16.msra.mxu1 %v9035_v49  ;;  %v9130_v48 = vld [vmem:[#allocation5 + $0x964] ss:$392 sps:$4 sm:$0xff]  }
  0x67   :  { %5364 = vmatprep.subr.bf16.mxu0 %v9040_v50  ;;  %5405 = vmatprep.subr.bf16.mxu1 %v9043_v51  ;;  %v9133_v49 = vld [vmem:[#allocation5 + $0x96c] ss:$392 sps:$4 sm:$0xff]   ;;  %v9128_v50 = vld [vmem:[#allocation5 + $0x960] ss:$392 sps:$4 sm:$0xff]  }
  0x68   :  { %v9131_v51 = vld [vmem:[#allocation5 + $0x968] ss:$392 sps:$4 sm:$0xff]  }
  0x6a   :  { %5365 = vmatpush1.bf16.msra.mxu0 %v9038_v52  ;;  %5406 = vmatpush1.bf16.msra.mxu1 %v9041_v53  ;;  %v9136_v52 = vld [vmem:[#allocation5 + $0xc74] ss:$392 sps:$4 sm:$0xff]  }
  0x6b   :  { %5366 = vmatprep.subr.bf16.mxu0 %v9046_v54  ;;  %5407 = vmatprep.subr.bf16.mxu1 %v9049_v55  ;;  %v9139_v53 = vld [vmem:[#allocation5 + $0xc7c] ss:$392 sps:$4 sm:$0xff]   ;;  %v9134_v54 = vld [vmem:[#allocation5 + $0xc70] ss:$392 sps:$4 sm:$0xff]  }
  0x6c   :  { %v9137_v55 = vld [vmem:[#allocation5 + $0xc78] ss:$392 sps:$4 sm:$0xff]  }
  0x6e   :  { %5367 = vmatpush1.bf16.msra.mxu0 %v9044_v56  ;;  %5408 = vmatpush1.bf16.msra.mxu1 %v9047_v57  ;;  %v9142_v56 = vld [vmem:[#allocation5 + $0xf84] ss:$392 sps:$4 sm:$0xff]  }
  0x6f   :  { %5368 = vmatprep.subr.bf16.mxu0 %v9052_v58  ;;  %5409 = vmatprep.subr.bf16.mxu1 %v9055_v59  ;;  %v9145_v57 = vld [vmem:[#allocation5 + $0xf8c] ss:$392 sps:$4 sm:$0xff]   ;;  %v9140_v58 = vld [vmem:[#allocation5 + $0xf80] ss:$392 sps:$4 sm:$0xff]  }
  0x70   :  { %v9143_v59 = vld [vmem:[#allocation5 + $0xf88] ss:$392 sps:$4 sm:$0xff]  }
  0x72   :  { %5369 = vmatpush1.bf16.msra.mxu0 %v9050_v60  ;;  %5410 = vmatpush1.bf16.msra.mxu1 %v9053_v61  ;;  %v9148_v60 = vld [vmem:[#allocation5 + $0x1294] ss:$392 sps:$4 sm:$0xff]  }
  0x73   :  { %5370 = vmatprep.subr.bf16.mxu0 %v9058_v62  ;;  %5411 = vmatprep.subr.bf16.mxu1 %v9061_v63  ;;  %v9151_v61 = vld [vmem:[#allocation5 + $0x129c] ss:$392 sps:$4 sm:$0xff]   ;;  %v9146_v62 = vld [vmem:[#allocation5 + $0x1290] ss:$392 sps:$4 sm:$0xff]  }
  0x74   :  { %v9149_v63 = vld [vmem:[#allocation5 + $0x1298] ss:$392 sps:$4 sm:$0xff]  }
  0x76   :  { %5371 = vmatpush1.bf16.msra.mxu0 %v9056_v1  ;;  %5412 = vmatpush1.bf16.msra.mxu1 %v9059_v2  ;;  %v9154_v1 = vld [vmem:[#allocation5 + $0x15a4] ss:$392 sps:$4 sm:$0xff]  }
  0x77   :  { %5438 = vmatprep.subr.bf16.mxu0 %v9064_v3  ;;  %5479 = vmatprep.subr.bf16.mxu1 %v9067_v4  ;;  %v9157_v2 = vld [vmem:[#allocation5 + $0x15ac] ss:$392 sps:$4 sm:$0xff]   ;;  %v9152_v3 = vld [vmem:[#allocation5 + $0x15a0] ss:$392 sps:$4 sm:$0xff]  }
  0x78   :  { %v9155_v4 = vld [vmem:[#allocation5 + $0x15a8] ss:$392 sps:$4 sm:$0xff]  }
  0x79   :  { %5389 = vmatmul.mubr.bf16.vlgmr.msra.gmra.mrb[4].mxu0 %v10306_v35  ;;  %5430 = vmatmul.mubr.bf16.vlgmr.msra.gmra.mrb[4].mxu1 %v10306_v35 }
  0x7a   :  { %5439 = vmatpush1.bf16.msra.mxu0 %v9062_v5  ;;  %5480 = vmatpush1.bf16.msra.mxu1 %v9065_v6  ;;  %v9160_v5 = vld [vmem:[#allocation5 + $0x44] ss:$392 sps:$4 sm:$0xff]  }
  0x7b   :  { %5440 = vmatprep.subr.bf16.mxu0 %v9070_v7  ;;  %5481 = vmatprep.subr.bf16.mxu1 %v9073_v8  ;;  %v9163_v6 = vld [vmem:[#allocation5 + $0x4c] ss:$392 sps:$4 sm:$0xff]   ;;  %v9158_v7 = vld [vmem:[#allocation5 + $0x40] ss:$392 sps:$4 sm:$0xff]  }
  0x7c   :  { %5470 = vmatprep.mubr.bf16.mxu0 %v10245_v0  ;;  %5511 = vmatprep.mubr.bf16.mxu1 %v10245_v0  ;;  %v9161_v8 = vld [vmem:[#allocation5 + $0x48] ss:$392 sps:$4 sm:$0xff]  }
  0x7e   :  { %5441 = vmatpush1.bf16.msra.mxu0 %v9068_v9  ;;  %5482 = vmatpush1.bf16.msra.mxu1 %v9071_v10  ;;  %v9166_v9 = vld [vmem:[#allocation5 + $0x354] ss:$392 sps:$4 sm:$0xff]  }
  0x7f   :  { %5442 = vmatprep.subr.bf16.mxu0 %v9076_v11  ;;  %5483 = vmatprep.subr.bf16.mxu1 %v9079_v12  ;;  %v9169_v10 = vld [vmem:[#allocation5 + $0x35c] ss:$392 sps:$4 sm:$0xff]   ;;  %v9164_v11 = vld [vmem:[#allocation5 + $0x350] ss:$392 sps:$4 sm:$0xff]  }
  0x80   :  { %v9167_v12 = vld [vmem:[#allocation5 + $0x358] ss:$392 sps:$4 sm:$0xff]  }
  0x82   :  { %5443 = vmatpush1.bf16.msra.mxu0 %v9074_v13  ;;  %5484 = vmatpush1.bf16.msra.mxu1 %v9077_v14  ;;  %v9172_v13 = vld [vmem:[#allocation5 + $0x664] ss:$392 sps:$4 sm:$0xff]  }
  0x83   :  { %5444 = vmatprep.subr.bf16.mxu0 %v9082_v15  ;;  %5485 = vmatprep.subr.bf16.mxu1 %v9085_v16  ;;  %v9175_v14 = vld [vmem:[#allocation5 + $0x66c] ss:$392 sps:$4 sm:$0xff]   ;;  %v9170_v15 = vld [vmem:[#allocation5 + $0x660] ss:$392 sps:$4 sm:$0xff]  }
  0x84   :  { %v9173_v16 = vld [vmem:[#allocation5 + $0x668] ss:$392 sps:$4 sm:$0xff]  }
  0x86   :  { %5445 = vmatpush1.bf16.msra.mxu0 %v9080_v17  ;;  %5486 = vmatpush1.bf16.msra.mxu1 %v9083_v18  ;;  %v9178_v17 = vld [vmem:[#allocation5 + $0x974] ss:$392 sps:$4 sm:$0xff]  }
  0x87   :  { %5446 = vmatprep.subr.bf16.mxu0 %v9088_v19  ;;  %5487 = vmatprep.subr.bf16.mxu1 %v9091_v20  ;;  %v9181_v18 = vld [vmem:[#allocation5 + $0x97c] ss:$392 sps:$4 sm:$0xff]   ;;  %v9176_v19 = vld [vmem:[#allocation5 + $0x970] ss:$392 sps:$4 sm:$0xff]  }
  0x88   :  { %v9179_v20 = vld [vmem:[#allocation5 + $0x978] ss:$392 sps:$4 sm:$0xff]  }
  0x8a   :  { %5447 = vmatpush1.bf16.msra.mxu0 %v9086_v21  ;;  %5488 = vmatpush1.bf16.msra.mxu1 %v9089_v22  ;;  %v9184_v21 = vld [vmem:[#allocation5 + $0xc84] ss:$392 sps:$4 sm:$0xff]  }
  0x8b   :  { %5448 = vmatprep.subr.bf16.mxu0 %v9094_v23  ;;  %5489 = vmatprep.subr.bf16.mxu1 %v9097_v24  ;;  %v9187_v22 = vld [vmem:[#allocation5 + $0xc8c] ss:$392 sps:$4 sm:$0xff]   ;;  %v9182_v23 = vld [vmem:[#allocation5 + $0xc80] ss:$392 sps:$4 sm:$0xff]  }
  0x8c   :  { %v9185_v24 = vld [vmem:[#allocation5 + $0xc88] ss:$392 sps:$4 sm:$0xff]  }
  0x8e   :  { %5449 = vmatpush1.bf16.msra.mxu0 %v9092_v25  ;;  %5490 = vmatpush1.bf16.msra.mxu1 %v9095_v26  ;;  %v9190_v25 = vld [vmem:[#allocation5 + $0xf94] ss:$392 sps:$4 sm:$0xff]  }
  0x8f   :  { %5450 = vmatprep.subr.bf16.mxu0 %v9100_v27  ;;  %5491 = vmatprep.subr.bf16.mxu1 %v9103_v28  ;;  %v9193_v26 = vld [vmem:[#allocation5 + $0xf9c] ss:$392 sps:$4 sm:$0xff]   ;;  %v9188_v27 = vld [vmem:[#allocation5 + $0xf90] ss:$392 sps:$4 sm:$0xff]  }
  0x90   :  { %v9191_v28 = vld [vmem:[#allocation5 + $0xf98] ss:$392 sps:$4 sm:$0xff]  }
  0x92   :  { %5451 = vmatpush1.bf16.msra.mxu0 %v9098_v29  ;;  %5492 = vmatpush1.bf16.msra.mxu1 %v9101_v30  ;;  %v9196_v29 = vld [vmem:[#allocation5 + $0x12a4] ss:$392 sps:$4 sm:$0xff]  }
  0x93   :  { %5452 = vmatprep.subr.bf16.mxu0 %v9106_v31  ;;  %5493 = vmatprep.subr.bf16.mxu1 %v9109_v32  ;;  %v9199_v30 = vld [vmem:[#allocation5 + $0x12ac] ss:$392 sps:$4 sm:$0xff]   ;;  %v9194_v31 = vld [vmem:[#allocation5 + $0x12a0] ss:$392 sps:$4 sm:$0xff]  }
  0x94   :  { %v9197_v32 = vld [vmem:[#allocation5 + $0x12a8] ss:$392 sps:$4 sm:$0xff]  }
  0x96   :  { %5453 = vmatpush1.bf16.msra.mxu0 %v9104_v33  ;;  %5494 = vmatpush1.bf16.msra.mxu1 %v9107_v34  ;;  %v9202_v33 = vld [vmem:[#allocation5 + $0x15b4] ss:$392 sps:$4 sm:$0xff]  }
  0x97   :  { %5520 = vmatprep.subr.bf16.mxu0 %v9112_v36  ;;  %5561 = vmatprep.subr.bf16.mxu1 %v9115_v37  ;;  %v9205_v34 = vld [vmem:[#allocation5 + $0x15bc] ss:$392 sps:$4 sm:$0xff]   ;;  %v9200_v36 = vld [vmem:[#allocation5 + $0x15b0] ss:$392 sps:$4 sm:$0xff]  }
  0x98   :  { %v9203_v37 = vld [vmem:[#allocation5 + $0x15b8] ss:$392 sps:$4 sm:$0xff]  }
  0x99   :  { %5471 = vmatmul.mubr.bf16.vlgmr.msra.gmra.mrb[8].mxu0 %v10306_v35  ;;  %5512 = vmatmul.mubr.bf16.vlgmr.msra.gmra.mrb[8].mxu1 %v10306_v35 }
  0x9a   :  { %5521 = vmatpush1.bf16.msra.mxu0 %v9110_v38  ;;  %5562 = vmatpush1.bf16.msra.mxu1 %v9113_v39  ;;  %v9208_v38 = vld [vmem:[#allocation5 + $0x54] ss:$392 sps:$4 sm:$0xff]  }
  0x9b   :  { %5522 = vmatprep.subr.bf16.mxu0 %v9118_v40  ;;  %5563 = vmatprep.subr.bf16.mxu1 %v9121_v41  ;;  %v9211_v39 = vld [vmem:[#allocation5 + $0x5c] ss:$392 sps:$4 sm:$0xff]   ;;  %v9206_v40 = vld [vmem:[#allocation5 + $0x50] ss:$392 sps:$4 sm:$0xff]  }
  0x9c   :  { %5552 = vmatprep.mubr.bf16.mxu0 %v10245_v0  ;;  %5593 = vmatprep.mubr.bf16.mxu1 %v10245_v0  ;;  %v9209_v41 = vld [vmem:[#allocation5 + $0x58] ss:$392 sps:$4 sm:$0xff]  }
  0x9e   :  { %5523 = vmatpush1.bf16.msra.mxu0 %v9116_v42  ;;  %5564 = vmatpush1.bf16.msra.mxu1 %v9119_v43  ;;  %v9214_v42 = vld [vmem:[#allocation5 + $0x364] ss:$392 sps:$4 sm:$0xff]  }
  0x9f   :  { %5524 = vmatprep.subr.bf16.mxu0 %v9124_v44  ;;  %5565 = vmatprep.subr.bf16.mxu1 %v9127_v45  ;;  %v9217_v43 = vld [vmem:[#allocation5 + $0x36c] ss:$392 sps:$4 sm:$0xff]   ;;  %v9212_v44 = vld [vmem:[#allocation5 + $0x360] ss:$392 sps:$4 sm:$0xff]  }
  0xa0   :  { %v9215_v45 = vld [vmem:[#allocation5 + $0x368] ss:$392 sps:$4 sm:$0xff]  }
  0xa2   :  { %5525 = vmatpush1.bf16.msra.mxu0 %v9122_v46  ;;  %5566 = vmatpush1.bf16.msra.mxu1 %v9125_v47  ;;  %v9220_v46 = vld [vmem:[#allocation5 + $0x674] ss:$392 sps:$4 sm:$0xff]  }
  0xa3   :  { %5526 = vmatprep.subr.bf16.mxu0 %v9130_v48  ;;  %5567 = vmatprep.subr.bf16.mxu1 %v9133_v49  ;;  %v9223_v47 = vld [vmem:[#allocation5 + $0x67c] ss:$392 sps:$4 sm:$0xff]   ;;  %v9218_v48 = vld [vmem:[#allocation5 + $0x670] ss:$392 sps:$4 sm:$0xff]  }
  0xa4   :  { %v9221_v49 = vld [vmem:[#allocation5 + $0x678] ss:$392 sps:$4 sm:$0xff]  }
  0xa6   :  { %5527 = vmatpush1.bf16.msra.mxu0 %v9128_v50  ;;  %5568 = vmatpush1.bf16.msra.mxu1 %v9131_v51  ;;  %v9226_v50 = vld [vmem:[#allocation5 + $0x984] ss:$392 sps:$4 sm:$0xff]   ;;  %v9224_v51 = vld [vmem:[#allocation5 + $0x980] ss:$392 sps:$4 sm:$0xff]  }
  0xa7   :  { %5528 = vmatprep.subr.bf16.mxu0 %v9136_v52  ;;  %5569 = vmatprep.subr.bf16.mxu1 %v9139_v53  ;;  %v9227_v52 = vld [vmem:[#allocation5 + $0x988] ss:$392 sps:$4 sm:$0xff]   ;;  %v9232_v53 = vld [vmem:[#allocation5 + $0xc94] ss:$392 sps:$4 sm:$0xff]  }
  0xaa   :  { %5529 = vmatpush1.bf16.msra.mxu0 %v9134_v54  ;;  %5570 = vmatpush1.bf16.msra.mxu1 %v9137_v55  ;;  %v9235_v54 = vld [vmem:[#allocation5 + $0xc9c] ss:$392 sps:$4 sm:$0xff]   ;;  %v9230_v55 = vld [vmem:[#allocation5 + $0xc90] ss:$392 sps:$4 sm:$0xff]  }
  0xab   :  { %5530 = vmatprep.subr.bf16.mxu0 %v9142_v56  ;;  %5571 = vmatprep.subr.bf16.mxu1 %v9145_v57  ;;  %v9233_v56 = vld [vmem:[#allocation5 + $0xc98] ss:$392 sps:$4 sm:$0xff]   ;;  %v9238_v57 = vld [vmem:[#allocation5 + $0xfa4] ss:$392 sps:$4 sm:$0xff]  }
  0xae   :  { %5531 = vmatpush1.bf16.msra.mxu0 %v9140_v58  ;;  %5572 = vmatpush1.bf16.msra.mxu1 %v9143_v59  ;;  %v9241_v58 = vld [vmem:[#allocation5 + $0xfac] ss:$392 sps:$4 sm:$0xff]   ;;  %v9236_v59 = vld [vmem:[#allocation5 + $0xfa0] ss:$392 sps:$4 sm:$0xff]  }
  0xaf   :  { %5532 = vmatprep.subr.bf16.mxu0 %v9148_v60  ;;  %5573 = vmatprep.subr.bf16.mxu1 %v9151_v61  ;;  %v9239_v60 = vld [vmem:[#allocation5 + $0xfa8] ss:$392 sps:$4 sm:$0xff]   ;;  %v9244_v61 = vld [vmem:[#allocation5 + $0x12b4] ss:$392 sps:$4 sm:$0xff]  }
  0xb2   :  { %5533 = vmatpush1.bf16.msra.mxu0 %v9146_v62  ;;  %5574 = vmatpush1.bf16.msra.mxu1 %v9149_v63  ;;  %v9247_v62 = vld [vmem:[#allocation5 + $0x12bc] ss:$392 sps:$4 sm:$0xff]   ;;  %v9242_v63 = vld [vmem:[#allocation5 + $0x12b0] ss:$392 sps:$4 sm:$0xff]  }
  0xb3   :  { %5534 = vmatprep.subr.bf16.mxu0 %v9154_v1  ;;  %5575 = vmatprep.subr.bf16.mxu1 %v9157_v2  ;;  %v9245_v1 = vld [vmem:[#allocation5 + $0x12b8] ss:$392 sps:$4 sm:$0xff]   ;;  %v9250_v2 = vld [vmem:[#allocation5 + $0x15c4] ss:$392 sps:$4 sm:$0xff]  }
  0xb6   :  { %5535 = vmatpush1.bf16.msra.mxu0 %v9152_v3  ;;  %5576 = vmatpush1.bf16.msra.mxu1 %v9155_v4  ;;  %v9253_v3 = vld [vmem:[#allocation5 + $0x15cc] ss:$392 sps:$4 sm:$0xff]   ;;  %v9248_v4 = vld [vmem:[#allocation5 + $0x15c0] ss:$392 sps:$4 sm:$0xff]  }
  0xb7   :  { %5602 = vmatprep.subr.bf16.mxu0 %v9160_v5  ;;  %5643 = vmatprep.subr.bf16.mxu1 %v9163_v6  ;;  %v9251_v5 = vld [vmem:[#allocation5 + $0x15c8] ss:$392 sps:$4 sm:$0xff]   ;;  %v9256_v6 = vld [vmem:[#allocation5 + $0x64] ss:$392 sps:$4 sm:$0xff]  }
  0xb9   :  { %5553 = vmatmul.mubr.bf16.vlgmr.msra.gmra.mrb[12].mxu0 %v10306_v35  ;;  %5594 = vmatmul.mubr.bf16.vlgmr.msra.gmra.mrb[12].mxu1 %v10306_v35 }
  0xba   :  { %5603 = vmatpush1.bf16.msra.mxu0 %v9158_v7  ;;  %5644 = vmatpush1.bf16.msra.mxu1 %v9161_v8  ;;  %v9259_v7 = vld [vmem:[#allocation5 + $0x6c] ss:$392 sps:$4 sm:$0xff]   ;;  %v9254_v8 = vld [vmem:[#allocation5 + $0x60] ss:$392 sps:$4 sm:$0xff]  }
  0xbb   :  { %5604 = vmatprep.subr.bf16.mxu0 %v9166_v9  ;;  %5645 = vmatprep.subr.bf16.mxu1 %v9169_v10  ;;  %v9257_v9 = vld [vmem:[#allocation5 + $0x68] ss:$392 sps:$4 sm:$0xff]   ;;  %v9262_v10 = vld [vmem:[#allocation5 + $0x374] ss:$392 sps:$4 sm:$0xff]  }
  0xbc   :  { %5634 = vmatprep.mubr.bf16.mxu0 %v10245_v0  ;;  %5675 = vmatprep.mubr.bf16.mxu1 %v10245_v0 }
  0xbe   :  { %5605 = vmatpush1.bf16.msra.mxu0 %v9164_v11  ;;  %5646 = vmatpush1.bf16.msra.mxu1 %v9167_v12  ;;  %v9265_v11 = vld [vmem:[#allocation5 + $0x37c] ss:$392 sps:$4 sm:$0xff]  }
  0xbf   :  { %5606 = vmatprep.subr.bf16.mxu0 %v9172_v13  ;;  %5647 = vmatprep.subr.bf16.mxu1 %v9175_v14  ;;  %v10328_v12 = vld [vmem:[#allocation2] sm:$0x1]  ;;  %v9260_v13 = vld [vmem:[#allocation5 + $0x370] ss:$392 sps:$4 sm:$0xff]  }
  0xc0   :  { %v9263_v14 = vld [vmem:[#allocation5 + $0x378] ss:$392 sps:$4 sm:$0xff]  }
  0xc2   :  { %5607 = vmatpush1.bf16.msra.mxu0 %v9170_v15  ;;  %5648 = vmatpush1.bf16.msra.mxu1 %v9173_v16  ;;  %v9268_v15 = vld [vmem:[#allocation5 + $0x684] ss:$392 sps:$4 sm:$0xff]  }
  0xc3   :  { %5608 = vmatprep.subr.bf16.mxu0 %v9178_v17  ;;  %5649 = vmatprep.subr.bf16.mxu1 %v9181_v18  ;;  %v9271_v16 = vld [vmem:[#allocation5 + $0x68c] ss:$392 sps:$4 sm:$0xff]   ;;  %v9266_v17 = vld [vmem:[#allocation5 + $0x680] ss:$392 sps:$4 sm:$0xff]  }
  0xc4   :  { %v9269_v18 = vld [vmem:[#allocation5 + $0x688] ss:$392 sps:$4 sm:$0xff]  }
  0xc6   :  { %5609 = vmatpush1.bf16.msra.mxu0 %v9176_v19  ;;  %5650 = vmatpush1.bf16.msra.mxu1 %v9179_v20  ;;  %v9274_v19 = vld [vmem:[#allocation5 + $0x994] ss:$392 sps:$4 sm:$0xff]  }
  0xc7   :  { %5610 = vmatprep.subr.bf16.mxu0 %v9184_v21  ;;  %5651 = vmatprep.subr.bf16.mxu1 %v9187_v22  ;;  %v9277_v20 = vld [vmem:[#allocation5 + $0x99c] ss:$392 sps:$4 sm:$0xff]   ;;  %v9272_v21 = vld [vmem:[#allocation5 + $0x990] ss:$392 sps:$4 sm:$0xff]  }
  0xc8   :  { %v9275_v22 = vld [vmem:[#allocation5 + $0x998] ss:$392 sps:$4 sm:$0xff]  }
  0xca   :  { %5611 = vmatpush1.bf16.msra.mxu0 %v9182_v23  ;;  %5652 = vmatpush1.bf16.msra.mxu1 %v9185_v24  ;;  %v9280_v23 = vld [vmem:[#allocation5 + $0xca4] ss:$392 sps:$4 sm:$0xff]  }
  0xcb   :  { %5612 = vmatprep.subr.bf16.mxu0 %v9190_v25  ;;  %5653 = vmatprep.subr.bf16.mxu1 %v9193_v26  ;;  %v9283_v24 = vld [vmem:[#allocation5 + $0xcac] ss:$392 sps:$4 sm:$0xff]   ;;  %v9278_v25 = vld [vmem:[#allocation5 + $0xca0] ss:$392 sps:$4 sm:$0xff]  }
  0xcc   :  { %v9281_v26 = vld [vmem:[#allocation5 + $0xca8] ss:$392 sps:$4 sm:$0xff]  }
  0xce   :  { %5613 = vmatpush1.bf16.msra.mxu0 %v9188_v27  ;;  %5654 = vmatpush1.bf16.msra.mxu1 %v9191_v28  ;;  %v9286_v27 = vld [vmem:[#allocation5 + $0xfb4] ss:$392 sps:$4 sm:$0xff]  }
  0xcf   :  { %5614 = vmatprep.subr.bf16.mxu0 %v9196_v29  ;;  %5655 = vmatprep.subr.bf16.mxu1 %v9199_v30  ;;  %v9289_v28 = vld [vmem:[#allocation5 + $0xfbc] ss:$392 sps:$4 sm:$0xff]   ;;  %v9284_v29 = vld [vmem:[#allocation5 + $0xfb0] ss:$392 sps:$4 sm:$0xff]  }
  0xd0   :  { %v9287_v30 = vld [vmem:[#allocation5 + $0xfb8] ss:$392 sps:$4 sm:$0xff]  }
  0xd2   :  { %5615 = vmatpush1.bf16.msra.mxu0 %v9194_v31  ;;  %5656 = vmatpush1.bf16.msra.mxu1 %v9197_v32  ;;  %v9292_v31 = vld [vmem:[#allocation5 + $0x12c4] ss:$392 sps:$4 sm:$0xff]  }
  0xd3   :  { %5616 = vmatprep.subr.bf16.mxu0 %v9202_v33  ;;  %5657 = vmatprep.subr.bf16.mxu1 %v9205_v34  ;;  %v9295_v32 = vld [vmem:[#allocation5 + $0x12cc] ss:$392 sps:$4 sm:$0xff]   ;;  %v9290_v33 = vld [vmem:[#allocation5 + $0x12c0] ss:$392 sps:$4 sm:$0xff]  }
  0xd4   :  { %v9293_v34 = vld [vmem:[#allocation5 + $0x12c8] ss:$392 sps:$4 sm:$0xff]  }
  0xd6   :  { %5617 = vmatpush1.bf16.msra.mxu0 %v9200_v36  ;;  %5658 = vmatpush1.bf16.msra.mxu1 %v9203_v37  ;;  %v9298_v36 = vld [vmem:[#allocation5 + $0x15d4] ss:$392 sps:$4 sm:$0xff]  }
  0xd7   :  { %5684 = vmatprep.subr.bf16.mxu0 %v9208_v38  ;;  %5725 = vmatprep.subr.bf16.mxu1 %v9211_v39  ;;  %v9301_v37 = vld [vmem:[#allocation5 + $0x15dc] ss:$392 sps:$4 sm:$0xff]   ;;  %v9296_v38 = vld [vmem:[#allocation5 + $0x15d0] ss:$392 sps:$4 sm:$0xff]  }
  0xd8   :  { %v9299_v39 = vld [vmem:[#allocation5 + $0x15d8] ss:$392 sps:$4 sm:$0xff]  }
  0xd9   :  { %5635 = vmatmul.mubr.bf16.vlgmr.msra.gmra.mrb[16].mxu0 %v10306_v35  ;;  %5676 = vmatmul.mubr.bf16.vlgmr.msra.gmra.mrb[16].mxu1 %v10306_v35  ;;  %v9229_v35 = vld [vmem:[#allocation5 + $0x98c] ss:$392 sps:$4 sm:$0xff]  }
  0xda   :  { %5685 = vmatpush1.bf16.msra.mxu0 %v9206_v40  ;;  %5726 = vmatpush1.bf16.msra.mxu1 %v9209_v41  ;;  %v9304_v40 = vld [vmem:[#allocation5 + $0x74] ss:$392 sps:$4 sm:$0xff]  }
  0xdb   :  { %5686 = vmatprep.subr.bf16.mxu0 %v9214_v42  ;;  %5727 = vmatprep.subr.bf16.mxu1 %v9217_v43  ;;  %v9307_v41 = vld [vmem:[#allocation5 + $0x7c] ss:$392 sps:$4 sm:$0xff]   ;;  %v9302_v42 = vld [vmem:[#allocation5 + $0x70] ss:$392 sps:$4 sm:$0xff]  }
  0xdc   :  { %5716 = vmatprep.mubr.bf16.mxu0 %v10245_v0  ;;  %5757 = vmatprep.mubr.bf16.mxu1 %v10245_v0  ;;  %v9305_v43 = vld [vmem:[#allocation5 + $0x78] ss:$392 sps:$4 sm:$0xff]  }
  0xde   :  { %5687 = vmatpush1.bf16.msra.mxu0 %v9212_v44  ;;  %5728 = vmatpush1.bf16.msra.mxu1 %v9215_v45  ;;  %v9310_v44 = vld [vmem:[#allocation5 + $0x384] ss:$392 sps:$4 sm:$0xff]  }
  0xdf   :  { %5688 = vmatprep.subr.bf16.mxu0 %v9220_v46  ;;  %5729 = vmatprep.subr.bf16.mxu1 %v9223_v47  ;;  %v9313_v45 = vld [vmem:[#allocation5 + $0x38c] ss:$392 sps:$4 sm:$0xff]   ;;  %v9308_v46 = vld [vmem:[#allocation5 + $0x380] ss:$392 sps:$4 sm:$0xff]  }
  0xe0   :  { %v9311_v47 = vld [vmem:[#allocation5 + $0x388] ss:$392 sps:$4 sm:$0xff]  }
  0xe2   :  { %5689 = vmatpush1.bf16.msra.mxu0 %v9218_v48  ;;  %5730 = vmatpush1.bf16.msra.mxu1 %v9221_v49  ;;  %v9316_v48 = vld [vmem:[#allocation5 + $0x694] ss:$392 sps:$4 sm:$0xff]  }
  0xe3   :  { %5690 = vmatprep.subr.bf16.mxu0 %v9226_v50  ;;  %5731 = vmatprep.subr.bf16.mxu1 %v9229_v35  ;;  %v9319_v49 = vld [vmem:[#allocation5 + $0x69c] ss:$392 sps:$4 sm:$0xff]   ;;  %v864_v50 = vlaneseq  ;;  %v9314_v35 = vld [vmem:[#allocation5 + $0x690] ss:$392 sps:$4 sm:$0xff]  }
  0xe6   :  { %5691 = vmatpush1.bf16.msra.mxu0 %v9224_v51  ;;  %5732 = vmatpush1.bf16.msra.mxu1 %v9227_v52  ;;  %v9317_v51 = vld [vmem:[#allocation5 + $0x698] ss:$392 sps:$4 sm:$0xff]   ;;  %v9322_v52 = vld [vmem:[#allocation5 + $0x9a4] ss:$392 sps:$4 sm:$0xff]  }
  0xe7   :  { %5692 = vmatprep.subr.bf16.mxu0 %v9232_v53  ;;  %5733 = vmatprep.subr.bf16.mxu1 %v9235_v54  ;;  %v9325_v53 = vld [vmem:[#allocation5 + $0x9ac] ss:$392 sps:$4 sm:$0xff]   ;;  %v10338_v54 = vshrl.u32 %v864_v50, 7 }
  0xe8   :  { %v9364_v50 = vld [vmem:[#allocation5 + $0x6a4] ss:$392 sps:$4 sm:$0xff]  }
  0xea   :  { %5693 = vmatpush1.bf16.msra.mxu0 %v9230_v55  ;;  %5734 = vmatpush1.bf16.msra.mxu1 %v9233_v56  ;;  %v9320_v55 = vld [vmem:[#allocation5 + $0x9a0] ss:$392 sps:$4 sm:$0xff]  }
  0xeb   :  { %5694 = vmatprep.subr.bf16.mxu0 %v9238_v57  ;;  %5735 = vmatprep.subr.bf16.mxu1 %v9241_v58  ;;  %v9323_v56 = vld [vmem:[#allocation5 + $0x9a8] ss:$392 sps:$4 sm:$0xff]   ;;  %v9328_v57 = vld [vmem:[#allocation5 + $0xcb4] ss:$392 sps:$4 sm:$0xff]  }
  0xec   :  { %v9331_v58 = vld [vmem:[#allocation5 + $0xcbc] ss:$392 sps:$4 sm:$0xff]  }
  0xee   :  { %5695 = vmatpush1.bf16.msra.mxu0 %v9236_v59  ;;  %5736 = vmatpush1.bf16.msra.mxu1 %v9239_v60  ;;  %v10341_v59 = vsub.s32 0, %v10338_v54  ;;  %v9326_v60 = vld [vmem:[#allocation5 + $0xcb0] ss:$392 sps:$4 sm:$0xff]  }
  0xef   :  { %5696 = vmatprep.subr.bf16.mxu0 %v9244_v61  ;;  %5737 = vmatprep.subr.bf16.mxu1 %v9247_v62  ;;  %v9329_v61 = vld [vmem:[#allocation5 + $0xcb8] ss:$392 sps:$4 sm:$0xff]   ;;  %v10344_v62 = vsub.s32 2, %v10338_v54 }
  0xf2   :  { %5697 = vmatpush1.bf16.msra.mxu0 %v9242_v63  ;;  %5738 = vmatpush1.bf16.msra.mxu1 %v9245_v1  ;;  %v10346_v63 = vld [vmem:[#allocation7] sm:$0xff]  ;;  %v10349_v1 = vsub.s32 1, %v10338_v54 }
  0xf3   :  { %5698 = vmatprep.subr.bf16.mxu0 %v9250_v2  ;;  %5739 = vmatprep.subr.bf16.mxu1 %v9253_v3  ;;  %v10246_v2 = vmov 1966171168  }
  0xf4   :  { %v7484_v3 = vunpack.c.l.s4 %v10246_v2  ;;  %v10381_v2 = vsub.s32 6, %v10338_v54 }
  0xf6   :  { %5699 = vmatpush1.bf16.msra.mxu0 %v9248_v4  ;;  %5740 = vmatpush1.bf16.msra.mxu1 %v9251_v5  ;;  %v10352_v4 = vsub.s32 3, %v10338_v54  ;;  %v9334_v5 = vld [vmem:[#allocation5 + $0xfc4] ss:$392 sps:$4 sm:$0xff]  }
  0xf7   :  { %5766 = vmatprep.subr.bf16.mxu0 %v9256_v6  ;;  %5807 = vmatprep.subr.bf16.mxu1 %v9259_v7  ;;  %v9337_v6 = vld [vmem:[#allocation5 + $0xfcc] ss:$392 sps:$4 sm:$0xff]   ;;  %v867_v7 = vrot.slane %v10346_v63, %v10341_v59 }
  0xf9   :  { %5717 = vmatmul.mubr.bf16.vlgmr.msra.gmra.mrb[20].mxu0 %v10328_v12  ;;  %5758 = vmatmul.mubr.bf16.vlgmr.msra.gmra.mrb[20].mxu1 %v10328_v12 }
  0xfa   :  { %5767 = vmatpush1.bf16.msra.mxu0 %v9254_v8  ;;  %5808 = vmatpush1.bf16.msra.mxu1 %v9257_v9  ;;  %v875_v8 = vrot.slane %v10346_v63, %v10344_v62  ;;  %v9332_v9 = vld [vmem:[#allocation5 + $0xfc0] ss:$392 sps:$4 sm:$0xff]  }
  0xfb   :  { %5768 = vmatprep.subr.bf16.mxu0 %v9262_v10  ;;  %5809 = vmatprep.subr.bf16.mxu1 %v9265_v11  ;;  %v871_v10 = vrot.slane %v10346_v63, %v10349_v1  ;;  %v7485_v11 = vunpack.c.0.s8 %v7484_v3  ;;  %v10384_v3 = vsub.s32 5, %v10338_v54 }
  0xfc   :  { %5798 = vmatprep.mubr.bf16.mxu0 %v10245_v0  ;;  %5839 = vmatprep.mubr.bf16.mxu1 %v10245_v0 }
  0xfe   :  { %5769 = vmatpush1.bf16.msra.mxu0 %v9260_v13  ;;  %5810 = vmatpush1.bf16.msra.mxu1 %v9263_v14  ;;  %v879_v13 = vrot.slane %v10346_v63, %v10352_v4  ;;  %v9335_v14 = vld [vmem:[#allocation5 + $0xfc8] ss:$392 sps:$4 sm:$0xff]  }
  0xff   :  { %5770 = vmatprep.subr.bf16.mxu0 %v9268_v15  ;;  %5811 = vmatprep.subr.bf16.mxu1 %v9271_v16  ;;  %v9340_v15 = vld [vmem:[#allocation5 + $0x12d4] ss:$392 sps:$4 sm:$0xff]  }
 0x100   :  { %v9343_v16 = vld [vmem:[#allocation5 + $0x12dc] ss:$392 sps:$4 sm:$0xff]  }
 0x102   :  { %5771 = vmatpush1.bf16.msra.mxu0 %v9266_v17  ;;  %5812 = vmatpush1.bf16.msra.mxu1 %v9269_v18 }
 0x103   :  { %5772 = vmatprep.subr.bf16.mxu0 %v9274_v19  ;;  %5813 = vmatprep.subr.bf16.mxu1 %v9277_v20 }
 0x106   :  { %5773 = vmatpush1.bf16.msra.mxu0 %v9272_v21  ;;  %5814 = vmatpush1.bf16.msra.mxu1 %v9275_v22 }
 0x107   :  { %5774 = vmatprep.subr.bf16.mxu0 %v9280_v23  ;;  %5815 = vmatprep.subr.bf16.mxu1 %v9283_v24  ;;  %v9338_v23 = vld [vmem:[#allocation5 + $0x12d0] ss:$392 sps:$4 sm:$0xff]  }
 0x108   :  { %v9341_v24 = vld [vmem:[#allocation5 + $0x12d8] ss:$392 sps:$4 sm:$0xff]  }
 0x10a   :  { %5775 = vmatpush1.bf16.msra.mxu0 %v9278_v25  ;;  %5816 = vmatpush1.bf16.msra.mxu1 %v9281_v26  ;;  %v10363_v26 = vsub.s32 %v7485_v11, %v10338_v54  ;;  %v9383_v11 = vld [vmem:[#allocation5 + $0xfd8] ss:$392 sps:$4 sm:$0xff]  }
 0x10b   :  { %5776 = vmatprep.subr.bf16.mxu0 %v9286_v27  ;;  %5817 = vmatprep.subr.bf16.mxu1 %v9289_v28 }
 0x10e   :  { %5777 = vmatpush1.bf16.msra.mxu0 %v9284_v29  ;;  %5818 = vmatpush1.bf16.msra.mxu1 %v9287_v30  ;;  %v9346_v29 = vld [vmem:[#allocation5 + $0x15e4] ss:$392 sps:$4 sm:$0xff]  }
 0x10f   :  { %5778 = vmatprep.subr.bf16.mxu0 %v9292_v31  ;;  %5819 = vmatprep.subr.bf16.mxu1 %v9295_v32  ;;  %v9349_v32 = vld [vmem:[#allocation5 + $0x15ec] ss:$392 sps:$4 sm:$0xff]  }
 0x112   :  { %5779 = vmatpush1.bf16.msra.mxu0 %v9290_v33  ;;  %5820 = vmatpush1.bf16.msra.mxu1 %v9293_v34 }
 0x113   :  { %5780 = vmatprep.subr.bf16.mxu0 %v9298_v36  ;;  %5821 = vmatprep.subr.bf16.mxu1 %v9301_v37  ;;  %v9344_v37 = vld [vmem:[#allocation5 + $0x15e0] ss:$392 sps:$4 sm:$0xff]  }
 0x116   :  { %5781 = vmatpush1.bf16.msra.mxu0 %v9296_v38  ;;  %5822 = vmatpush1.bf16.msra.mxu1 %v9299_v39 }
 0x117   :  { %5848 = vmatprep.subr.bf16.mxu0 %v9304_v40  ;;  %5889 = vmatprep.subr.bf16.mxu1 %v9307_v41  ;;  %v9347_v40 = vld [vmem:[#allocation5 + $0x15e8] ss:$392 sps:$4 sm:$0xff]   ;;  %v9352_v41 = vld [vmem:[#allocation5 + $0x84] ss:$392 sps:$4 sm:$0xff]  }
 0x119   :  { %5799 = vmatmul.mubr.bf16.vlgmr.msra.gmra.mrb[24].mxu0 %v10328_v12  ;;  %5840 = vmatmul.mubr.bf16.vlgmr.msra.gmra.mrb[24].mxu1 %v10328_v12 }
 0x11a   :  { %5849 = vmatpush1.bf16.msra.mxu0 %v9302_v42  ;;  %5890 = vmatpush1.bf16.msra.mxu1 %v9305_v43  ;;  %v9355_v42 = vld [vmem:[#allocation5 + $0x8c] ss:$392 sps:$4 sm:$0xff]  }
 0x11b   :  { %5850 = vmatprep.subr.bf16.mxu0 %v9310_v44  ;;  %5891 = vmatprep.subr.bf16.mxu1 %v9313_v45  ;;  %v9350_v44 = vld [vmem:[#allocation5 + $0x80] ss:$392 sps:$4 sm:$0xff]  }
 0x11c   :  { %5880 = vmatprep.mubr.bf16.mxu0 %v10245_v0  ;;  %5921 = vmatprep.mubr.bf16.mxu1 %v10245_v0  ;;  %v9353_v45 = vld [vmem:[#allocation5 + $0x88] ss:$392 sps:$4 sm:$0xff]  }
 0x11e   :  { %5851 = vmatpush1.bf16.msra.mxu0 %v9308_v46  ;;  %5892 = vmatpush1.bf16.msra.mxu1 %v9311_v47  ;;  %v9358_v46 = vld [vmem:[#allocation5 + $0x394] ss:$392 sps:$4 sm:$0xff]  }
 0x11f   :  { %5852 = vmatprep.subr.bf16.mxu0 %v9316_v48  ;;  %5893 = vmatprep.subr.bf16.mxu1 %v9319_v49  ;;  %v9361_v47 = vld [vmem:[#allocation5 + $0x39c] ss:$392 sps:$4 sm:$0xff]   ;;  %v9356_v48 = vld [vmem:[#allocation5 + $0x390] ss:$392 sps:$4 sm:$0xff]  }
 0x120   :  { %v9359_v49 = vld [vmem:[#allocation5 + $0x398] ss:$392 sps:$4 sm:$0xff]  }
 0x122   :  { %5853 = vmatpush1.bf16.msra.mxu0 %v9314_v35  ;;  %5894 = vmatpush1.bf16.msra.mxu1 %v9317_v51  ;;  %v9367_v35 = vld [vmem:[#allocation5 + $0x6ac] ss:$392 sps:$4 sm:$0xff]   ;;  %v9362_v51 = vld [vmem:[#allocation5 + $0x6a0] ss:$392 sps:$4 sm:$0xff]  }
 0x123   :  { %5854 = vmatprep.subr.bf16.mxu0 %v9322_v52  ;;  %5895 = vmatprep.subr.bf16.mxu1 %v9325_v53  ;;  %v9365_v52 = vld [vmem:[#allocation5 + $0x6a8] ss:$392 sps:$4 sm:$0xff]   ;;  %v9370_v53 = vld [vmem:[#allocation5 + $0x9b4] ss:$392 sps:$4 sm:$0xff]  }
 0x126   :  { %5855 = vmatpush1.bf16.msra.mxu0 %v9320_v55  ;;  %5896 = vmatpush1.bf16.msra.mxu1 %v9323_v56  ;;  %v9373_v55 = vld [vmem:[#allocation5 + $0x9bc] ss:$392 sps:$4 sm:$0xff]   ;;  %v9368_v56 = vld [vmem:[#allocation5 + $0x9b0] ss:$392 sps:$4 sm:$0xff]  }
 0x127   :  { %5856 = vmatprep.subr.bf16.mxu0 %v9328_v57  ;;  %5897 = vmatprep.subr.bf16.mxu1 %v9331_v58  ;;  %v9371_v57 = vld [vmem:[#allocation5 + $0x9b8] ss:$392 sps:$4 sm:$0xff]   ;;  %v9376_v58 = vld [vmem:[#allocation5 + $0xcc4] ss:$392 sps:$4 sm:$0xff]  }
 0x12a   :  { %5857 = vmatpush1.bf16.msra.mxu0 %v9326_v60  ;;  %5898 = vmatpush1.bf16.msra.mxu1 %v9329_v61  ;;  %v9379_v60 = vld [vmem:[#allocation5 + $0xccc] ss:$392 sps:$4 sm:$0xff]   ;;  %v10378_v61 = vsub.s32 4, %v10338_v54 }
 0x12b   :  { %5858 = vmatprep.subr.bf16.mxu0 %v9334_v5  ;;  %5899 = vmatprep.subr.bf16.mxu1 %v9337_v6  ;;  %v9374_v5 = vld [vmem:[#allocation5 + $0xcc0] ss:$392 sps:$4 sm:$0xff]  }
 0x12c   :  { %v5308_v17 = vpop.f32.mrb[0].mxu0  ;;  %v5349_v18 = vpop.f32.mrb[0].mxu1  ;;  %v9377_v6 = vld [vmem:[#allocation5 + $0xcc8] ss:$392 sps:$4 sm:$0xff]  }
 0x12d   :  { %v5309_v19 = vadd.f32 %v5308_v17, %v867_v7  ;;  %v5350_v20 = vadd.f32 %v5349_v18, %v875_v8  ;;  %v5310_v21 = vpop.f32.mrb[1].mxu0  ;;  %v5351_v22 = vpop.f32.mrb[1].mxu1  ;;  %v10387_v7 = vsub.s32 7, %v10338_v54  ;;  %v9382_v8 = vld [vmem:[#allocation5 + $0xfd4] ss:$392 sps:$4 sm:$0xff]  }
 0x12e   :  { %v5311_v25 = vadd.f32 %v5310_v21, %v871_v10  ;;  %v5352_v27 = vadd.f32 %v5351_v22, %v879_v13  ;;  %v5312_v28 = vpop.f32.mrb[2].mxu0  ;;  %5859 = vmatpush1.bf16.msra.mxu0 %v9332_v9  ;;  %5900 = vmatpush1.bf16.msra.mxu1 %v9335_v14  ;;  %v5353_v30 = vpop.f32.mrb[2].mxu1  ;;  %v9385_v9 = vld [vmem:[#allocation5 + $0xfdc] ss:$392 sps:$4 sm:$0xff]   ;;  %v9380_v10 = vld [vmem:[#allocation5 + $0xfd0] ss:$392 sps:$4 sm:$0xff]   ;;  %v883_v13 = vrot.slane %v10346_v63, %v10378_v61 }
 0x12f   :  { %v5313_v31 = vpop.f32.mrb[3].mxu0  ;;  %5860 = vmatprep.subr.bf16.mxu0 %v9340_v15  ;;  %5901 = vmatprep.subr.bf16.mxu1 %v9343_v16  ;;  %v5354_v33 = vpop.f32.mrb[3].mxu1  ;;  %v891_v14 = vrot.slane %v10346_v63, %v10381_v2  ;;  %v887_v15 = vrot.slane %v10346_v63, %v10384_v3  ;;  %v895_v54 = vrot.slane %v10346_v63, %v10387_v7  ;;  %v9388_v16 = vld [vmem:[#allocation5 + $0x12e4] ss:$392 sps:$4 sm:$0xff]   ;;  %v9389_v21 = vld [vmem:[#allocation5 + $0x12e8] ss:$392 sps:$4 sm:$0xff]  }
 0x130   :  { %v8908_v34 = vpack.c.bf16 %v5311_v25, %v5309_v19  ;;  %v8909_v36 = vpack.c.bf16 %v5352_v27, %v5350_v20  ;;  %v9391_v17 = vld [vmem:[#allocation5 + $0x12ec] ss:$392 sps:$4 sm:$0xff]   ;;  %v9386_v20 = vld [vmem:[#allocation5 + $0x12e0] ss:$392 sps:$4 sm:$0xff]  }
 0x131   :  { %v9394_v63 = vld [vmem:[#allocation5 + $0x15f4] ss:$392 sps:$4 sm:$0xff]  }
 0x132   :  { %v10366_v38 = vrot.slane %v8908_v34, %v10363_v26  ;;  %v10369_v39 = vrot.slane %v8909_v36, %v10363_v26  ;;  %5861 = vmatpush1.bf16.msra.mxu0 %v9338_v23  ;;  %5902 = vmatpush1.bf16.msra.mxu1 %v9341_v24 }
 0x133   :  { %5862 = vmatprep.subr.bf16.mxu0 %v9346_v29  ;;  %5903 = vmatprep.subr.bf16.mxu1 %v9349_v32  ;;  %v9397_v32 = vld [vmem:[#allocation5 + $0x15fc] ss:$392 sps:$4 sm:$0xff]  }
 0x134   :  { %v7511_v43 = vcombine.low %v10366_v38, %v10369_v39  ;;  %v9412_v38 = vld [vmem:[#allocation5 + $0x6b4] ss:$392 sps:$4 sm:$0xff]  }
 0x135   :  { %v9415_v39 = vld [vmem:[#allocation5 + $0x6bc] ss:$392 sps:$4 sm:$0xff]  }
 0x136   :  { %5863 = vmatpush1.bf16.msra.mxu0 %v9344_v37  ;;  %5904 = vmatpush1.bf16.msra.mxu1 %v9347_v40  ;;  %v9392_v37 = vld [vmem:[#allocation5 + $0x15f0] ss:$392 sps:$4 sm:$0xff]  }
 0x137   :  { %5930 = vmatprep.subr.bf16.mxu0 %v9352_v41  ;;  %5971 = vmatprep.subr.bf16.mxu1 %v9355_v42  ;;  %v9395_v40 = vld [vmem:[#allocation5 + $0x15f8] ss:$392 sps:$4 sm:$0xff]  }
 0x139   :  { %5881 = vmatmul.mubr.bf16.vlgmr.msra.gmra.mrb[28].mxu0 %v10328_v12  ;;  %5922 = vmatmul.mubr.bf16.vlgmr.msra.gmra.mrb[28].mxu1 %v10328_v12 }
 0x13a   :  { %5931 = vmatpush1.bf16.msra.mxu0 %v9350_v44  ;;  %5972 = vmatpush1.bf16.msra.mxu1 %v9353_v45  ;;  %v9400_v44 = vld [vmem:[#allocation5 + $0x94] ss:$392 sps:$4 sm:$0xff]  }
 0x13b   :  { %5932 = vmatprep.subr.bf16.mxu0 %v9358_v46  ;;  %5973 = vmatprep.subr.bf16.mxu1 %v9361_v47  ;;  %v9403_v45 = vld [vmem:[#allocation5 + $0x9c] ss:$392 sps:$4 sm:$0xff]   ;;  %v9398_v47 = vld [vmem:[#allocation5 + $0x90] ss:$392 sps:$4 sm:$0xff]  }
 0x13c   :  { %5962 = vmatprep.mubr.bf16.mxu0 %v10245_v0  ;;  %6003 = vmatprep.mubr.bf16.mxu1 %v10245_v0 }
 0x13e   :  { %5933 = vmatpush1.bf16.msra.mxu0 %v9356_v48  ;;  %5974 = vmatpush1.bf16.msra.mxu1 %v9359_v49  ;;  %v9401_v48 = vld [vmem:[#allocation5 + $0x98] ss:$392 sps:$4 sm:$0xff]   ;;  %v7519_v49 = vrot.slane %v7511_v43, %v10363_v26 }
 0x13f   :  { %5934 = vmatprep.subr.bf16.mxu0 %v9364_v50  ;;  %5975 = vmatprep.subr.bf16.mxu1 %v9367_v35  ;;  %v9406_v35 = vld [vmem:[#allocation5 + $0x3a4] ss:$392 sps:$4 sm:$0xff]   ;;  %v9410_v43 = vld [vmem:[#allocation5 + $0x6b0] ss:$392 sps:$4 sm:$0xff]  }
 0x142   :  { %5935 = vmatpush1.bf16.msra.mxu0 %v9362_v51  ;;  %5976 = vmatpush1.bf16.msra.mxu1 %v9365_v52  ;;  %v9409_v51 = vld [vmem:[#allocation5 + $0x3ac] ss:$392 sps:$4 sm:$0xff]  }
 0x143   :  { %5936 = vmatprep.subr.bf16.mxu0 %v9370_v53  ;;  %5977 = vmatprep.subr.bf16.mxu1 %v9373_v55  ;;  %v9404_v53 = vld [vmem:[#allocation5 + $0x3a0] ss:$392 sps:$4 sm:$0xff]  }
 0x144   :  { %v9407_v55 = vld [vmem:[#allocation5 + $0x3a8] ss:$392 sps:$4 sm:$0xff]  }
 0x146   :  { %5937 = vmatpush1.bf16.msra.mxu0 %v9368_v56  ;;  %5978 = vmatpush1.bf16.msra.mxu1 %v9371_v57  ;;  %v9413_v56 = vld [vmem:[#allocation5 + $0x6b8] ss:$392 sps:$4 sm:$0xff]   ;;  %v9421_v57 = vld [vmem:[#allocation5 + $0x9cc] ss:$392 sps:$4 sm:$0xff]  }
 0x147   :  { %5938 = vmatprep.subr.bf16.mxu0 %v9376_v58  ;;  %5979 = vmatprep.subr.bf16.mxu1 %v9379_v60  ;;  %v9416_v58 = vld [vmem:[#allocation5 + $0x9c0] ss:$392 sps:$4 sm:$0xff]  }
 0x148   :  { %v9419_v60 = vld [vmem:[#allocation5 + $0x9c8] ss:$392 sps:$4 sm:$0xff]  }
 0x14a   :  { %5939 = vmatpush1.bf16.msra.mxu0 %v9374_v5  ;;  %5980 = vmatpush1.bf16.msra.mxu1 %v9377_v6  ;;  %v9424_v5 = vld [vmem:[#allocation5 + $0xcd4] ss:$392 sps:$4 sm:$0xff]  }
 0x14b   :  { %5940 = vmatprep.subr.bf16.mxu0 %v9382_v8  ;;  %5981 = vmatprep.subr.bf16.mxu1 %v9385_v9  ;;  %v9427_v6 = vld [vmem:[#allocation5 + $0xcdc] ss:$392 sps:$4 sm:$0xff]   ;;  %v9422_v8 = vld [vmem:[#allocation5 + $0xcd0] ss:$392 sps:$4 sm:$0xff]  }
 0x14c   :  { %v5390_v18 = vpop.f32.mrb[4].mxu0  ;;  %v5431_v19 = vpop.f32.mrb[4].mxu1  ;;  %v9425_v9 = vld [vmem:[#allocation5 + $0xcd8] ss:$392 sps:$4 sm:$0xff]  }
 0x14d   :  { %v5391_v22 = vadd.f32 %v5390_v18, %v883_v13  ;;  %v5432_v23 = vadd.f32 %v5431_v19, %v891_v14  ;;  %v5392_v24 = vpop.f32.mrb[5].mxu0  ;;  %v5433_v25 = vpop.f32.mrb[5].mxu1  ;;  %v9433_v13 = vld [vmem:[#allocation5 + $0xfec] ss:$392 sps:$4 sm:$0xff]   ;;  %v9428_v14 = vld [vmem:[#allocation5 + $0xfe0] ss:$392 sps:$4 sm:$0xff]  }
 0x14e   :  { %v5393_v27 = vadd.f32 %v5392_v24, %v887_v15  ;;  %v5434_v28 = vadd.f32 %v5433_v25, %v895_v54  ;;  %v5394_v29 = vpop.f32.mrb[6].mxu0  ;;  %5941 = vmatpush1.bf16.msra.mxu0 %v9380_v10  ;;  %5982 = vmatpush1.bf16.msra.mxu1 %v9383_v11  ;;  %v5435_v30 = vpop.f32.mrb[6].mxu1  ;;  %v10408_v10 = vld [vmem:[#allocation7 + $0x8] sm:$0xff]  ;;  %v9436_v19 = vld [vmem:[#allocation5 + $0x12f4] ss:$392 sps:$4 sm:$0xff]  }
 0x14f   :  { %v5395_v31 = vpop.f32.mrb[7].mxu0  ;;  %5942 = vmatprep.subr.bf16.mxu0 %v9388_v16  ;;  %5983 = vmatprep.subr.bf16.mxu1 %v9391_v17  ;;  %v5436_v33 = vpop.f32.mrb[7].mxu1  ;;  %v9430_v11 = vld [vmem:[#allocation5 + $0xfe4] ss:$392 sps:$4 sm:$0xff]   ;;  %v899_v15 = vrot.slane %v10408_v10, %v10341_v59  ;;  %v907_v54 = vrot.slane %v10408_v10, %v10344_v62  ;;  %v903_v16 = vrot.slane %v10408_v10, %v10349_v1  ;;  %v9431_v18 = vld [vmem:[#allocation5 + $0xfe8] ss:$392 sps:$4 sm:$0xff]  }
 0x150   :  { %v8910_v34 = vpack.c.bf16 %v5393_v27, %v5391_v22  ;;  %v8911_v36 = vpack.c.bf16 %v5434_v28, %v5432_v23  ;;  %v911_v17 = vrot.slane %v10408_v10, %v10352_v4  ;;  %v9434_v23 = vld [vmem:[#allocation5 + $0x12f0] ss:$392 sps:$4 sm:$0xff]  }
 0x151   :  { %v9437_v24 = vld [vmem:[#allocation5 + $0x12f8] ss:$392 sps:$4 sm:$0xff]  }
 0x152   :  { %v7503_v41 = vrot.slane %v8910_v34, %v10363_v26  ;;  %v7510_v42 = vrot.slane %v8911_v36, %v10363_v26  ;;  %5943 = vmatpush1.bf16.msra.mxu0 %v9386_v20  ;;  %5984 = vmatpush1.bf16.msra.mxu1 %v9389_v21  ;;  %v9439_v20 = vld [vmem:[#allocation5 + $0x12fc] ss:$392 sps:$4 sm:$0xff]   ;;  %v9445_v36 = vld [vmem:[#allocation5 + $0x160c] ss:$392 sps:$4 sm:$0xff]  }
 0x153   :  { %5944 = vmatprep.subr.bf16.mxu0 %v9394_v63  ;;  %5985 = vmatprep.subr.bf16.mxu1 %v9397_v32  ;;  %v9442_v34 = vld [vmem:[#allocation5 + $0x1604] ss:$392 sps:$4 sm:$0xff]  }
 0x154   :  { %v7512_v46 = vcombine.low %v7503_v41, %v7510_v42  ;;  %v9440_v42 = vld [vmem:[#allocation5 + $0x1600] ss:$392 sps:$4 sm:$0xff]  }
 0x156   :  { %v7526_v50 = vrot.slane %v7512_v46, %v10363_v26  ;;  %5945 = vmatpush1.bf16.msra.mxu0 %v9392_v37  ;;  %5986 = vmatpush1.bf16.msra.mxu1 %v9395_v40 }
 0x157   :  { %6012 = vmatprep.subr.bf16.mxu0 %v9400_v44  ;;  %6053 = vmatprep.subr.bf16.mxu1 %v9403_v45  ;;  %v9443_v44 = vld [vmem:[#allocation5 + $0x1608] ss:$392 sps:$4 sm:$0xff]  }
 0x158   :  { %v7527_v52 = vcombine.low %v7519_v49, %v7526_v50  ;;  %v9446_v50 = vld [vmem:[#allocation5 + $0xa0] ss:$392 sps:$4 sm:$0xff]  }
 0x159   :  { %5963 = vmatmul.mubr.bf16.vlgmr.msra.gmra.mrb[32].mxu0 %v10328_v12  ;;  %6004 = vmatmul.mubr.bf16.vlgmr.msra.gmra.mrb[32].mxu1 %v10328_v12  ;;  %v9418_v12 = vld [vmem:[#allocation5 + $0x9c4] ss:$392 sps:$4 sm:$0xff]  }
 0x15a   :  { %8095 = vst [vmem:[#allocation8] sm:$0xff] %v7527_v52  ;;  %6013 = vmatpush1.bf16.msra.mxu0 %v9398_v47  ;;  %6054 = vmatpush1.bf16.msra.mxu1 %v9401_v48  ;;  %v9448_v47 = vld [vmem:[#allocation5 + $0xa4] ss:$392 sps:$4 sm:$0xff]  }
 0x15b   :  { %6014 = vmatprep.subr.bf16.mxu0 %v9406_v35  ;;  %6055 = vmatprep.subr.bf16.mxu1 %v9409_v51  ;;  %v9451_v48 = vld [vmem:[#allocation5 + $0xac] ss:$392 sps:$4 sm:$0xff]   ;;  %v9449_v35 = vld [vmem:[#allocation5 + $0xa8] ss:$392 sps:$4 sm:$0xff]   ;;  %v9457_v52 = vld [vmem:[#allocation5 + $0x3bc] ss:$392 sps:$4 sm:$0xff]  }
 0x15c   :  { %6044 = vmatprep.mubr.bf16.mxu0 %v10245_v0  ;;  %6085 = vmatprep.mubr.bf16.mxu1 %v10245_v0  ;;  %v9454_v51 = vld [vmem:[#allocation5 + $0x3b4] ss:$392 sps:$4 sm:$0xff]  }
 0x15e   :  { %6015 = vmatpush1.bf16.msra.mxu0 %v9404_v53  ;;  %6056 = vmatpush1.bf16.msra.mxu1 %v9407_v55  ;;  %v10426_v53 = vld [vmem:[#allocation2] sm:$0x1]  ;;  %v9452_v55 = vld [vmem:[#allocation5 + $0x3b0] ss:$392 sps:$4 sm:$0xff]  }
 0x15f   :  { %6016 = vmatprep.subr.bf16.mxu0 %v9412_v38  ;;  %6057 = vmatprep.subr.bf16.mxu1 %v9415_v39  ;;  %v9455_v38 = vld [vmem:[#allocation5 + $0x3b8] ss:$392 sps:$4 sm:$0xff]   ;;  %v9460_v39 = vld [vmem:[#allocation5 + $0x6c4] ss:$392 sps:$4 sm:$0xff]  }
 0x162   :  { %6017 = vmatpush1.bf16.msra.mxu0 %v9410_v43  ;;  %6058 = vmatpush1.bf16.msra.mxu1 %v9413_v56  ;;  %v9463_v43 = vld [vmem:[#allocation5 + $0x6cc] ss:$392 sps:$4 sm:$0xff]   ;;  %v9458_v56 = vld [vmem:[#allocation5 + $0x6c0] ss:$392 sps:$4 sm:$0xff]  }
 0x163   :  { %6018 = vmatprep.subr.bf16.mxu0 %v9418_v12  ;;  %6059 = vmatprep.subr.bf16.mxu1 %v9421_v57  ;;  %v9461_v12 = vld [vmem:[#allocation5 + $0x6c8] ss:$392 sps:$4 sm:$0xff]   ;;  %v9466_v57 = vld [vmem:[#allocation5 + $0x9d4] ss:$392 sps:$4 sm:$0xff]  }
 0x166   :  { %6019 = vmatpush1.bf16.msra.mxu0 %v9416_v58  ;;  %6060 = vmatpush1.bf16.msra.mxu1 %v9419_v60  ;;  %v9469_v58 = vld [vmem:[#allocation5 + $0x9dc] ss:$392 sps:$4 sm:$0xff]   ;;  %v9464_v60 = vld [vmem:[#allocation5 + $0x9d0] ss:$392 sps:$4 sm:$0xff]  }
 0x167   :  { %6020 = vmatprep.subr.bf16.mxu0 %v9424_v5  ;;  %6061 = vmatprep.subr.bf16.mxu1 %v9427_v6  ;;  %v9467_v5 = vld [vmem:[#allocation5 + $0x9d8] ss:$392 sps:$4 sm:$0xff]   ;;  %v9472_v6 = vld [vmem:[#allocation5 + $0xce4] ss:$392 sps:$4 sm:$0xff]  }
 0x16a   :  { %6021 = vmatpush1.bf16.msra.mxu0 %v9422_v8  ;;  %6062 = vmatpush1.bf16.msra.mxu1 %v9425_v9  ;;  %v9475_v8 = vld [vmem:[#allocation5 + $0xcec] ss:$392 sps:$4 sm:$0xff]   ;;  %v9470_v9 = vld [vmem:[#allocation5 + $0xce0] ss:$392 sps:$4 sm:$0xff]  }
 0x16b   :  { %6022 = vmatprep.subr.bf16.mxu0 %v9430_v11  ;;  %6063 = vmatprep.subr.bf16.mxu1 %v9433_v13  ;;  %v9473_v11 = vld [vmem:[#allocation5 + $0xce8] ss:$392 sps:$4 sm:$0xff]   ;;  %v9478_v13 = vld [vmem:[#allocation5 + $0xff4] ss:$392 sps:$4 sm:$0xff]  }
 0x16c   :  { %v5472_v21 = vpop.f32.mrb[8].mxu0  ;;  %v5513_v22 = vpop.f32.mrb[8].mxu1 }
 0x16d   :  { %v5473_v25 = vadd.f32 %v5472_v21, %v899_v15  ;;  %v5514_v27 = vadd.f32 %v5513_v22, %v907_v54  ;;  %v5474_v28 = vpop.f32.mrb[9].mxu0  ;;  %v5515_v29 = vpop.f32.mrb[9].mxu1  ;;  %v9476_v15 = vld [vmem:[#allocation5 + $0xff0] ss:$392 sps:$4 sm:$0xff]   ;;  %v9487_v21 = vld [vmem:[#allocation5 + $0x130c] ss:$392 sps:$4 sm:$0xff]  }
 0x16e   :  { %v5475_v30 = vadd.f32 %v5474_v28, %v903_v16  ;;  %v5516_v31 = vadd.f32 %v5515_v29, %v911_v17  ;;  %v5476_v63 = vpop.f32.mrb[10].mxu0  ;;  %6023 = vmatpush1.bf16.msra.mxu0 %v9428_v14  ;;  %6064 = vmatpush1.bf16.msra.mxu1 %v9431_v18  ;;  %v5517_v32 = vpop.f32.mrb[10].mxu1  ;;  %v9481_v14 = vld [vmem:[#allocation5 + $0xffc] ss:$392 sps:$4 sm:$0xff]   ;;  %v9479_v54 = vld [vmem:[#allocation5 + $0xff8] ss:$392 sps:$4 sm:$0xff]   ;;  %v915_v16 = vrot.slane %v10408_v10, %v10378_v61 }
 0x16f   :  { %v5477_v33 = vpop.f32.mrb[11].mxu0  ;;  %6024 = vmatprep.subr.bf16.mxu0 %v9436_v19  ;;  %6065 = vmatprep.subr.bf16.mxu1 %v9439_v20  ;;  %v5518_v37 = vpop.f32.mrb[11].mxu1  ;;  %v923_v17 = vrot.slane %v10408_v10, %v10381_v2  ;;  %v919_v18 = vrot.slane %v10408_v10, %v10384_v3  ;;  %v927_v19 = vrot.slane %v10408_v10, %v10387_v7  ;;  %v9484_v20 = vld [vmem:[#allocation5 + $0x1304] ss:$392 sps:$4 sm:$0xff]   ;;  %v9490_v10 = vld [vmem:[#allocation5 + $0x1614] ss:$392 sps:$4 sm:$0xff]  }
 0x170   :  { %v8912_v40 = vpack.c.bf16 %v5475_v30, %v5473_v25  ;;  %v8913_v41 = vpack.c.bf16 %v5516_v31, %v5514_v27  ;;  %v9485_v25 = vld [vmem:[#allocation5 + $0x1308] ss:$392 sps:$4 sm:$0xff]  }
 0x172   :  { %v10419_v45 = vrot.slane %v8912_v40, %v10363_v26  ;;  %v10422_v46 = vrot.slane %v8913_v41, %v10363_v26  ;;  %6025 = vmatpush1.bf16.msra.mxu0 %v9434_v23  ;;  %6066 = vmatpush1.bf16.msra.mxu1 %v9437_v24  ;;  %v9482_v24 = vld [vmem:[#allocation5 + $0x1300] ss:$392 sps:$4 sm:$0xff]  }
 0x173   :  { %6026 = vmatprep.subr.bf16.mxu0 %v9442_v34  ;;  %6067 = vmatprep.subr.bf16.mxu1 %v9445_v36  ;;  %v9493_v36 = vld [vmem:[#allocation5 + $0x161c] ss:$392 sps:$4 sm:$0xff]  }
 0x174   :  { %v7560_v49 = vcombine.low %v10419_v45, %v10422_v46  ;;  %v9508_v45 = vld [vmem:[#allocation5 + $0x6d4] ss:$392 sps:$4 sm:$0xff]  }
 0x175   :  { %v9511_v46 = vld [vmem:[#allocation5 + $0x6dc] ss:$392 sps:$4 sm:$0xff]  }
 0x176   :  { %6027 = vmatpush1.bf16.msra.mxu0 %v9440_v42  ;;  %6068 = vmatpush1.bf16.msra.mxu1 %v9443_v44  ;;  %v9488_v42 = vld [vmem:[#allocation5 + $0x1610] ss:$392 sps:$4 sm:$0xff]  }
 0x177   :  { %6094 = vmatprep.subr.bf16.mxu0 %v9448_v47  ;;  %6135 = vmatprep.subr.bf16.mxu1 %v9451_v48  ;;  %v9491_v44 = vld [vmem:[#allocation5 + $0x1618] ss:$392 sps:$4 sm:$0xff]  }
 0x179   :  { %6045 = vmatmul.mubr.bf16.vlgmr.msra.gmra.mrb[36].mxu0 %v10426_v53  ;;  %6086 = vmatmul.mubr.bf16.vlgmr.msra.gmra.mrb[36].mxu1 %v10426_v53 }
 0x17a   :  { %6095 = vmatpush1.bf16.msra.mxu0 %v9446_v50  ;;  %6136 = vmatpush1.bf16.msra.mxu1 %v9449_v35  ;;  %v9496_v50 = vld [vmem:[#allocation5 + $0xb4] ss:$392 sps:$4 sm:$0xff]  }
 0x17b   :  { %6096 = vmatprep.subr.bf16.mxu0 %v9454_v51  ;;  %6137 = vmatprep.subr.bf16.mxu1 %v9457_v52  ;;  %v9499_v35 = vld [vmem:[#allocation5 + $0xbc] ss:$392 sps:$4 sm:$0xff]   ;;  %v9494_v52 = vld [vmem:[#allocation5 + $0xb0] ss:$392 sps:$4 sm:$0xff]  }
 0x17c   :  { %6126 = vmatprep.mubr.bf16.mxu0 %v10245_v0  ;;  %6167 = vmatprep.mubr.bf16.mxu1 %v10245_v0 }
 0x17e   :  { %6097 = vmatpush1.bf16.msra.mxu0 %v9452_v55  ;;  %6138 = vmatpush1.bf16.msra.mxu1 %v9455_v38  ;;  %v9497_v55 = vld [vmem:[#allocation5 + $0xb8] ss:$392 sps:$4 sm:$0xff]   ;;  %v7568_v38 = vrot.slane %v7560_v49, %v10363_v26 }
 0x17f   :  { %6098 = vmatprep.subr.bf16.mxu0 %v9460_v39  ;;  %6139 = vmatprep.subr.bf16.mxu1 %v9463_v43  ;;  %v9502_v43 = vld [vmem:[#allocation5 + $0x3c4] ss:$392 sps:$4 sm:$0xff]   ;;  %v9506_v49 = vld [vmem:[#allocation5 + $0x6d0] ss:$392 sps:$4 sm:$0xff]  }
 0x182   :  { %6099 = vmatpush1.bf16.msra.mxu0 %v9458_v56  ;;  %6140 = vmatpush1.bf16.msra.mxu1 %v9461_v12  ;;  %v9505_v56 = vld [vmem:[#allocation5 + $0x3cc] ss:$392 sps:$4 sm:$0xff]  }
 0x183   :  { %6100 = vmatprep.subr.bf16.mxu0 %v9466_v57  ;;  %6141 = vmatprep.subr.bf16.mxu1 %v9469_v58  ;;  %v9500_v57 = vld [vmem:[#allocation5 + $0x3c0] ss:$392 sps:$4 sm:$0xff]  }
 0x184   :  { %v9503_v58 = vld [vmem:[#allocation5 + $0x3c8] ss:$392 sps:$4 sm:$0xff]  }
 0x186   :  { %6101 = vmatpush1.bf16.msra.mxu0 %v9464_v60  ;;  %6142 = vmatpush1.bf16.msra.mxu1 %v9467_v5  ;;  %v9509_v60 = vld [vmem:[#allocation5 + $0x6d8] ss:$392 sps:$4 sm:$0xff]   ;;  %v9514_v5 = vld [vmem:[#allocation5 + $0x9e4] ss:$392 sps:$4 sm:$0xff]  }
 0x187   :  { %6102 = vmatprep.subr.bf16.mxu0 %v9472_v6  ;;  %6143 = vmatprep.subr.bf16.mxu1 %v9475_v8  ;;  %v9517_v6 = vld [vmem:[#allocation5 + $0x9ec] ss:$392 sps:$4 sm:$0xff]   ;;  %v9512_v8 = vld [vmem:[#allocation5 + $0x9e0] ss:$392 sps:$4 sm:$0xff]  }
 0x18a   :  { %6103 = vmatpush1.bf16.msra.mxu0 %v9470_v9  ;;  %6144 = vmatpush1.bf16.msra.mxu1 %v9473_v11  ;;  %v9515_v9 = vld [vmem:[#allocation5 + $0x9e8] ss:$392 sps:$4 sm:$0xff]   ;;  %v9520_v11 = vld [vmem:[#allocation5 + $0xcf4] ss:$392 sps:$4 sm:$0xff]  }
 0x18b   :  { %6104 = vmatprep.subr.bf16.mxu0 %v9478_v13  ;;  %6145 = vmatprep.subr.bf16.mxu1 %v9481_v14  ;;  %v9523_v13 = vld [vmem:[#allocation5 + $0xcfc] ss:$392 sps:$4 sm:$0xff]   ;;  %v9518_v14 = vld [vmem:[#allocation5 + $0xcf0] ss:$392 sps:$4 sm:$0xff]  }
 0x18c   :  { %v5554_v22 = vpop.f32.mrb[12].mxu0  ;;  %v5595_v23 = vpop.f32.mrb[12].mxu1 }
 0x18d   :  { %v5555_v27 = vadd.f32 %v5554_v22, %v915_v16  ;;  %v5596_v28 = vadd.f32 %v5595_v23, %v923_v17  ;;  %v5556_v29 = vpop.f32.mrb[13].mxu0  ;;  %v5597_v30 = vpop.f32.mrb[13].mxu1  ;;  %v9526_v16 = vld [vmem:[#allocation5 + $0x1004] ss:$392 sps:$4 sm:$0xff]   ;;  %v9527_v23 = vld [vmem:[#allocation5 + $0x1008] ss:$392 sps:$4 sm:$0xff]  }
 0x18e   :  { %v5557_v31 = vadd.f32 %v5556_v29, %v919_v18  ;;  %v5598_v63 = vadd.f32 %v5597_v30, %v927_v19  ;;  %v5558_v32 = vpop.f32.mrb[14].mxu0  ;;  %6105 = vmatpush1.bf16.msra.mxu0 %v9476_v15  ;;  %6146 = vmatpush1.bf16.msra.mxu1 %v9479_v54  ;;  %v5599_v33 = vpop.f32.mrb[14].mxu1  ;;  %v9521_v15 = vld [vmem:[#allocation5 + $0xcf8] ss:$392 sps:$4 sm:$0xff]   ;;  %v10451_v54 = vld [vmem:[#allocation7 + $0x10] sm:$0xff] }
 0x18f   :  { %v5559_v34 = vpop.f32.mrb[15].mxu0  ;;  %6106 = vmatprep.subr.bf16.mxu0 %v9484_v20  ;;  %6147 = vmatprep.subr.bf16.mxu1 %v9487_v21  ;;  %v5600_v37 = vpop.f32.mrb[15].mxu1  ;;  %v9529_v17 = vld [vmem:[#allocation5 + $0x100c] ss:$392 sps:$4 sm:$0xff]   ;;  %v9524_v18 = vld [vmem:[#allocation5 + $0x1000] ss:$392 sps:$4 sm:$0xff]   ;;  %v931_v19 = vrot.slane %v10451_v54, %v10341_v59  ;;  %v939_v20 = vrot.slane %v10451_v54, %v10344_v62  ;;  %v935_v21 = vrot.slane %v10451_v54, %v10349_v1 }
 0x190   :  { %v8914_v40 = vpack.c.bf16 %v5557_v31, %v5555_v27  ;;  %v8915_v41 = vpack.c.bf16 %v5598_v63, %v5596_v28  ;;  %v943_v22 = vrot.slane %v10451_v54, %v10352_v4  ;;  %v9530_v29 = vld [vmem:[#allocation5 + $0x1310] ss:$392 sps:$4 sm:$0xff]  }
 0x191   :  { %v9533_v30 = vld [vmem:[#allocation5 + $0x1318] ss:$392 sps:$4 sm:$0xff]  }
 0x192   :  { %v7552_v47 = vrot.slane %v8914_v40, %v10363_v26  ;;  %v7559_v48 = vrot.slane %v8915_v41, %v10363_v26  ;;  %6107 = vmatpush1.bf16.msra.mxu0 %v9482_v24  ;;  %6148 = vmatpush1.bf16.msra.mxu1 %v9485_v25  ;;  %v9532_v24 = vld [vmem:[#allocation5 + $0x1314] ss:$392 sps:$4 sm:$0xff]   ;;  %v9538_v41 = vld [vmem:[#allocation5 + $0x1624] ss:$392 sps:$4 sm:$0xff]  }
 0x193   :  { %6108 = vmatprep.subr.bf16.mxu0 %v9490_v10  ;;  %6149 = vmatprep.subr.bf16.mxu1 %v9493_v36  ;;  %v9535_v25 = vld [vmem:[#allocation5 + $0x131c] ss:$392 sps:$4 sm:$0xff]  }
 0x194   :  { %v7561_v51 = vcombine.low %v7552_v47, %v7559_v48 }
 0x196   :  { %v7575_v39 = vrot.slane %v7561_v51, %v10363_v26  ;;  %6109 = vmatpush1.bf16.msra.mxu0 %v9488_v42  ;;  %6150 = vmatpush1.bf16.msra.mxu1 %v9491_v44  ;;  %v9541_v42 = vld [vmem:[#allocation5 + $0x162c] ss:$392 sps:$4 sm:$0xff]  }
 0x197   :  { %6176 = vmatprep.subr.bf16.mxu0 %v9496_v50  ;;  %6217 = vmatprep.subr.bf16.mxu1 %v9499_v35  ;;  %v9536_v50 = vld [vmem:[#allocation5 + $0x1620] ss:$392 sps:$4 sm:$0xff]  }
 0x198   :  { %v7576_v12 = vcombine.low %v7568_v38, %v7575_v39  ;;  %v9539_v35 = vld [vmem:[#allocation5 + $0x1628] ss:$392 sps:$4 sm:$0xff]   ;;  %v9547_v38 = vld [vmem:[#allocation5 + $0xcc] ss:$392 sps:$4 sm:$0xff]  }
 0x199   :  { %6127 = vmatmul.mubr.bf16.vlgmr.msra.gmra.mrb[40].mxu0 %v10426_v53  ;;  %6168 = vmatmul.mubr.bf16.vlgmr.msra.gmra.mrb[40].mxu1 %v10426_v53 }
 0x19a   :  { %8096 = vst [vmem:[#allocation8 + $0x8] sm:$0xff] %v7576_v12  ;;  %6177 = vmatpush1.bf16.msra.mxu0 %v9494_v52  ;;  %6218 = vmatpush1.bf16.msra.mxu1 %v9497_v55  ;;  %v9544_v55 = vld [vmem:[#allocation5 + $0xc4] ss:$392 sps:$4 sm:$0xff]   ;;  %v9550_v12 = vld [vmem:[#allocation5 + $0x3d4] ss:$392 sps:$4 sm:$0xff]  }
 0x19b   :  { %6178 = vmatprep.subr.bf16.mxu0 %v9502_v43  ;;  %6219 = vmatprep.subr.bf16.mxu1 %v9505_v56  ;;  %v9542_v43 = vld [vmem:[#allocation5 + $0xc0] ss:$392 sps:$4 sm:$0xff]  }
 0x19c   :  { %6208 = vmatprep.mubr.bf16.mxu0 %v10245_v0  ;;  %6249 = vmatprep.mubr.bf16.mxu1 %v10245_v0  ;;  %v9545_v56 = vld [vmem:[#allocation5 + $0xc8] ss:$392 sps:$4 sm:$0xff]  }
 0x19e   :  { %6179 = vmatpush1.bf16.msra.mxu0 %v9500_v57  ;;  %6220 = vmatpush1.bf16.msra.mxu1 %v9503_v58  ;;  %v9553_v57 = vld [vmem:[#allocation5 + $0x3dc] ss:$392 sps:$4 sm:$0xff]   ;;  %v9548_v58 = vld [vmem:[#allocation5 + $0x3d0] ss:$392 sps:$4 sm:$0xff]  }
 0x19f   :  { %6180 = vmatprep.subr.bf16.mxu0 %v9508_v45  ;;  %6221 = vmatprep.subr.bf16.mxu1 %v9511_v46  ;;  %v9551_v45 = vld [vmem:[#allocation5 + $0x3d8] ss:$392 sps:$4 sm:$0xff]   ;;  %v9556_v46 = vld [vmem:[#allocation5 + $0x6e4] ss:$392 sps:$4 sm:$0xff]  }
 0x1a2   :  { %6181 = vmatpush1.bf16.msra.mxu0 %v9506_v49  ;;  %6222 = vmatpush1.bf16.msra.mxu1 %v9509_v60  ;;  %v9559_v49 = vld [vmem:[#allocation5 + $0x6ec] ss:$392 sps:$4 sm:$0xff]   ;;  %v9554_v60 = vld [vmem:[#allocation5 + $0x6e0] ss:$392 sps:$4 sm:$0xff]  }
 0x1a3   :  { %6182 = vmatprep.subr.bf16.mxu0 %v9514_v5  ;;  %6223 = vmatprep.subr.bf16.mxu1 %v9517_v6  ;;  %v9557_v5 = vld [vmem:[#allocation5 + $0x6e8] ss:$392 sps:$4 sm:$0xff]   ;;  %v9562_v6 = vld [vmem:[#allocation5 + $0x9f4] ss:$392 sps:$4 sm:$0xff]  }
 0x1a6   :  { %6183 = vmatpush1.bf16.msra.mxu0 %v9512_v8  ;;  %6224 = vmatpush1.bf16.msra.mxu1 %v9515_v9  ;;  %v9565_v8 = vld [vmem:[#allocation5 + $0x9fc] ss:$392 sps:$4 sm:$0xff]   ;;  %v9560_v9 = vld [vmem:[#allocation5 + $0x9f0] ss:$392 sps:$4 sm:$0xff]  }
 0x1a7   :  { %6184 = vmatprep.subr.bf16.mxu0 %v9520_v11  ;;  %6225 = vmatprep.subr.bf16.mxu1 %v9523_v13  ;;  %v9563_v11 = vld [vmem:[#allocation5 + $0x9f8] ss:$392 sps:$4 sm:$0xff]   ;;  %v9568_v13 = vld [vmem:[#allocation5 + $0xd04] ss:$392 sps:$4 sm:$0xff]  }
 0x1aa   :  { %6185 = vmatpush1.bf16.msra.mxu0 %v9518_v14  ;;  %6226 = vmatpush1.bf16.msra.mxu1 %v9521_v15  ;;  %v9571_v14 = vld [vmem:[#allocation5 + $0xd0c] ss:$392 sps:$4 sm:$0xff]   ;;  %v9566_v15 = vld [vmem:[#allocation5 + $0xd00] ss:$392 sps:$4 sm:$0xff]  }
 0x1ab   :  { %6186 = vmatprep.subr.bf16.mxu0 %v9526_v16  ;;  %6227 = vmatprep.subr.bf16.mxu1 %v9529_v17  ;;  %v9569_v16 = vld [vmem:[#allocation5 + $0xd08] ss:$392 sps:$4 sm:$0xff]   ;;  %v9574_v17 = vld [vmem:[#allocation5 + $0x1014] ss:$392 sps:$4 sm:$0xff]  }
 0x1ac   :  { %v5636_v27 = vpop.f32.mrb[16].mxu0  ;;  %v5677_v28 = vpop.f32.mrb[16].mxu1 }
 0x1ad   :  { %v5637_v31 = vadd.f32 %v5636_v27, %v931_v19  ;;  %v5678_v63 = vadd.f32 %v5677_v28, %v939_v20  ;;  %v5638_v32 = vpop.f32.mrb[17].mxu0  ;;  %v5679_v33 = vpop.f32.mrb[17].mxu1  ;;  %v9572_v19 = vld [vmem:[#allocation5 + $0x1010] ss:$392 sps:$4 sm:$0xff]   ;;  %v9583_v27 = vld [vmem:[#allocation5 + $0x132c] ss:$392 sps:$4 sm:$0xff]  }
 0x1ae   :  { %v5639_v34 = vadd.f32 %v5638_v32, %v935_v21  ;;  %v5680_v10 = vadd.f32 %v5679_v33, %v943_v22  ;;  %v5640_v36 = vpop.f32.mrb[18].mxu0  ;;  %6187 = vmatpush1.bf16.msra.mxu0 %v9524_v18  ;;  %6228 = vmatpush1.bf16.msra.mxu1 %v9527_v23  ;;  %v5681_v37 = vpop.f32.mrb[18].mxu1  ;;  %v9577_v18 = vld [vmem:[#allocation5 + $0x101c] ss:$392 sps:$4 sm:$0xff]   ;;  %v9575_v20 = vld [vmem:[#allocation5 + $0x1018] ss:$392 sps:$4 sm:$0xff]   ;;  %v947_v21 = vrot.slane %v10451_v54, %v10378_v61 }
 0x1af   :  { %v5641_v40 = vpop.f32.mrb[19].mxu0  ;;  %6188 = vmatprep.subr.bf16.mxu0 %v9532_v24  ;;  %6229 = vmatprep.subr.bf16.mxu1 %v9535_v25  ;;  %v5682_v44 = vpop.f32.mrb[19].mxu1  ;;  %v955_v22 = vrot.slane %v10451_v54, %v10381_v2  ;;  %v951_v23 = vrot.slane %v10451_v54, %v10384_v3  ;;  %v959_v24 = vrot.slane %v10451_v54, %v10387_v7  ;;  %v9580_v25 = vld [vmem:[#allocation5 + $0x1324] ss:$392 sps:$4 sm:$0xff]   ;;  %v9586_v54 = vld [vmem:[#allocation5 + $0x1634] ss:$392 sps:$4 sm:$0xff]  }
 0x1b0   :  { %v8916_v47 = vpack.c.bf16 %v5639_v34, %v5637_v31  ;;  %v8917_v48 = vpack.c.bf16 %v5680_v10, %v5678_v63  ;;  %v9581_v31 = vld [vmem:[#allocation5 + $0x1328] ss:$392 sps:$4 sm:$0xff]  }
 0x1b2   :  { %v10462_v51 = vrot.slane %v8916_v47, %v10363_v26  ;;  %v10465_v52 = vrot.slane %v8917_v48, %v10363_v26  ;;  %6189 = vmatpush1.bf16.msra.mxu0 %v9530_v29  ;;  %6230 = vmatpush1.bf16.msra.mxu1 %v9533_v30  ;;  %v9578_v30 = vld [vmem:[#allocation5 + $0x1320] ss:$392 sps:$4 sm:$0xff]  }
 0x1b3   :  { %6190 = vmatprep.subr.bf16.mxu0 %v9538_v41  ;;  %6231 = vmatprep.subr.bf16.mxu1 %v9541_v42  ;;  %v9589_v42 = vld [vmem:[#allocation5 + $0x163c] ss:$392 sps:$4 sm:$0xff]  }
 0x1b4   :  { %v7609_v39 = vcombine.low %v10462_v51, %v10465_v52  ;;  %v9604_v51 = vld [vmem:[#allocation5 + $0x6f4] ss:$392 sps:$4 sm:$0xff]  }
 0x1b5   :  { %v9607_v52 = vld [vmem:[#allocation5 + $0x6fc] ss:$392 sps:$4 sm:$0xff]  }
 0x1b6   :  { %6191 = vmatpush1.bf16.msra.mxu0 %v9536_v50  ;;  %6232 = vmatpush1.bf16.msra.mxu1 %v9539_v35  ;;  %v9584_v50 = vld [vmem:[#allocation5 + $0x1630] ss:$392 sps:$4 sm:$0xff]  }
 0x1b7   :  { %6258 = vmatprep.subr.bf16.mxu0 %v9544_v55  ;;  %6299 = vmatprep.subr.bf16.mxu1 %v9547_v38  ;;  %v9587_v35 = vld [vmem:[#allocation5 + $0x1638] ss:$392 sps:$4 sm:$0xff]  }
 0x1b9   :  { %6209 = vmatmul.mubr.bf16.vlgmr.msra.gmra.mrb[44].mxu0 %v10426_v53  ;;  %6250 = vmatmul.mubr.bf16.vlgmr.msra.gmra.mrb[44].mxu1 %v10426_v53 }
 0x1ba   :  { %6259 = vmatpush1.bf16.msra.mxu0 %v9542_v43  ;;  %6300 = vmatpush1.bf16.msra.mxu1 %v9545_v56  ;;  %v9592_v43 = vld [vmem:[#allocation5 + $0xd4] ss:$392 sps:$4 sm:$0xff]  }
 0x1bb   :  { %6260 = vmatprep.subr.bf16.mxu0 %v9550_v12  ;;  %6301 = vmatprep.subr.bf16.mxu1 %v9553_v57  ;;  %v9595_v56 = vld [vmem:[#allocation5 + $0xdc] ss:$392 sps:$4 sm:$0xff]   ;;  %v9590_v57 = vld [vmem:[#allocation5 + $0xd0] ss:$392 sps:$4 sm:$0xff]  }
 0x1bc   :  { %6290 = vmatprep.mubr.bf16.mxu0 %v10245_v0  ;;  %6331 = vmatprep.mubr.bf16.mxu1 %v10245_v0 }
 0x1be   :  { %6261 = vmatpush1.bf16.msra.mxu0 %v9548_v58  ;;  %6302 = vmatpush1.bf16.msra.mxu1 %v9551_v45  ;;  %v9593_v58 = vld [vmem:[#allocation5 + $0xd8] ss:$392 sps:$4 sm:$0xff]   ;;  %v7617_v45 = vrot.slane %v7609_v39, %v10363_v26 }
 0x1bf   :  { %6262 = vmatprep.subr.bf16.mxu0 %v9556_v46  ;;  %6303 = vmatprep.subr.bf16.mxu1 %v9559_v49  ;;  %v9598_v49 = vld [vmem:[#allocation5 + $0x3e4] ss:$392 sps:$4 sm:$0xff]   ;;  %v9602_v39 = vld [vmem:[#allocation5 + $0x6f0] ss:$392 sps:$4 sm:$0xff]  }
 0x1c2   :  { %6263 = vmatpush1.bf16.msra.mxu0 %v9554_v60  ;;  %6304 = vmatpush1.bf16.msra.mxu1 %v9557_v5  ;;  %v9601_v60 = vld [vmem:[#allocation5 + $0x3ec] ss:$392 sps:$4 sm:$0xff]  }
 0x1c3   :  { %6264 = vmatprep.subr.bf16.mxu0 %v9562_v6  ;;  %6305 = vmatprep.subr.bf16.mxu1 %v9565_v8  ;;  %v9596_v6 = vld [vmem:[#allocation5 + $0x3e0] ss:$392 sps:$4 sm:$0xff]  }
 0x1c4   :  { %v9599_v8 = vld [vmem:[#allocation5 + $0x3e8] ss:$392 sps:$4 sm:$0xff]  }
 0x1c6   :  { %6265 = vmatpush1.bf16.msra.mxu0 %v9560_v9  ;;  %6306 = vmatpush1.bf16.msra.mxu1 %v9563_v11  ;;  %v9605_v9 = vld [vmem:[#allocation5 + $0x6f8] ss:$392 sps:$4 sm:$0xff]   ;;  %v9613_v11 = vld [vmem:[#allocation5 + $0xa0c] ss:$392 sps:$4 sm:$0xff]  }
 0x1c7   :  { %6266 = vmatprep.subr.bf16.mxu0 %v9568_v13  ;;  %6307 = vmatprep.subr.bf16.mxu1 %v9571_v14  ;;  %v9608_v13 = vld [vmem:[#allocation5 + $0xa00] ss:$392 sps:$4 sm:$0xff]  }
 0x1c8   :  { %v9611_v14 = vld [vmem:[#allocation5 + $0xa08] ss:$392 sps:$4 sm:$0xff]  }
 0x1ca   :  { %6267 = vmatpush1.bf16.msra.mxu0 %v9566_v15  ;;  %6308 = vmatpush1.bf16.msra.mxu1 %v9569_v16  ;;  %v9616_v15 = vld [vmem:[#allocation5 + $0xd14] ss:$392 sps:$4 sm:$0xff]  }
 0x1cb   :  { %6268 = vmatprep.subr.bf16.mxu0 %v9574_v17  ;;  %6309 = vmatprep.subr.bf16.mxu1 %v9577_v18  ;;  %v9619_v16 = vld [vmem:[#allocation5 + $0xd1c] ss:$392 sps:$4 sm:$0xff]   ;;  %v9614_v17 = vld [vmem:[#allocation5 + $0xd10] ss:$392 sps:$4 sm:$0xff]  }
 0x1cc   :  { %v5718_v28 = vpop.f32.mrb[20].mxu0  ;;  %v5759_v29 = vpop.f32.mrb[20].mxu1  ;;  %v9617_v18 = vld [vmem:[#allocation5 + $0xd18] ss:$392 sps:$4 sm:$0xff]  }
 0x1cd   :  { %v5719_v63 = vadd.f32 %v5718_v28, %v947_v21  ;;  %v5760_v32 = vadd.f32 %v5759_v29, %v955_v22  ;;  %v5720_v33 = vpop.f32.mrb[21].mxu0  ;;  %v5761_v34 = vpop.f32.mrb[21].mxu1  ;;  %v9625_v21 = vld [vmem:[#allocation5 + $0x102c] ss:$392 sps:$4 sm:$0xff]   ;;  %v9620_v22 = vld [vmem:[#allocation5 + $0x1020] ss:$392 sps:$4 sm:$0xff]  }
 0x1ce   :  { %v5721_v10 = vadd.f32 %v5720_v33, %v951_v23  ;;  %v5762_v36 = vadd.f32 %v5761_v34, %v959_v24  ;;  %v5722_v37 = vpop.f32.mrb[22].mxu0  ;;  %6269 = vmatpush1.bf16.msra.mxu0 %v9572_v19  ;;  %6310 = vmatpush1.bf16.msra.mxu1 %v9575_v20  ;;  %v5763_v40 = vpop.f32.mrb[22].mxu1  ;;  %v10492_v19 = vld [vmem:[#allocation7 + $0x18] sm:$0xff]  ;;  %v9622_v20 = vld [vmem:[#allocation5 + $0x1024] ss:$392 sps:$4 sm:$0xff]  }
 0x1cf   :  { %v5723_v41 = vpop.f32.mrb[23].mxu0  ;;  %6270 = vmatprep.subr.bf16.mxu0 %v9580_v25  ;;  %6311 = vmatprep.subr.bf16.mxu1 %v9583_v27  ;;  %v5764_v44 = vpop.f32.mrb[23].mxu1  ;;  %v963_v23 = vrot.slane %v10492_v19, %v10341_v59  ;;  %v971_v24 = vrot.slane %v10492_v19, %v10344_v62  ;;  %v967_v25 = vrot.slane %v10492_v19, %v10349_v1  ;;  %v9623_v28 = vld [vmem:[#allocation5 + $0x1028] ss:$392 sps:$4 sm:$0xff]   ;;  %v9628_v29 = vld [vmem:[#allocation5 + $0x1334] ss:$392 sps:$4 sm:$0xff]  }
 0x1d0   :  { %v8918_v47 = vpack.c.bf16 %v5721_v10, %v5719_v63  ;;  %v8919_v48 = vpack.c.bf16 %v5762_v36, %v5760_v32  ;;  %v975_v27 = vrot.slane %v10492_v19, %v10352_v4  ;;  %v9626_v32 = vld [vmem:[#allocation5 + $0x1330] ss:$392 sps:$4 sm:$0xff]  }
 0x1d1   :  { %v9629_v33 = vld [vmem:[#allocation5 + $0x1338] ss:$392 sps:$4 sm:$0xff]  }
 0x1d2   :  { %v7601_v55 = vrot.slane %v8918_v47, %v10363_v26  ;;  %v7608_v38 = vrot.slane %v8919_v48, %v10363_v26  ;;  %6271 = vmatpush1.bf16.msra.mxu0 %v9578_v30  ;;  %6312 = vmatpush1.bf16.msra.mxu1 %v9581_v31  ;;  %v9631_v30 = vld [vmem:[#allocation5 + $0x133c] ss:$392 sps:$4 sm:$0xff]   ;;  %v9637_v48 = vld [vmem:[#allocation5 + $0x164c] ss:$392 sps:$4 sm:$0xff]  }
 0x1d3   :  { %6272 = vmatprep.subr.bf16.mxu0 %v9586_v54  ;;  %6313 = vmatprep.subr.bf16.mxu1 %v9589_v42  ;;  %v9634_v47 = vld [vmem:[#allocation5 + $0x1644] ss:$392 sps:$4 sm:$0xff]  }
 0x1d4   :  { %v7610_v12 = vcombine.low %v7601_v55, %v7608_v38  ;;  %v9632_v38 = vld [vmem:[#allocation5 + $0x1640] ss:$392 sps:$4 sm:$0xff]  }
 0x1d6   :  { %v7624_v46 = vrot.slane %v7610_v12, %v10363_v26  ;;  %6273 = vmatpush1.bf16.msra.mxu0 %v9584_v50  ;;  %6314 = vmatpush1.bf16.msra.mxu1 %v9587_v35 }
 0x1d7   :  { %6340 = vmatprep.subr.bf16.mxu0 %v9592_v43  ;;  %6381 = vmatprep.subr.bf16.mxu1 %v9595_v56  ;;  %v9635_v43 = vld [vmem:[#allocation5 + $0x1648] ss:$392 sps:$4 sm:$0xff]  }
 0x1d8   :  { %v7625_v5 = vcombine.low %v7617_v45, %v7624_v46  ;;  %v9638_v46 = vld [vmem:[#allocation5 + $0xe0] ss:$392 sps:$4 sm:$0xff]  }
 0x1d9   :  { %6291 = vmatmul.mubr.bf16.vlgmr.msra.gmra.mrb[48].mxu0 %v10426_v53  ;;  %6332 = vmatmul.mubr.bf16.vlgmr.msra.gmra.mrb[48].mxu1 %v10426_v53  ;;  %v9610_v53 = vld [vmem:[#allocation5 + $0xa04] ss:$392 sps:$4 sm:$0xff]  }
 0x1da   :  { %8097 = vst [vmem:[#allocation8 + $0x10] sm:$0xff] %v7625_v5  ;;  %6341 = vmatpush1.bf16.msra.mxu0 %v9590_v57  ;;  %6382 = vmatpush1.bf16.msra.mxu1 %v9593_v58  ;;  %v9640_v57 = vld [vmem:[#allocation5 + $0xe4] ss:$392 sps:$4 sm:$0xff]  }
 0x1db   :  { %6342 = vmatprep.subr.bf16.mxu0 %v9598_v49  ;;  %6383 = vmatprep.subr.bf16.mxu1 %v9601_v60  ;;  %v9643_v58 = vld [vmem:[#allocation5 + $0xec] ss:$392 sps:$4 sm:$0xff]   ;;  %v9641_v49 = vld [vmem:[#allocation5 + $0xe8] ss:$392 sps:$4 sm:$0xff]   ;;  %v9649_v5 = vld [vmem:[#allocation5 + $0x3fc] ss:$392 sps:$4 sm:$0xff]  }
 0x1dc   :  { %6372 = vmatprep.mubr.bf16.mxu0 %v10245_v0  ;;  %6413 = vmatprep.mubr.bf16.mxu1 %v10245_v0  ;;  %v9646_v60 = vld [vmem:[#allocation5 + $0x3f4] ss:$392 sps:$4 sm:$0xff]  }
 0x1de   :  { %6343 = vmatpush1.bf16.msra.mxu0 %v9596_v6  ;;  %6384 = vmatpush1.bf16.msra.mxu1 %v9599_v8  ;;  %v10510_v6 = vld [vmem:[#allocation2] sm:$0x1]  ;;  %v9644_v8 = vld [vmem:[#allocation5 + $0x3f0] ss:$392 sps:$4 sm:$0xff]  }
 0x1df   :  { %6344 = vmatprep.subr.bf16.mxu0 %v9604_v51  ;;  %6385 = vmatprep.subr.bf16.mxu1 %v9607_v52  ;;  %v9647_v51 = vld [vmem:[#allocation5 + $0x3f8] ss:$392 sps:$4 sm:$0xff]   ;;  %v9652_v52 = vld [vmem:[#allocation5 + $0x704] ss:$392 sps:$4 sm:$0xff]  }
 0x1e2   :  { %6345 = vmatpush1.bf16.msra.mxu0 %v9602_v39  ;;  %6386 = vmatpush1.bf16.msra.mxu1 %v9605_v9  ;;  %v9655_v39 = vld [vmem:[#allocation5 + $0x70c] ss:$392 sps:$4 sm:$0xff]   ;;  %v9650_v9 = vld [vmem:[#allocation5 + $0x700] ss:$392 sps:$4 sm:$0xff]  }
 0x1e3   :  { %6346 = vmatprep.subr.bf16.mxu0 %v9610_v53  ;;  %6387 = vmatprep.subr.bf16.mxu1 %v9613_v11  ;;  %v9653_v53 = vld [vmem:[#allocation5 + $0x708] ss:$392 sps:$4 sm:$0xff]   ;;  %v9658_v11 = vld [vmem:[#allocation5 + $0xa14] ss:$392 sps:$4 sm:$0xff]  }
 0x1e6   :  { %6347 = vmatpush1.bf16.msra.mxu0 %v9608_v13  ;;  %6388 = vmatpush1.bf16.msra.mxu1 %v9611_v14  ;;  %v9661_v13 = vld [vmem:[#allocation5 + $0xa1c] ss:$392 sps:$4 sm:$0xff]   ;;  %v9656_v14 = vld [vmem:[#allocation5 + $0xa10] ss:$392 sps:$4 sm:$0xff]  }
 0x1e7   :  { %6348 = vmatprep.subr.bf16.mxu0 %v9616_v15  ;;  %6389 = vmatprep.subr.bf16.mxu1 %v9619_v16  ;;  %v9659_v15 = vld [vmem:[#allocation5 + $0xa18] ss:$392 sps:$4 sm:$0xff]   ;;  %v9664_v16 = vld [vmem:[#allocation5 + $0xd24] ss:$392 sps:$4 sm:$0xff]  }
 0x1ea   :  { %6349 = vmatpush1.bf16.msra.mxu0 %v9614_v17  ;;  %6390 = vmatpush1.bf16.msra.mxu1 %v9617_v18  ;;  %v9667_v17 = vld [vmem:[#allocation5 + $0xd2c] ss:$392 sps:$4 sm:$0xff]   ;;  %v9662_v18 = vld [vmem:[#allocation5 + $0xd20] ss:$392 sps:$4 sm:$0xff]  }
 0x1eb   :  { %6350 = vmatprep.subr.bf16.mxu0 %v9622_v20  ;;  %6391 = vmatprep.subr.bf16.mxu1 %v9625_v21  ;;  %v9665_v20 = vld [vmem:[#allocation5 + $0xd28] ss:$392 sps:$4 sm:$0xff]   ;;  %v9670_v21 = vld [vmem:[#allocation5 + $0x1034] ss:$392 sps:$4 sm:$0xff]  }
 0x1ec   :  { %v5800_v31 = vpop.f32.mrb[24].mxu0  ;;  %v5841_v63 = vpop.f32.mrb[24].mxu1 }
 0x1ed   :  { %v5801_v34 = vadd.f32 %v5800_v31, %v963_v23  ;;  %v5842_v10 = vadd.f32 %v5841_v63, %v971_v24  ;;  %v5802_v36 = vpop.f32.mrb[25].mxu0  ;;  %v5843_v37 = vpop.f32.mrb[25].mxu1  ;;  %v979_v23 = vrot.slane %v10492_v19, %v10378_v61  ;;  %v987_v24 = vrot.slane %v10492_v19, %v10381_v2  ;;  %v9679_v31 = vld [vmem:[#allocation5 + $0x134c] ss:$392 sps:$4 sm:$0xff]  }
 0x1ee   :  { %v5803_v40 = vadd.f32 %v5802_v36, %v967_v25  ;;  %v5844_v41 = vadd.f32 %v5843_v37, %v975_v27  ;;  %v5804_v54 = vpop.f32.mrb[26].mxu0  ;;  %6351 = vmatpush1.bf16.msra.mxu0 %v9620_v22  ;;  %6392 = vmatpush1.bf16.msra.mxu1 %v9623_v28  ;;  %v5845_v42 = vpop.f32.mrb[26].mxu1  ;;  %v9673_v22 = vld [vmem:[#allocation5 + $0x103c] ss:$392 sps:$4 sm:$0xff]   ;;  %v983_v25 = vrot.slane %v10492_v19, %v10384_v3  ;;  %v9668_v28 = vld [vmem:[#allocation5 + $0x1030] ss:$392 sps:$4 sm:$0xff]  }
 0x1ef   :  { %v5805_v44 = vpop.f32.mrb[27].mxu0  ;;  %6352 = vmatprep.subr.bf16.mxu0 %v9628_v29  ;;  %6393 = vmatprep.subr.bf16.mxu1 %v9631_v30  ;;  %v5846_v50 = vpop.f32.mrb[27].mxu1  ;;  %v991_v27 = vrot.slane %v10492_v19, %v10387_v7  ;;  %v9671_v29 = vld [vmem:[#allocation5 + $0x1038] ss:$392 sps:$4 sm:$0xff]   ;;  %v9676_v30 = vld [vmem:[#allocation5 + $0x1344] ss:$392 sps:$4 sm:$0xff]  }
 0x1f0   :  { %v8920_v35 = vpack.c.bf16 %v5803_v40, %v5801_v34  ;;  %v8921_v55 = vpack.c.bf16 %v5844_v41, %v5842_v10  ;;  %v9674_v54 = vld [vmem:[#allocation5 + $0x1340] ss:$392 sps:$4 sm:$0xff]  }
 0x1f1   :  { %v9677_v42 = vld [vmem:[#allocation5 + $0x1348] ss:$392 sps:$4 sm:$0xff]  }
 0x1f2   :  { %v10503_v56 = vrot.slane %v8920_v35, %v10363_v26  ;;  %v10506_v12 = vrot.slane %v8921_v55, %v10363_v26  ;;  %6353 = vmatpush1.bf16.msra.mxu0 %v9626_v32  ;;  %6394 = vmatpush1.bf16.msra.mxu1 %v9629_v33 }
 0x1f3   :  { %6354 = vmatprep.subr.bf16.mxu0 %v9634_v47  ;;  %6395 = vmatprep.subr.bf16.mxu1 %v9637_v48  ;;  %v9682_v47 = vld [vmem:[#allocation5 + $0x1654] ss:$392 sps:$4 sm:$0xff]  }
 0x1f4   :  { %v7658_v45 = vcombine.low %v10503_v56, %v10506_v12  ;;  %v9685_v48 = vld [vmem:[#allocation5 + $0x165c] ss:$392 sps:$4 sm:$0xff]   ;;  %v9692_v56 = vld [vmem:[#allocation5 + $0x400] ss:$392 sps:$4 sm:$0xff]  }
 0x1f5   :  { %v9695_v12 = vld [vmem:[#allocation5 + $0x408] ss:$392 sps:$4 sm:$0xff]  }
 0x1f6   :  { %6355 = vmatpush1.bf16.msra.mxu0 %v9632_v38  ;;  %6396 = vmatpush1.bf16.msra.mxu1 %v9635_v43 }
 0x1f7   :  { %6422 = vmatprep.subr.bf16.mxu0 %v9640_v57  ;;  %6463 = vmatprep.subr.bf16.mxu1 %v9643_v58  ;;  %v9680_v57 = vld [vmem:[#allocation5 + $0x1650] ss:$392 sps:$4 sm:$0xff]  }
 0x1f8   :  { %v9683_v58 = vld [vmem:[#allocation5 + $0x1658] ss:$392 sps:$4 sm:$0xff]  }
 0x1f9   :  { %6373 = vmatmul.mubr.bf16.vlgmr.msra.gmra.mrb[52].mxu0 %v10510_v6  ;;  %6414 = vmatmul.mubr.bf16.vlgmr.msra.gmra.mrb[52].mxu1 %v10510_v6 }
 0x1fa   :  { %6423 = vmatpush1.bf16.msra.mxu0 %v9638_v46  ;;  %6464 = vmatpush1.bf16.msra.mxu1 %v9641_v49  ;;  %v9688_v46 = vld [vmem:[#allocation5 + $0xf4] ss:$392 sps:$4 sm:$0xff]  }
 0x1fb   :  { %6424 = vmatprep.subr.bf16.mxu0 %v9646_v60  ;;  %6465 = vmatprep.subr.bf16.mxu1 %v9649_v5  ;;  %v9691_v49 = vld [vmem:[#allocation5 + $0xfc] ss:$392 sps:$4 sm:$0xff]   ;;  %v7666_v5 = vrot.slane %v7658_v45, %v10363_v26 }
 0x1fc   :  { %6454 = vmatprep.mubr.bf16.mxu0 %v10245_v0  ;;  %6495 = vmatprep.mubr.bf16.mxu1 %v10245_v0  ;;  %v9700_v45 = vld [vmem:[#allocation5 + $0x714] ss:$392 sps:$4 sm:$0xff]  }
 0x1fe   :  { %6425 = vmatpush1.bf16.msra.mxu0 %v9644_v8  ;;  %6466 = vmatpush1.bf16.msra.mxu1 %v9647_v51  ;;  %v9686_v51 = vld [vmem:[#allocation5 + $0xf0] ss:$392 sps:$4 sm:$0xff]  }
 0x1ff   :  { %6426 = vmatprep.subr.bf16.mxu0 %v9652_v52  ;;  %6467 = vmatprep.subr.bf16.mxu1 %v9655_v39  ;;  %v9689_v52 = vld [vmem:[#allocation5 + $0xf8] ss:$392 sps:$4 sm:$0xff]   ;;  %v9694_v39 = vld [vmem:[#allocation5 + $0x404] ss:$392 sps:$4 sm:$0xff]  }
 0x202   :  { %6427 = vmatpush1.bf16.msra.mxu0 %v9650_v9  ;;  %6468 = vmatpush1.bf16.msra.mxu1 %v9653_v53  ;;  %v9697_v9 = vld [vmem:[#allocation5 + $0x40c] ss:$392 sps:$4 sm:$0xff]  }
 0x203   :  { %6428 = vmatprep.subr.bf16.mxu0 %v9658_v11  ;;  %6469 = vmatprep.subr.bf16.mxu1 %v9661_v13  ;;  %v9703_v11 = vld [vmem:[#allocation5 + $0x71c] ss:$392 sps:$4 sm:$0xff]   ;;  %v9698_v13 = vld [vmem:[#allocation5 + $0x710] ss:$392 sps:$4 sm:$0xff]  }
 0x206   :  { %6429 = vmatpush1.bf16.msra.mxu0 %v9656_v14  ;;  %6470 = vmatpush1.bf16.msra.mxu1 %v9659_v15  ;;  %v9701_v14 = vld [vmem:[#allocation5 + $0x718] ss:$392 sps:$4 sm:$0xff]   ;;  %v9706_v15 = vld [vmem:[#allocation5 + $0xa24] ss:$392 sps:$4 sm:$0xff]  }
 0x207   :  { %6430 = vmatprep.subr.bf16.mxu0 %v9664_v16  ;;  %6471 = vmatprep.subr.bf16.mxu1 %v9667_v17  ;;  %v9709_v16 = vld [vmem:[#allocation5 + $0xa2c] ss:$392 sps:$4 sm:$0xff]   ;;  %v9704_v17 = vld [vmem:[#allocation5 + $0xa20] ss:$392 sps:$4 sm:$0xff]  }
 0x20a   :  { %6431 = vmatpush1.bf16.msra.mxu0 %v9662_v18  ;;  %6472 = vmatpush1.bf16.msra.mxu1 %v9665_v20  ;;  %v9707_v18 = vld [vmem:[#allocation5 + $0xa28] ss:$392 sps:$4 sm:$0xff]   ;;  %v9712_v20 = vld [vmem:[#allocation5 + $0xd34] ss:$392 sps:$4 sm:$0xff]  }
 0x20b   :  { %6432 = vmatprep.subr.bf16.mxu0 %v9670_v21  ;;  %6473 = vmatprep.subr.bf16.mxu1 %v9673_v22  ;;  %v9715_v21 = vld [vmem:[#allocation5 + $0xd3c] ss:$392 sps:$4 sm:$0xff]   ;;  %v9710_v22 = vld [vmem:[#allocation5 + $0xd30] ss:$392 sps:$4 sm:$0xff]  }
 0x20c   :  { %v5882_v63 = vpop.f32.mrb[28].mxu0  ;;  %v5923_v32 = vpop.f32.mrb[28].mxu1 }
 0x20d   :  { %v5883_v33 = vadd.f32 %v5882_v63, %v979_v23  ;;  %v5924_v34 = vadd.f32 %v5923_v32, %v987_v24  ;;  %v5884_v10 = vpop.f32.mrb[29].mxu0  ;;  %v5925_v36 = vpop.f32.mrb[29].mxu1  ;;  %v9713_v23 = vld [vmem:[#allocation5 + $0xd38] ss:$392 sps:$4 sm:$0xff]   ;;  %v9719_v32 = vld [vmem:[#allocation5 + $0x1048] ss:$392 sps:$4 sm:$0xff]  }
 0x20e   :  { %v5885_v37 = vadd.f32 %v5884_v10, %v983_v25  ;;  %v5926_v40 = vadd.f32 %v5925_v36, %v991_v27  ;;  %v5886_v41 = vpop.f32.mrb[30].mxu0  ;;  %6433 = vmatpush1.bf16.msra.mxu0 %v9668_v28  ;;  %6474 = vmatpush1.bf16.msra.mxu1 %v9671_v29  ;;  %v5927_v19 = vpop.f32.mrb[30].mxu1  ;;  %v10535_v24 = vld [vmem:[#allocation7 + $0x20] sm:$0xff]  ;;  %v9721_v27 = vld [vmem:[#allocation5 + $0x104c] ss:$392 sps:$4 sm:$0xff]  }
 0x20f   :  { %v5887_v44 = vpop.f32.mrb[31].mxu0  ;;  %6434 = vmatprep.subr.bf16.mxu0 %v9676_v30  ;;  %6475 = vmatprep.subr.bf16.mxu1 %v9679_v31  ;;  %v5928_v50 = vpop.f32.mrb[31].mxu1  ;;  %v9718_v25 = vld [vmem:[#allocation5 + $0x1044] ss:$392 sps:$4 sm:$0xff]   ;;  %v995_v28 = vrot.slane %v10535_v24, %v10341_v59  ;;  %v1003_v29 = vrot.slane %v10535_v24, %v10344_v62  ;;  %v999_v30 = vrot.slane %v10535_v24, %v10349_v1  ;;  %v9716_v63 = vld [vmem:[#allocation5 + $0x1040] ss:$392 sps:$4 sm:$0xff]  }
 0x210   :  { %v8922_v35 = vpack.c.bf16 %v5885_v37, %v5883_v33  ;;  %v8923_v55 = vpack.c.bf16 %v5926_v40, %v5924_v34  ;;  %v1007_v31 = vrot.slane %v10535_v24, %v10352_v4  ;;  %v9724_v33 = vld [vmem:[#allocation5 + $0x1354] ss:$392 sps:$4 sm:$0xff]  }
 0x211   :  { %v9727_v34 = vld [vmem:[#allocation5 + $0x135c] ss:$392 sps:$4 sm:$0xff]  }
 0x212   :  { %v7650_v38 = vrot.slane %v8922_v35, %v10363_v26  ;;  %v7657_v43 = vrot.slane %v8923_v55, %v10363_v26  ;;  %6435 = vmatpush1.bf16.msra.mxu0 %v9674_v54  ;;  %6476 = vmatpush1.bf16.msra.mxu1 %v9677_v42  ;;  %v9730_v55 = vld [vmem:[#allocation5 + $0x1664] ss:$392 sps:$4 sm:$0xff]  }
 0x213   :  { %6436 = vmatprep.subr.bf16.mxu0 %v9682_v47  ;;  %6477 = vmatprep.subr.bf16.mxu1 %v9685_v48  ;;  %v9722_v47 = vld [vmem:[#allocation5 + $0x1350] ss:$392 sps:$4 sm:$0xff]  }
 0x214   :  { %v7659_v60 = vcombine.low %v7650_v38, %v7657_v43  ;;  %v9725_v48 = vld [vmem:[#allocation5 + $0x1358] ss:$392 sps:$4 sm:$0xff]   ;;  %v9733_v38 = vld [vmem:[#allocation5 + $0x166c] ss:$392 sps:$4 sm:$0xff]  }
 0x216   :  { %v7673_v8 = vrot.slane %v7659_v60, %v10363_v26  ;;  %6437 = vmatpush1.bf16.msra.mxu0 %v9680_v57  ;;  %6478 = vmatpush1.bf16.msra.mxu1 %v9683_v58  ;;  %v9728_v60 = vld [vmem:[#allocation5 + $0x1660] ss:$392 sps:$4 sm:$0xff]  }
 0x217   :  { %6504 = vmatprep.subr.bf16.mxu0 %v9688_v46  ;;  %6545 = vmatprep.subr.bf16.mxu1 %v9691_v49 }
 0x218   :  { %v7674_v53 = vcombine.low %v7666_v5, %v7673_v8  ;;  %v9731_v5 = vld [vmem:[#allocation5 + $0x1668] ss:$392 sps:$4 sm:$0xff]   ;;  %v9736_v8 = vld [vmem:[#allocation5 + $0x104] ss:$392 sps:$4 sm:$0xff]  }
 0x219   :  { %6455 = vmatmul.mubr.bf16.vlgmr.msra.gmra.mrb[56].mxu0 %v10510_v6  ;;  %6496 = vmatmul.mubr.bf16.vlgmr.msra.gmra.mrb[56].mxu1 %v10510_v6 }
 0x21a   :  { %8098 = vst [vmem:[#allocation8 + $0x18] sm:$0xff] %v7674_v53  ;;  %6505 = vmatpush1.bf16.msra.mxu0 %v9686_v51  ;;  %6546 = vmatpush1.bf16.msra.mxu1 %v9689_v52  ;;  %v9739_v51 = vld [vmem:[#allocation5 + $0x10c] ss:$392 sps:$4 sm:$0xff]  }
 0x21b   :  { %6506 = vmatprep.subr.bf16.mxu0 %v9694_v39  ;;  %6547 = vmatprep.subr.bf16.mxu1 %v9697_v9  ;;  %v9734_v39 = vld [vmem:[#allocation5 + $0x100] ss:$392 sps:$4 sm:$0xff]   ;;  %v9742_v53 = vld [vmem:[#allocation5 + $0x414] ss:$392 sps:$4 sm:$0xff]  }
 0x21c   :  { %6536 = vmatprep.mubr.bf16.mxu0 %v10245_v0  ;;  %6577 = vmatprep.mubr.bf16.mxu1 %v10245_v0  ;;  %v9737_v9 = vld [vmem:[#allocation5 + $0x108] ss:$392 sps:$4 sm:$0xff]  }
 0x21e   :  { %6507 = vmatpush1.bf16.msra.mxu0 %v9692_v56  ;;  %6548 = vmatpush1.bf16.msra.mxu1 %v9695_v12  ;;  %v9745_v56 = vld [vmem:[#allocation5 + $0x41c] ss:$392 sps:$4 sm:$0xff]   ;;  %v9740_v12 = vld [vmem:[#allocation5 + $0x410] ss:$392 sps:$4 sm:$0xff]  }
 0x21f   :  { %6508 = vmatprep.subr.bf16.mxu0 %v9700_v45  ;;  %6549 = vmatprep.subr.bf16.mxu1 %v9703_v11  ;;  %v9743_v45 = vld [vmem:[#allocation5 + $0x418] ss:$392 sps:$4 sm:$0xff]   ;;  %v9748_v11 = vld [vmem:[#allocation5 + $0x724] ss:$392 sps:$4 sm:$0xff]  }
 0x222   :  { %6509 = vmatpush1.bf16.msra.mxu0 %v9698_v13  ;;  %6550 = vmatpush1.bf16.msra.mxu1 %v9701_v14  ;;  %v9751_v13 = vld [vmem:[#allocation5 + $0x72c] ss:$392 sps:$4 sm:$0xff]   ;;  %v9746_v14 = vld [vmem:[#allocation5 + $0x720] ss:$392 sps:$4 sm:$0xff]  }
 0x223   :  { %6510 = vmatprep.subr.bf16.mxu0 %v9706_v15  ;;  %6551 = vmatprep.subr.bf16.mxu1 %v9709_v16  ;;  %v9749_v15 = vld [vmem:[#allocation5 + $0x728] ss:$392 sps:$4 sm:$0xff]   ;;  %v9754_v16 = vld [vmem:[#allocation5 + $0xa34] ss:$392 sps:$4 sm:$0xff]  }
 0x226   :  { %6511 = vmatpush1.bf16.msra.mxu0 %v9704_v17  ;;  %6552 = vmatpush1.bf16.msra.mxu1 %v9707_v18  ;;  %v9757_v17 = vld [vmem:[#allocation5 + $0xa3c] ss:$392 sps:$4 sm:$0xff]   ;;  %v9752_v18 = vld [vmem:[#allocation5 + $0xa30] ss:$392 sps:$4 sm:$0xff]  }
 0x227   :  { %6512 = vmatprep.subr.bf16.mxu0 %v9712_v20  ;;  %6553 = vmatprep.subr.bf16.mxu1 %v9715_v21  ;;  %v9755_v20 = vld [vmem:[#allocation5 + $0xa38] ss:$392 sps:$4 sm:$0xff]   ;;  %v9760_v21 = vld [vmem:[#allocation5 + $0xd44] ss:$392 sps:$4 sm:$0xff]  }
 0x22a   :  { %6513 = vmatpush1.bf16.msra.mxu0 %v9710_v22  ;;  %6554 = vmatpush1.bf16.msra.mxu1 %v9713_v23  ;;  %v9763_v22 = vld [vmem:[#allocation5 + $0xd4c] ss:$392 sps:$4 sm:$0xff]   ;;  %v9758_v23 = vld [vmem:[#allocation5 + $0xd40] ss:$392 sps:$4 sm:$0xff]  }
 0x22b   :  { %6514 = vmatprep.subr.bf16.mxu0 %v9718_v25  ;;  %6555 = vmatprep.subr.bf16.mxu1 %v9721_v27  ;;  %v9761_v25 = vld [vmem:[#allocation5 + $0xd48] ss:$392 sps:$4 sm:$0xff]   ;;  %v9766_v27 = vld [vmem:[#allocation5 + $0x1054] ss:$392 sps:$4 sm:$0xff]  }
 0x22c   :  { %v5964_v10 = vpop.f32.mrb[32].mxu0  ;;  %v6005_v36 = vpop.f32.mrb[32].mxu1 }
 0x22d   :  { %v5965_v37 = vadd.f32 %v5964_v10, %v995_v28  ;;  %v6006_v40 = vadd.f32 %v6005_v36, %v1003_v29  ;;  %v5966_v41 = vpop.f32.mrb[33].mxu0  ;;  %v6007_v54 = vpop.f32.mrb[33].mxu1  ;;  %v9769_v28 = vld [vmem:[#allocation5 + $0x105c] ss:$392 sps:$4 sm:$0xff]   ;;  %v1011_v29 = vrot.slane %v10535_v24, %v10378_v61  ;;  %v9775_v10 = vld [vmem:[#allocation5 + $0x136c] ss:$392 sps:$4 sm:$0xff]  }
 0x22e   :  { %v5967_v42 = vadd.f32 %v5966_v41, %v999_v30  ;;  %v6008_v19 = vadd.f32 %v6007_v54, %v1007_v31  ;;  %v5968_v44 = vpop.f32.mrb[34].mxu0  ;;  %6515 = vmatpush1.bf16.msra.mxu0 %v9716_v63  ;;  %6556 = vmatpush1.bf16.msra.mxu1 %v9719_v32  ;;  %v6009_v50 = vpop.f32.mrb[34].mxu1  ;;  %v1019_v30 = vrot.slane %v10535_v24, %v10381_v2  ;;  %v9764_v32 = vld [vmem:[#allocation5 + $0x1050] ss:$392 sps:$4 sm:$0xff]  }
 0x22f   :  { %v5969_v35 = vpop.f32.mrb[35].mxu0  ;;  %6516 = vmatprep.subr.bf16.mxu0 %v9724_v33  ;;  %6557 = vmatprep.subr.bf16.mxu1 %v9727_v34  ;;  %v6010_v43 = vpop.f32.mrb[35].mxu1  ;;  %v1015_v31 = vrot.slane %v10535_v24, %v10384_v3  ;;  %v1023_v63 = vrot.slane %v10535_v24, %v10387_v7  ;;  %v9767_v33 = vld [vmem:[#allocation5 + $0x1058] ss:$392 sps:$4 sm:$0xff]   ;;  %v9772_v34 = vld [vmem:[#allocation5 + $0x1364] ss:$392 sps:$4 sm:$0xff]  }
 0x230   :  { %v8924_v57 = vpack.c.bf16 %v5967_v42, %v5965_v37  ;;  %v8925_v58 = vpack.c.bf16 %v6008_v19, %v6006_v40  ;;  %v9773_v50 = vld [vmem:[#allocation5 + $0x1368] ss:$392 sps:$4 sm:$0xff]  }
 0x232   :  { %v10546_v46 = vrot.slane %v8924_v57, %v10363_v26  ;;  %v10549_v49 = vrot.slane %v8925_v58, %v10363_v26  ;;  %6517 = vmatpush1.bf16.msra.mxu0 %v9722_v47  ;;  %6558 = vmatpush1.bf16.msra.mxu1 %v9725_v48  ;;  %v9770_v48 = vld [vmem:[#allocation5 + $0x1360] ss:$392 sps:$4 sm:$0xff]  }
 0x233   :  { %6518 = vmatprep.subr.bf16.mxu0 %v9730_v55  ;;  %6559 = vmatprep.subr.bf16.mxu1 %v9733_v38  ;;  %v9778_v55 = vld [vmem:[#allocation5 + $0x1674] ss:$392 sps:$4 sm:$0xff]  }
 0x234   :  { %v7707_v52 = vcombine.low %v10546_v46, %v10549_v49  ;;  %v9781_v38 = vld [vmem:[#allocation5 + $0x167c] ss:$392 sps:$4 sm:$0xff]   ;;  %v9788_v46 = vld [vmem:[#allocation5 + $0x420] ss:$392 sps:$4 sm:$0xff]  }
 0x235   :  { %v9791_v49 = vld [vmem:[#allocation5 + $0x428] ss:$392 sps:$4 sm:$0xff]  }
 0x236   :  { %6519 = vmatpush1.bf16.msra.mxu0 %v9728_v60  ;;  %6560 = vmatpush1.bf16.msra.mxu1 %v9731_v5 }
 0x237   :  { %6586 = vmatprep.subr.bf16.mxu0 %v9736_v8  ;;  %6627 = vmatprep.subr.bf16.mxu1 %v9739_v51  ;;  %v9776_v8 = vld [vmem:[#allocation5 + $0x1670] ss:$392 sps:$4 sm:$0xff]  }
 0x238   :  { %v9779_v51 = vld [vmem:[#allocation5 + $0x1678] ss:$392 sps:$4 sm:$0xff]  }
 0x239   :  { %6537 = vmatmul.mubr.bf16.vlgmr.msra.gmra.mrb[60].mxu0 %v10510_v6  ;;  %6578 = vmatmul.mubr.bf16.vlgmr.msra.gmra.mrb[60].mxu1 %v10510_v6 }
 0x23a   :  { %6587 = vmatpush1.bf16.msra.mxu0 %v9734_v39  ;;  %6628 = vmatpush1.bf16.msra.mxu1 %v9737_v9  ;;  %v9784_v39 = vld [vmem:[#allocation5 + $0x114] ss:$392 sps:$4 sm:$0xff]  }
 0x23b   :  { %6588 = vmatprep.subr.bf16.mxu0 %v9742_v53  ;;  %6629 = vmatprep.subr.bf16.mxu1 %v9745_v56  ;;  %v9787_v9 = vld [vmem:[#allocation5 + $0x11c] ss:$392 sps:$4 sm:$0xff]   ;;  %v7715_v56 = vrot.slane %v7707_v52, %v10363_v26 }
 0x23c   :  { %6618 = vmatprep.mubr.bf16.mxu0 %v10245_v0  ;;  %6659 = vmatprep.mubr.bf16.mxu1 %v10245_v0  ;;  %v9796_v52 = vld [vmem:[#allocation5 + $0x734] ss:$392 sps:$4 sm:$0xff]  }
 0x23e   :  { %6589 = vmatpush1.bf16.msra.mxu0 %v9740_v12  ;;  %6630 = vmatpush1.bf16.msra.mxu1 %v9743_v45  ;;  %v9782_v45 = vld [vmem:[#allocation5 + $0x110] ss:$392 sps:$4 sm:$0xff]  }
 0x23f   :  { %6590 = vmatprep.subr.bf16.mxu0 %v9748_v11  ;;  %6631 = vmatprep.subr.bf16.mxu1 %v9751_v13  ;;  %v9785_v11 = vld [vmem:[#allocation5 + $0x118] ss:$392 sps:$4 sm:$0xff]   ;;  %v9790_v13 = vld [vmem:[#allocation5 + $0x424] ss:$392 sps:$4 sm:$0xff]  }
 0x242   :  { %6591 = vmatpush1.bf16.msra.mxu0 %v9746_v14  ;;  %6632 = vmatpush1.bf16.msra.mxu1 %v9749_v15  ;;  %v9793_v14 = vld [vmem:[#allocation5 + $0x42c] ss:$392 sps:$4 sm:$0xff]  }
 0x243   :  { %6592 = vmatprep.subr.bf16.mxu0 %v9754_v16  ;;  %6633 = vmatprep.subr.bf16.mxu1 %v9757_v17  ;;  %v9799_v16 = vld [vmem:[#allocation5 + $0x73c] ss:$392 sps:$4 sm:$0xff]   ;;  %v9794_v17 = vld [vmem:[#allocation5 + $0x730] ss:$392 sps:$4 sm:$0xff]  }
 0x246   :  { %6593 = vmatpush1.bf16.msra.mxu0 %v9752_v18  ;;  %6634 = vmatpush1.bf16.msra.mxu1 %v9755_v20  ;;  %v9797_v18 = vld [vmem:[#allocation5 + $0x738] ss:$392 sps:$4 sm:$0xff]   ;;  %v9802_v20 = vld [vmem:[#allocation5 + $0xa44] ss:$392 sps:$4 sm:$0xff]  }
 0x247   :  { %6594 = vmatprep.subr.bf16.mxu0 %v9760_v21  ;;  %6635 = vmatprep.subr.bf16.mxu1 %v9763_v22  ;;  %v9805_v21 = vld [vmem:[#allocation5 + $0xa4c] ss:$392 sps:$4 sm:$0xff]   ;;  %v9800_v22 = vld [vmem:[#allocation5 + $0xa40] ss:$392 sps:$4 sm:$0xff]  }
 0x24a   :  { %6595 = vmatpush1.bf16.msra.mxu0 %v9758_v23  ;;  %6636 = vmatpush1.bf16.msra.mxu1 %v9761_v25  ;;  %v9803_v23 = vld [vmem:[#allocation5 + $0xa48] ss:$392 sps:$4 sm:$0xff]   ;;  %v9808_v25 = vld [vmem:[#allocation5 + $0xd54] ss:$392 sps:$4 sm:$0xff]  }
 0x24b   :  { %6596 = vmatprep.subr.bf16.mxu0 %v9766_v27  ;;  %6637 = vmatprep.subr.bf16.mxu1 %v9769_v28  ;;  %v9811_v27 = vld [vmem:[#allocation5 + $0xd5c] ss:$392 sps:$4 sm:$0xff]   ;;  %v9806_v28 = vld [vmem:[#allocation5 + $0xd50] ss:$392 sps:$4 sm:$0xff]  }
 0x24c   :  { %v6046_v36 = vpop.f32.mrb[36].mxu0  ;;  %v6087_v37 = vpop.f32.mrb[36].mxu1 }
 0x24d   :  { %v6047_v40 = vadd.f32 %v6046_v36, %v1011_v29  ;;  %v6088_v41 = vadd.f32 %v6087_v37, %v1019_v30  ;;  %v6048_v54 = vpop.f32.mrb[37].mxu0  ;;  %v6089_v42 = vpop.f32.mrb[37].mxu1  ;;  %v9809_v29 = vld [vmem:[#allocation5 + $0xd58] ss:$392 sps:$4 sm:$0xff]   ;;  %v10576_v30 = vld [vmem:[#allocation7 + $0x28] sm:$0xff] }
 0x24e   :  { %v6049_v19 = vadd.f32 %v6048_v54, %v1015_v31  ;;  %v6090_v44 = vadd.f32 %v6089_v42, %v1023_v63  ;;  %v6050_v47 = vpop.f32.mrb[38].mxu0  ;;  %6597 = vmatpush1.bf16.msra.mxu0 %v9764_v32  ;;  %6638 = vmatpush1.bf16.msra.mxu1 %v9767_v33  ;;  %v6091_v24 = vpop.f32.mrb[38].mxu1  ;;  %v9814_v31 = vld [vmem:[#allocation5 + $0x1064] ss:$392 sps:$4 sm:$0xff]   ;;  %v1027_v32 = vrot.slane %v10576_v30, %v10341_v59  ;;  %v9812_v36 = vld [vmem:[#allocation5 + $0x1060] ss:$392 sps:$4 sm:$0xff]  }
 0x24f   :  { %v6051_v35 = vpop.f32.mrb[39].mxu0  ;;  %6598 = vmatprep.subr.bf16.mxu0 %v9772_v34  ;;  %6639 = vmatprep.subr.bf16.mxu1 %v9775_v10  ;;  %v6092_v43 = vpop.f32.mrb[39].mxu1  ;;  %v9817_v63 = vld [vmem:[#allocation5 + $0x106c] ss:$392 sps:$4 sm:$0xff]   ;;  %v1035_v33 = vrot.slane %v10576_v30, %v10344_v62  ;;  %v1031_v34 = vrot.slane %v10576_v30, %v10349_v1  ;;  %v1039_v10 = vrot.slane %v10576_v30, %v10352_v4  ;;  %v9815_v37 = vld [vmem:[#allocation5 + $0x1068] ss:$392 sps:$4 sm:$0xff]  }
 0x250   :  { %v8926_v57 = vpack.c.bf16 %v6049_v19, %v6047_v40  ;;  %v8927_v58 = vpack.c.bf16 %v6090_v44, %v6088_v41  ;;  %v9820_v40 = vld [vmem:[#allocation5 + $0x1374] ss:$392 sps:$4 sm:$0xff]  }
 0x251   :  { %v9823_v41 = vld [vmem:[#allocation5 + $0x137c] ss:$392 sps:$4 sm:$0xff]  }
 0x252   :  { %v7699_v60 = vrot.slane %v8926_v57, %v10363_v26  ;;  %v7706_v5 = vrot.slane %v8927_v58, %v10363_v26  ;;  %6599 = vmatpush1.bf16.msra.mxu0 %v9770_v48  ;;  %6640 = vmatpush1.bf16.msra.mxu1 %v9773_v50  ;;  %v9826_v58 = vld [vmem:[#allocation5 + $0x1684] ss:$392 sps:$4 sm:$0xff]  }
 0x253   :  { %6600 = vmatprep.subr.bf16.mxu0 %v9778_v55  ;;  %6641 = vmatprep.subr.bf16.mxu1 %v9781_v38  ;;  %v9818_v55 = vld [vmem:[#allocation5 + $0x1370] ss:$392 sps:$4 sm:$0xff]  }
 0x254   :  { %v7708_v53 = vcombine.low %v7699_v60, %v7706_v5  ;;  %v9821_v38 = vld [vmem:[#allocation5 + $0x1378] ss:$392 sps:$4 sm:$0xff]   ;;  %v9829_v60 = vld [vmem:[#allocation5 + $0x168c] ss:$392 sps:$4 sm:$0xff]  }
 0x256   :  { %v7722_v12 = vrot.slane %v7708_v53, %v10363_v26  ;;  %6601 = vmatpush1.bf16.msra.mxu0 %v9776_v8  ;;  %6642 = vmatpush1.bf16.msra.mxu1 %v9779_v51  ;;  %v9824_v53 = vld [vmem:[#allocation5 + $0x1680] ss:$392 sps:$4 sm:$0xff]  }
 0x257   :  { %6668 = vmatprep.subr.bf16.mxu0 %v9784_v39  ;;  %6709 = vmatprep.subr.bf16.mxu1 %v9787_v9 }
 0x258   :  { %v7723_v15 = vcombine.low %v7715_v56, %v7722_v12  ;;  %v9827_v56 = vld [vmem:[#allocation5 + $0x1688] ss:$392 sps:$4 sm:$0xff]   ;;  %v9832_v12 = vld [vmem:[#allocation5 + $0x124] ss:$392 sps:$4 sm:$0xff]  }
 0x259   :  { %6619 = vmatmul.mubr.bf16.vlgmr.msra.gmra.mrb[64].mxu0 %v10510_v6  ;;  %6660 = vmatmul.mubr.bf16.vlgmr.msra.gmra.mrb[64].mxu1 %v10510_v6 }
 0x25a   :  { %8099 = vst [vmem:[#allocation8 + $0x20] sm:$0xff] %v7723_v15  ;;  %6669 = vmatpush1.bf16.msra.mxu0 %v9782_v45  ;;  %6710 = vmatpush1.bf16.msra.mxu1 %v9785_v11  ;;  %v9835_v45 = vld [vmem:[#allocation5 + $0x12c] ss:$392 sps:$4 sm:$0xff]  }
 0x25b   :  { %6670 = vmatprep.subr.bf16.mxu0 %v9790_v13  ;;  %6711 = vmatprep.subr.bf16.mxu1 %v9793_v14  ;;  %v9830_v13 = vld [vmem:[#allocation5 + $0x120] ss:$392 sps:$4 sm:$0xff]   ;;  %v9838_v15 = vld [vmem:[#allocation5 + $0x434] ss:$392 sps:$4 sm:$0xff]  }
 0x25c   :  { %6700 = vmatprep.mubr.bf16.mxu0 %v10245_v0  ;;  %6741 = vmatprep.mubr.bf16.mxu1 %v10245_v0  ;;  %v9833_v14 = vld [vmem:[#allocation5 + $0x128] ss:$392 sps:$4 sm:$0xff]  }
 0x25e   :  { %6671 = vmatpush1.bf16.msra.mxu0 %v9788_v46  ;;  %6712 = vmatpush1.bf16.msra.mxu1 %v9791_v49  ;;  %v9841_v46 = vld [vmem:[#allocation5 + $0x43c] ss:$392 sps:$4 sm:$0xff]   ;;  %v9836_v49 = vld [vmem:[#allocation5 + $0x430] ss:$392 sps:$4 sm:$0xff]  }
 0x25f   :  { %6672 = vmatprep.subr.bf16.mxu0 %v9796_v52  ;;  %6713 = vmatprep.subr.bf16.mxu1 %v9799_v16  ;;  %v9839_v52 = vld [vmem:[#allocation5 + $0x438] ss:$392 sps:$4 sm:$0xff]   ;;  %v9844_v16 = vld [vmem:[#allocation5 + $0x744] ss:$392 sps:$4 sm:$0xff]  }
 0x262   :  { %6673 = vmatpush1.bf16.msra.mxu0 %v9794_v17  ;;  %6714 = vmatpush1.bf16.msra.mxu1 %v9797_v18  ;;  %v9847_v17 = vld [vmem:[#allocation5 + $0x74c] ss:$392 sps:$4 sm:$0xff]   ;;  %v9842_v18 = vld [vmem:[#allocation5 + $0x740] ss:$392 sps:$4 sm:$0xff]  }
 0x263   :  { %6674 = vmatprep.subr.bf16.mxu0 %v9802_v20  ;;  %6715 = vmatprep.subr.bf16.mxu1 %v9805_v21  ;;  %v9845_v20 = vld [vmem:[#allocation5 + $0x748] ss:$392 sps:$4 sm:$0xff]   ;;  %v9850_v21 = vld [vmem:[#allocation5 + $0xa54] ss:$392 sps:$4 sm:$0xff]  }
 0x266   :  { %6675 = vmatpush1.bf16.msra.mxu0 %v9800_v22  ;;  %6716 = vmatpush1.bf16.msra.mxu1 %v9803_v23  ;;  %v9853_v22 = vld [vmem:[#allocation5 + $0xa5c] ss:$392 sps:$4 sm:$0xff]   ;;  %v9848_v23 = vld [vmem:[#allocation5 + $0xa50] ss:$392 sps:$4 sm:$0xff]  }
 0x267   :  { %6676 = vmatprep.subr.bf16.mxu0 %v9808_v25  ;;  %6717 = vmatprep.subr.bf16.mxu1 %v9811_v27  ;;  %v9851_v25 = vld [vmem:[#allocation5 + $0xa58] ss:$392 sps:$4 sm:$0xff]   ;;  %v9856_v27 = vld [vmem:[#allocation5 + $0xd64] ss:$392 sps:$4 sm:$0xff]  }
 0x26a   :  { %6677 = vmatpush1.bf16.msra.mxu0 %v9806_v28  ;;  %6718 = vmatpush1.bf16.msra.mxu1 %v9809_v29  ;;  %v9859_v28 = vld [vmem:[#allocation5 + $0xd6c] ss:$392 sps:$4 sm:$0xff]   ;;  %v9854_v29 = vld [vmem:[#allocation5 + $0xd60] ss:$392 sps:$4 sm:$0xff]  }
 0x26b   :  { %6678 = vmatprep.subr.bf16.mxu0 %v9814_v31  ;;  %6719 = vmatprep.subr.bf16.mxu1 %v9817_v63  ;;  %v9857_v31 = vld [vmem:[#allocation5 + $0xd68] ss:$392 sps:$4 sm:$0xff]   ;;  %v9862_v63 = vld [vmem:[#allocation5 + $0x1074] ss:$392 sps:$4 sm:$0xff]  }
 0x26c   :  { %v6128_v54 = vpop.f32.mrb[40].mxu0  ;;  %v6169_v42 = vpop.f32.mrb[40].mxu1 }
 0x26d   :  { %v6129_v19 = vadd.f32 %v6128_v54, %v1027_v32  ;;  %v6170_v44 = vadd.f32 %v6169_v42, %v1035_v33  ;;  %v6130_v47 = vpop.f32.mrb[41].mxu0  ;;  %v6171_v48 = vpop.f32.mrb[41].mxu1  ;;  %v9865_v32 = vld [vmem:[#allocation5 + $0x107c] ss:$392 sps:$4 sm:$0xff]   ;;  %v1043_v33 = vrot.slane %v10576_v30, %v10378_v61  ;;  %v9871_v54 = vld [vmem:[#allocation5 + $0x138c] ss:$392 sps:$4 sm:$0xff]  }
 0x26e   :  { %v6131_v50 = vadd.f32 %v6130_v47, %v1031_v34  ;;  %v6172_v24 = vadd.f32 %v6171_v48, %v1039_v10  ;;  %v6132_v35 = vpop.f32.mrb[42].mxu0  ;;  %6679 = vmatpush1.bf16.msra.mxu0 %v9812_v36  ;;  %6720 = vmatpush1.bf16.msra.mxu1 %v9815_v37  ;;  %v6173_v43 = vpop.f32.mrb[42].mxu1  ;;  %v1051_v34 = vrot.slane %v10576_v30, %v10381_v2  ;;  %v9860_v37 = vld [vmem:[#allocation5 + $0x1070] ss:$392 sps:$4 sm:$0xff]  }
 0x26f   :  { %v6133_v57 = vpop.f32.mrb[43].mxu0  ;;  %6680 = vmatprep.subr.bf16.mxu0 %v9820_v40  ;;  %6721 = vmatprep.subr.bf16.mxu1 %v9823_v41  ;;  %v6174_v5 = vpop.f32.mrb[43].mxu1  ;;  %v1047_v10 = vrot.slane %v10576_v30, %v10384_v3  ;;  %v1055_v36 = vrot.slane %v10576_v30, %v10387_v7  ;;  %v9863_v40 = vld [vmem:[#allocation5 + $0x1078] ss:$392 sps:$4 sm:$0xff]   ;;  %v9868_v41 = vld [vmem:[#allocation5 + $0x1384] ss:$392 sps:$4 sm:$0xff]  }
 0x270   :  { %v8928_v8 = vpack.c.bf16 %v6131_v50, %v6129_v19  ;;  %v8929_v51 = vpack.c.bf16 %v6172_v24, %v6170_v44  ;;  %v9869_v43 = vld [vmem:[#allocation5 + $0x1388] ss:$392 sps:$4 sm:$0xff]  }
 0x272   :  { %v10587_v39 = vrot.slane %v8928_v8, %v10363_v26  ;;  %v10590_v9 = vrot.slane %v8929_v51, %v10363_v26  ;;  %6681 = vmatpush1.bf16.msra.mxu0 %v9818_v55  ;;  %6722 = vmatpush1.bf16.msra.mxu1 %v9821_v38  ;;  %v9866_v38 = vld [vmem:[#allocation5 + $0x1380] ss:$392 sps:$4 sm:$0xff]  }
 0x273   :  { %6682 = vmatprep.subr.bf16.mxu0 %v9826_v58  ;;  %6723 = vmatprep.subr.bf16.mxu1 %v9829_v60  ;;  %v9874_v58 = vld [vmem:[#allocation5 + $0x1694] ss:$392 sps:$4 sm:$0xff]  }
 0x274   :  { %v7756_v11 = vcombine.low %v10587_v39, %v10590_v9  ;;  %v9877_v60 = vld [vmem:[#allocation5 + $0x169c] ss:$392 sps:$4 sm:$0xff]   ;;  %v9884_v39 = vld [vmem:[#allocation5 + $0x440] ss:$392 sps:$4 sm:$0xff]  }
 0x275   :  { %v9887_v9 = vld [vmem:[#allocation5 + $0x448] ss:$392 sps:$4 sm:$0xff]  }
 0x276   :  { %6683 = vmatpush1.bf16.msra.mxu0 %v9824_v53  ;;  %6724 = vmatpush1.bf16.msra.mxu1 %v9827_v56 }
 0x277   :  { %6750 = vmatprep.subr.bf16.mxu0 %v9832_v12  ;;  %6791 = vmatprep.subr.bf16.mxu1 %v9835_v45  ;;  %v9872_v12 = vld [vmem:[#allocation5 + $0x1690] ss:$392 sps:$4 sm:$0xff]  }
 0x278   :  { %v9875_v45 = vld [vmem:[#allocation5 + $0x1698] ss:$392 sps:$4 sm:$0xff]  }
 0x279   :  { %6701 = vmatmul.mubr.bf16.vlgmr.msra.gmra.mrb[68].mxu0 %v10510_v6  ;;  %6742 = vmatmul.mubr.bf16.vlgmr.msra.gmra.mrb[68].mxu1 %v10510_v6 }
 0x27a   :  { %6751 = vmatpush1.bf16.msra.mxu0 %v9830_v13  ;;  %6792 = vmatpush1.bf16.msra.mxu1 %v9833_v14  ;;  %v9880_v13 = vld [vmem:[#allocation5 + $0x134] ss:$392 sps:$4 sm:$0xff]  }
 0x27b   :  { %6752 = vmatprep.subr.bf16.mxu0 %v9838_v15  ;;  %6793 = vmatprep.subr.bf16.mxu1 %v9841_v46  ;;  %v9883_v14 = vld [vmem:[#allocation5 + $0x13c] ss:$392 sps:$4 sm:$0xff]   ;;  %v7764_v46 = vrot.slane %v7756_v11, %v10363_v26 }
 0x27c   :  { %6782 = vmatprep.mubr.bf16.mxu0 %v10245_v0  ;;  %6823 = vmatprep.mubr.bf16.mxu1 %v10245_v0  ;;  %v9892_v11 = vld [vmem:[#allocation5 + $0x754] ss:$392 sps:$4 sm:$0xff]  }
 0x27e   :  { %6753 = vmatpush1.bf16.msra.mxu0 %v9836_v49  ;;  %6794 = vmatpush1.bf16.msra.mxu1 %v9839_v52  ;;  %v9878_v52 = vld [vmem:[#allocation5 + $0x130] ss:$392 sps:$4 sm:$0xff]  }
 0x27f   :  { %6754 = vmatprep.subr.bf16.mxu0 %v9844_v16  ;;  %6795 = vmatprep.subr.bf16.mxu1 %v9847_v17  ;;  %v9881_v16 = vld [vmem:[#allocation5 + $0x138] ss:$392 sps:$4 sm:$0xff]   ;;  %v9886_v17 = vld [vmem:[#allocation5 + $0x444] ss:$392 sps:$4 sm:$0xff]  }
 0x282   :  { %6755 = vmatpush1.bf16.msra.mxu0 %v9842_v18  ;;  %6796 = vmatpush1.bf16.msra.mxu1 %v9845_v20  ;;  %v9889_v18 = vld [vmem:[#allocation5 + $0x44c] ss:$392 sps:$4 sm:$0xff]  }
 0x283   :  { %6756 = vmatprep.subr.bf16.mxu0 %v9850_v21  ;;  %6797 = vmatprep.subr.bf16.mxu1 %v9853_v22  ;;  %v9895_v21 = vld [vmem:[#allocation5 + $0x75c] ss:$392 sps:$4 sm:$0xff]   ;;  %v9890_v22 = vld [vmem:[#allocation5 + $0x750] ss:$392 sps:$4 sm:$0xff]  }
 0x286   :  { %6757 = vmatpush1.bf16.msra.mxu0 %v9848_v23  ;;  %6798 = vmatpush1.bf16.msra.mxu1 %v9851_v25  ;;  %v9893_v23 = vld [vmem:[#allocation5 + $0x758] ss:$392 sps:$4 sm:$0xff]   ;;  %v9901_v25 = vld [vmem:[#allocation5 + $0xa6c] ss:$392 sps:$4 sm:$0xff]  }
 0x287   :  { %6758 = vmatprep.subr.bf16.mxu0 %v9856_v27  ;;  %6799 = vmatprep.subr.bf16.mxu1 %v9859_v28  ;;  %v9896_v27 = vld [vmem:[#allocation5 + $0xa60] ss:$392 sps:$4 sm:$0xff]  }
 0x288   :  { %v9899_v28 = vld [vmem:[#allocation5 + $0xa68] ss:$392 sps:$4 sm:$0xff]  }
 0x28a   :  { %6759 = vmatpush1.bf16.msra.mxu0 %v9854_v29  ;;  %6800 = vmatpush1.bf16.msra.mxu1 %v9857_v31  ;;  %v9904_v29 = vld [vmem:[#allocation5 + $0xd74] ss:$392 sps:$4 sm:$0xff]  }
 0x28b   :  { %6760 = vmatprep.subr.bf16.mxu0 %v9862_v63  ;;  %6801 = vmatprep.subr.bf16.mxu1 %v9865_v32  ;;  %v9907_v31 = vld [vmem:[#allocation5 + $0xd7c] ss:$392 sps:$4 sm:$0xff]   ;;  %v9902_v63 = vld [vmem:[#allocation5 + $0xd70] ss:$392 sps:$4 sm:$0xff]  }
 0x28c   :  { %v6210_v42 = vpop.f32.mrb[44].mxu0  ;;  %v6251_v19 = vpop.f32.mrb[44].mxu1  ;;  %v9905_v32 = vld [vmem:[#allocation5 + $0xd78] ss:$392 sps:$4 sm:$0xff]  }
 0x28d   :  { %v6211_v44 = vadd.f32 %v6210_v42, %v1043_v33  ;;  %v6252_v47 = vadd.f32 %v6251_v19, %v1051_v34  ;;  %v6212_v48 = vpop.f32.mrb[45].mxu0  ;;  %v6253_v50 = vpop.f32.mrb[45].mxu1  ;;  %v10617_v33 = vld [vmem:[#allocation7 + $0x30] sm:$0xff]  ;;  %v9910_v34 = vld [vmem:[#allocation5 + $0x1084] ss:$392 sps:$4 sm:$0xff]  }
 0x28e   :  { %v6213_v24 = vadd.f32 %v6212_v48, %v1047_v10  ;;  %v6254_v35 = vadd.f32 %v6253_v50, %v1055_v36  ;;  %v6214_v55 = vpop.f32.mrb[46].mxu0  ;;  %6761 = vmatpush1.bf16.msra.mxu0 %v9860_v37  ;;  %6802 = vmatpush1.bf16.msra.mxu1 %v9863_v40  ;;  %v6255_v30 = vpop.f32.mrb[46].mxu1  ;;  %v9913_v10 = vld [vmem:[#allocation5 + $0x108c] ss:$392 sps:$4 sm:$0xff]   ;;  %v1059_v36 = vrot.slane %v10617_v33, %v10341_v59  ;;  %v9911_v42 = vld [vmem:[#allocation5 + $0x1088] ss:$392 sps:$4 sm:$0xff]  }
 0x28f   :  { %v6215_v57 = vpop.f32.mrb[47].mxu0  ;;  %6762 = vmatprep.subr.bf16.mxu0 %v9868_v41  ;;  %6803 = vmatprep.subr.bf16.mxu1 %v9871_v54  ;;  %v6256_v5 = vpop.f32.mrb[47].mxu1  ;;  %v1067_v37 = vrot.slane %v10617_v33, %v10344_v62  ;;  %v1063_v40 = vrot.slane %v10617_v33, %v10349_v1  ;;  %v1071_v41 = vrot.slane %v10617_v33, %v10352_v4  ;;  %v9908_v54 = vld [vmem:[#allocation5 + $0x1080] ss:$392 sps:$4 sm:$0xff]   ;;  %v9916_v19 = vld [vmem:[#allocation5 + $0x1394] ss:$392 sps:$4 sm:$0xff]  }
 0x290   :  { %v8930_v8 = vpack.c.bf16 %v6213_v24, %v6211_v44  ;;  %v8931_v51 = vpack.c.bf16 %v6254_v35, %v6252_v47  ;;  %v9919_v44 = vld [vmem:[#allocation5 + $0x139c] ss:$392 sps:$4 sm:$0xff]   ;;  %v9914_v57 = vld [vmem:[#allocation5 + $0x1390] ss:$392 sps:$4 sm:$0xff]  }
 0x292   :  { %v7748_v53 = vrot.slane %v8930_v8, %v10363_v26  ;;  %v7755_v56 = vrot.slane %v8931_v51, %v10363_v26  ;;  %6763 = vmatpush1.bf16.msra.mxu0 %v9866_v38  ;;  %6804 = vmatpush1.bf16.msra.mxu1 %v9869_v43  ;;  %v9922_v8 = vld [vmem:[#allocation5 + $0x16a4] ss:$392 sps:$4 sm:$0xff]  }
 0x293   :  { %6764 = vmatprep.subr.bf16.mxu0 %v9874_v58  ;;  %6805 = vmatprep.subr.bf16.mxu1 %v9877_v60  ;;  %v9917_v58 = vld [vmem:[#allocation5 + $0x1398] ss:$392 sps:$4 sm:$0xff]   ;;  %v9925_v51 = vld [vmem:[#allocation5 + $0x16ac] ss:$392 sps:$4 sm:$0xff]  }
 0x294   :  { %v7757_v15 = vcombine.low %v7748_v53, %v7755_v56 }
 0x296   :  { %v7771_v49 = vrot.slane %v7757_v15, %v10363_v26  ;;  %6765 = vmatpush1.bf16.msra.mxu0 %v9872_v12  ;;  %6806 = vmatpush1.bf16.msra.mxu1 %v9875_v45  ;;  %v9923_v15 = vld [vmem:[#allocation5 + $0x16a8] ss:$392 sps:$4 sm:$0xff]  }
 0x297   :  { %6832 = vmatprep.subr.bf16.mxu0 %v9880_v13  ;;  %6873 = vmatprep.subr.bf16.mxu1 %v9883_v14  ;;  %v9920_v14 = vld [vmem:[#allocation5 + $0x16a0] ss:$392 sps:$4 sm:$0xff]  }
 0x298   :  { %v7772_v20 = vcombine.low %v7764_v46, %v7771_v49  ;;  %v9928_v46 = vld [vmem:[#allocation5 + $0x144] ss:$392 sps:$4 sm:$0xff]  }
 0x299   :  { %6783 = vmatmul.mubr.bf16.vlgmr.msra.gmra.mrb[72].mxu0 %v10510_v6  ;;  %6824 = vmatmul.mubr.bf16.vlgmr.msra.gmra.mrb[72].mxu1 %v10510_v6  ;;  %v9898_v6 = vld [vmem:[#allocation5 + $0xa64] ss:$392 sps:$4 sm:$0xff]  }
 0x29a   :  { %8100 = vst [vmem:[#allocation8 + $0x28] sm:$0xff] %v7772_v20  ;;  %6833 = vmatpush1.bf16.msra.mxu0 %v9878_v52  ;;  %6874 = vmatpush1.bf16.msra.mxu1 %v9881_v16  ;;  %v9931_v49 = vld [vmem:[#allocation5 + $0x14c] ss:$392 sps:$4 sm:$0xff]   ;;  %v9926_v16 = vld [vmem:[#allocation5 + $0x140] ss:$392 sps:$4 sm:$0xff]  }
 0x29b   :  { %6834 = vmatprep.subr.bf16.mxu0 %v9886_v17  ;;  %6875 = vmatprep.subr.bf16.mxu1 %v9889_v18  ;;  %v9929_v17 = vld [vmem:[#allocation5 + $0x148] ss:$392 sps:$4 sm:$0xff]   ;;  %v9934_v18 = vld [vmem:[#allocation5 + $0x454] ss:$392 sps:$4 sm:$0xff]  }
 0x29c   :  { %6864 = vmatprep.mubr.bf16.mxu0 %v10245_v0  ;;  %6905 = vmatprep.mubr.bf16.mxu1 %v10245_v0  ;;  %v9937_v20 = vld [vmem:[#allocation5 + $0x45c] ss:$392 sps:$4 sm:$0xff]  }
 0x29e   :  { %6835 = vmatpush1.bf16.msra.mxu0 %v9884_v39  ;;  %6876 = vmatpush1.bf16.msra.mxu1 %v9887_v9  ;;  %v10635_v39 = vld [vmem:[#allocation2] sm:$0x1]  ;;  %v9932_v9 = vld [vmem:[#allocation5 + $0x450] ss:$392 sps:$4 sm:$0xff]  }
 0x29f   :  { %6836 = vmatprep.subr.bf16.mxu0 %v9892_v11  ;;  %6877 = vmatprep.subr.bf16.mxu1 %v9895_v21  ;;  %v9935_v11 = vld [vmem:[#allocation5 + $0x458] ss:$392 sps:$4 sm:$0xff]   ;;  %v9940_v21 = vld [vmem:[#allocation5 + $0x764] ss:$392 sps:$4 sm:$0xff]  }
 0x2a2   :  { %6837 = vmatpush1.bf16.msra.mxu0 %v9890_v22  ;;  %6878 = vmatpush1.bf16.msra.mxu1 %v9893_v23  ;;  %v9943_v22 = vld [vmem:[#allocation5 + $0x76c] ss:$392 sps:$4 sm:$0xff]   ;;  %v9938_v23 = vld [vmem:[#allocation5 + $0x760] ss:$392 sps:$4 sm:$0xff]  }
 0x2a3   :  { %6838 = vmatprep.subr.bf16.mxu0 %v9898_v6  ;;  %6879 = vmatprep.subr.bf16.mxu1 %v9901_v25  ;;  %v9941_v6 = vld [vmem:[#allocation5 + $0x768] ss:$392 sps:$4 sm:$0xff]   ;;  %v9946_v25 = vld [vmem:[#allocation5 + $0xa74] ss:$392 sps:$4 sm:$0xff]  }
 0x2a6   :  { %6839 = vmatpush1.bf16.msra.mxu0 %v9896_v27  ;;  %6880 = vmatpush1.bf16.msra.mxu1 %v9899_v28  ;;  %v9949_v27 = vld [vmem:[#allocation5 + $0xa7c] ss:$392 sps:$4 sm:$0xff]   ;;  %v9944_v28 = vld [vmem:[#allocation5 + $0xa70] ss:$392 sps:$4 sm:$0xff]  }
 0x2a7   :  { %6840 = vmatprep.subr.bf16.mxu0 %v9904_v29  ;;  %6881 = vmatprep.subr.bf16.mxu1 %v9907_v31  ;;  %v9947_v29 = vld [vmem:[#allocation5 + $0xa78] ss:$392 sps:$4 sm:$0xff]   ;;  %v9952_v31 = vld [vmem:[#allocation5 + $0xd84] ss:$392 sps:$4 sm:$0xff]  }
 0x2aa   :  { %6841 = vmatpush1.bf16.msra.mxu0 %v9902_v63  ;;  %6882 = vmatpush1.bf16.msra.mxu1 %v9905_v32  ;;  %v9955_v63 = vld [vmem:[#allocation5 + $0xd8c] ss:$392 sps:$4 sm:$0xff]   ;;  %v9950_v32 = vld [vmem:[#allocation5 + $0xd80] ss:$392 sps:$4 sm:$0xff]  }
 0x2ab   :  { %6842 = vmatprep.subr.bf16.mxu0 %v9910_v34  ;;  %6883 = vmatprep.subr.bf16.mxu1 %v9913_v10  ;;  %v9953_v34 = vld [vmem:[#allocation5 + $0xd88] ss:$392 sps:$4 sm:$0xff]   ;;  %v9958_v10 = vld [vmem:[#allocation5 + $0x1094] ss:$392 sps:$4 sm:$0xff]  }
 0x2ac   :  { %v6292_v47 = vpop.f32.mrb[48].mxu0  ;;  %v6333_v48 = vpop.f32.mrb[48].mxu1 }
 0x2ad   :  { %v6293_v50 = vadd.f32 %v6292_v47, %v1059_v36  ;;  %v6334_v24 = vadd.f32 %v6333_v48, %v1067_v37  ;;  %v6294_v35 = vpop.f32.mrb[49].mxu0  ;;  %v6335_v55 = vpop.f32.mrb[49].mxu1  ;;  %v9961_v36 = vld [vmem:[#allocation5 + $0x109c] ss:$392 sps:$4 sm:$0xff]   ;;  %v1075_v37 = vrot.slane %v10617_v33, %v10378_v61  ;;  %v9967_v47 = vld [vmem:[#allocation5 + $0x13ac] ss:$392 sps:$4 sm:$0xff]  }
 0x2ae   :  { %v6295_v38 = vadd.f32 %v6294_v35, %v1063_v40  ;;  %v6336_v43 = vadd.f32 %v6335_v55, %v1071_v41  ;;  %v6296_v30 = vpop.f32.mrb[50].mxu0  ;;  %6843 = vmatpush1.bf16.msra.mxu0 %v9908_v54  ;;  %6884 = vmatpush1.bf16.msra.mxu1 %v9911_v42  ;;  %v6337_v60 = vpop.f32.mrb[50].mxu1  ;;  %v1083_v40 = vrot.slane %v10617_v33, %v10381_v2  ;;  %v9956_v42 = vld [vmem:[#allocation5 + $0x1090] ss:$392 sps:$4 sm:$0xff]  }
 0x2af   :  { %v6297_v5 = vpop.f32.mrb[51].mxu0  ;;  %6844 = vmatprep.subr.bf16.mxu0 %v9916_v19  ;;  %6885 = vmatprep.subr.bf16.mxu1 %v9919_v44  ;;  %v6338_v53 = vpop.f32.mrb[51].mxu1  ;;  %v1079_v41 = vrot.slane %v10617_v33, %v10384_v3  ;;  %v1087_v54 = vrot.slane %v10617_v33, %v10387_v7  ;;  %v9959_v19 = vld [vmem:[#allocation5 + $0x1098] ss:$392 sps:$4 sm:$0xff]   ;;  %v9964_v44 = vld [vmem:[#allocation5 + $0x13a4] ss:$392 sps:$4 sm:$0xff]  }
 0x2b0   :  { %v8932_v56 = vpack.c.bf16 %v6295_v38, %v6293_v50  ;;  %v8933_v12 = vpack.c.bf16 %v6336_v43, %v6334_v24  ;;  %v9965_v60 = vld [vmem:[#allocation5 + $0x13a8] ss:$392 sps:$4 sm:$0xff]  }
 0x2b2   :  { %v10628_v45 = vrot.slane %v8932_v56, %v10363_v26  ;;  %v10631_v13 = vrot.slane %v8933_v12, %v10363_v26  ;;  %6845 = vmatpush1.bf16.msra.mxu0 %v9914_v57  ;;  %6886 = vmatpush1.bf16.msra.mxu1 %v9917_v58  ;;  %v9962_v58 = vld [vmem:[#allocation5 + $0x13a0] ss:$392 sps:$4 sm:$0xff]  }
 0x2b3   :  { %6846 = vmatprep.subr.bf16.mxu0 %v9922_v8  ;;  %6887 = vmatprep.subr.bf16.mxu1 %v9925_v51  ;;  %v9970_v8 = vld [vmem:[#allocation5 + $0x16b4] ss:$392 sps:$4 sm:$0xff]  }
 0x2b4   :  { %v7805_v52 = vcombine.low %v10628_v45, %v10631_v13  ;;  %v9973_v51 = vld [vmem:[#allocation5 + $0x16bc] ss:$392 sps:$4 sm:$0xff]   ;;  %v9980_v45 = vld [vmem:[#allocation5 + $0x460] ss:$392 sps:$4 sm:$0xff]  }
 0x2b5   :  { %v9983_v13 = vld [vmem:[#allocation5 + $0x468] ss:$392 sps:$4 sm:$0xff]  }
 0x2b6   :  { %6847 = vmatpush1.bf16.msra.mxu0 %v9920_v14  ;;  %6888 = vmatpush1.bf16.msra.mxu1 %v9923_v15 }
 0x2b7   :  { %6914 = vmatprep.subr.bf16.mxu0 %v9928_v46  ;;  %6955 = vmatprep.subr.bf16.mxu1 %v9931_v49  ;;  %v9968_v46 = vld [vmem:[#allocation5 + $0x16b0] ss:$392 sps:$4 sm:$0xff]  }
 0x2b8   :  { %v9971_v49 = vld [vmem:[#allocation5 + $0x16b8] ss:$392 sps:$4 sm:$0xff]  }
 0x2b9   :  { %6865 = vmatmul.mubr.bf16.vlgmr.msra.gmra.mrb[76].mxu0 %v10635_v39  ;;  %6906 = vmatmul.mubr.bf16.vlgmr.msra.gmra.mrb[76].mxu1 %v10635_v39 }
 0x2ba   :  { %6915 = vmatpush1.bf16.msra.mxu0 %v9926_v16  ;;  %6956 = vmatpush1.bf16.msra.mxu1 %v9929_v17  ;;  %v9976_v16 = vld [vmem:[#allocation5 + $0x154] ss:$392 sps:$4 sm:$0xff]  }
 0x2bb   :  { %6916 = vmatprep.subr.bf16.mxu0 %v9934_v18  ;;  %6957 = vmatprep.subr.bf16.mxu1 %v9937_v20  ;;  %v9979_v17 = vld [vmem:[#allocation5 + $0x15c] ss:$392 sps:$4 sm:$0xff]   ;;  %v7813_v20 = vrot.slane %v7805_v52, %v10363_v26 }
 0x2bc   :  { %6946 = vmatprep.mubr.bf16.mxu0 %v10245_v0  ;;  %6987 = vmatprep.mubr.bf16.mxu1 %v10245_v0  ;;  %v9988_v52 = vld [vmem:[#allocation5 + $0x774] ss:$392 sps:$4 sm:$0xff]  }
 0x2be   :  { %6917 = vmatpush1.bf16.msra.mxu0 %v9932_v9  ;;  %6958 = vmatpush1.bf16.msra.mxu1 %v9935_v11  ;;  %v9974_v11 = vld [vmem:[#allocation5 + $0x150] ss:$392 sps:$4 sm:$0xff]  }
 0x2bf   :  { %6918 = vmatprep.subr.bf16.mxu0 %v9940_v21  ;;  %6959 = vmatprep.subr.bf16.mxu1 %v9943_v22  ;;  %v9977_v21 = vld [vmem:[#allocation5 + $0x158] ss:$392 sps:$4 sm:$0xff]   ;;  %v9982_v22 = vld [vmem:[#allocation5 + $0x464] ss:$392 sps:$4 sm:$0xff]  }
 0x2c2   :  { %6919 = vmatpush1.bf16.msra.mxu0 %v9938_v23  ;;  %6960 = vmatpush1.bf16.msra.mxu1 %v9941_v6  ;;  %v9985_v23 = vld [vmem:[#allocation5 + $0x46c] ss:$392 sps:$4 sm:$0xff]  }
 0x2c3   :  { %6920 = vmatprep.subr.bf16.mxu0 %v9946_v25  ;;  %6961 = vmatprep.subr.bf16.mxu1 %v9949_v27  ;;  %v9991_v25 = vld [vmem:[#allocation5 + $0x77c] ss:$392 sps:$4 sm:$0xff]   ;;  %v9986_v27 = vld [vmem:[#allocation5 + $0x770] ss:$392 sps:$4 sm:$0xff]  }
 0x2c6   :  { %6921 = vmatpush1.bf16.msra.mxu0 %v9944_v28  ;;  %6962 = vmatpush1.bf16.msra.mxu1 %v9947_v29  ;;  %v9989_v28 = vld [vmem:[#allocation5 + $0x778] ss:$392 sps:$4 sm:$0xff]   ;;  %v9994_v29 = vld [vmem:[#allocation5 + $0xa84] ss:$392 sps:$4 sm:$0xff]  }
 0x2c7   :  { %6922 = vmatprep.subr.bf16.mxu0 %v9952_v31  ;;  %6963 = vmatprep.subr.bf16.mxu1 %v9955_v63  ;;  %v9997_v31 = vld [vmem:[#allocation5 + $0xa8c] ss:$392 sps:$4 sm:$0xff]   ;;  %v9992_v63 = vld [vmem:[#allocation5 + $0xa80] ss:$392 sps:$4 sm:$0xff]  }
 0x2ca   :  { %6923 = vmatpush1.bf16.msra.mxu0 %v9950_v32  ;;  %6964 = vmatpush1.bf16.msra.mxu1 %v9953_v34  ;;  %v9995_v32 = vld [vmem:[#allocation5 + $0xa88] ss:$392 sps:$4 sm:$0xff]   ;;  %v10000_v34 = vld [vmem:[#allocation5 + $0xd94] ss:$392 sps:$4 sm:$0xff]  }
 0x2cb   :  { %6924 = vmatprep.subr.bf16.mxu0 %v9958_v10  ;;  %6965 = vmatprep.subr.bf16.mxu1 %v9961_v36  ;;  %v10003_v10 = vld [vmem:[#allocation5 + $0xd9c] ss:$392 sps:$4 sm:$0xff]   ;;  %v9998_v36 = vld [vmem:[#allocation5 + $0xd90] ss:$392 sps:$4 sm:$0xff]  }
 0x2cc   :  { %v6374_v48 = vpop.f32.mrb[52].mxu0  ;;  %v6415_v50 = vpop.f32.mrb[52].mxu1 }
 0x2cd   :  { %v6375_v24 = vadd.f32 %v6374_v48, %v1075_v37  ;;  %v6416_v35 = vadd.f32 %v6415_v50, %v1083_v40  ;;  %v6376_v55 = vpop.f32.mrb[53].mxu0  ;;  %v6417_v38 = vpop.f32.mrb[53].mxu1  ;;  %v10001_v37 = vld [vmem:[#allocation5 + $0xd98] ss:$392 sps:$4 sm:$0xff]   ;;  %v10007_v50 = vld [vmem:[#allocation5 + $0x10a8] ss:$392 sps:$4 sm:$0xff]  }
 0x2ce   :  { %v6377_v43 = vadd.f32 %v6376_v55, %v1079_v41  ;;  %v6418_v30 = vadd.f32 %v6417_v38, %v1087_v54  ;;  %v6378_v57 = vpop.f32.mrb[54].mxu0  ;;  %6925 = vmatpush1.bf16.msra.mxu0 %v9956_v42  ;;  %6966 = vmatpush1.bf16.msra.mxu1 %v9959_v19  ;;  %v6419_v33 = vpop.f32.mrb[54].mxu1  ;;  %v10660_v40 = vld [vmem:[#allocation7 + $0x38] sm:$0xff]  ;;  %v10006_v41 = vld [vmem:[#allocation5 + $0x10a4] ss:$392 sps:$4 sm:$0xff]  }
 0x2cf   :  { %v6379_v5 = vpop.f32.mrb[55].mxu0  ;;  %6926 = vmatprep.subr.bf16.mxu0 %v9964_v44  ;;  %6967 = vmatprep.subr.bf16.mxu1 %v9967_v47  ;;  %v6420_v53 = vpop.f32.mrb[55].mxu1  ;;  %v10009_v54 = vld [vmem:[#allocation5 + $0x10ac] ss:$392 sps:$4 sm:$0xff]   ;;  %v1091_v42 = vrot.slane %v10660_v40, %v10341_v59  ;;  %v1099_v19 = vrot.slane %v10660_v40, %v10344_v62  ;;  %v1095_v44 = vrot.slane %v10660_v40, %v10349_v1  ;;  %v10004_v48 = vld [vmem:[#allocation5 + $0x10a0] ss:$392 sps:$4 sm:$0xff]  }
 0x2d0   :  { %v8934_v56 = vpack.c.bf16 %v6377_v43, %v6375_v24  ;;  %v8935_v12 = vpack.c.bf16 %v6418_v30, %v6416_v35  ;;  %v1103_v47 = vrot.slane %v10660_v40, %v10352_v4  ;;  %v10012_v24 = vld [vmem:[#allocation5 + $0x13b4] ss:$392 sps:$4 sm:$0xff]  }
 0x2d1   :  { %v10015_v35 = vld [vmem:[#allocation5 + $0x13bc] ss:$392 sps:$4 sm:$0xff]  }
 0x2d2   :  { %v7797_v14 = vrot.slane %v8934_v56, %v10363_v26  ;;  %v7804_v15 = vrot.slane %v8935_v12, %v10363_v26  ;;  %6927 = vmatpush1.bf16.msra.mxu0 %v9962_v58  ;;  %6968 = vmatpush1.bf16.msra.mxu1 %v9965_v60  ;;  %v10018_v12 = vld [vmem:[#allocation5 + $0x16c4] ss:$392 sps:$4 sm:$0xff]  }
 0x2d3   :  { %6928 = vmatprep.subr.bf16.mxu0 %v9970_v8  ;;  %6969 = vmatprep.subr.bf16.mxu1 %v9973_v51  ;;  %v10010_v8 = vld [vmem:[#allocation5 + $0x13b0] ss:$392 sps:$4 sm:$0xff]  }
 0x2d4   :  { %v7806_v18 = vcombine.low %v7797_v14, %v7804_v15  ;;  %v10013_v51 = vld [vmem:[#allocation5 + $0x13b8] ss:$392 sps:$4 sm:$0xff]   ;;  %v10021_v14 = vld [vmem:[#allocation5 + $0x16cc] ss:$392 sps:$4 sm:$0xff]  }
 0x2d6   :  { %v7820_v9 = vrot.slane %v7806_v18, %v10363_v26  ;;  %6929 = vmatpush1.bf16.msra.mxu0 %v9968_v46  ;;  %6970 = vmatpush1.bf16.msra.mxu1 %v9971_v49  ;;  %v10016_v18 = vld [vmem:[#allocation5 + $0x16c0] ss:$392 sps:$4 sm:$0xff]  }
 0x2d7   :  { %6996 = vmatprep.subr.bf16.mxu0 %v9976_v16  ;;  %7037 = vmatprep.subr.bf16.mxu1 %v9979_v17 }
 0x2d8   :  { %v7821_v6 = vcombine.low %v7813_v20, %v7820_v9  ;;  %v10019_v20 = vld [vmem:[#allocation5 + $0x16c8] ss:$392 sps:$4 sm:$0xff]   ;;  %v10024_v9 = vld [vmem:[#allocation5 + $0x164] ss:$392 sps:$4 sm:$0xff]  }
 0x2d9   :  { %6947 = vmatmul.mubr.bf16.vlgmr.msra.gmra.mrb[80].mxu0 %v10635_v39  ;;  %6988 = vmatmul.mubr.bf16.vlgmr.msra.gmra.mrb[80].mxu1 %v10635_v39 }
 0x2da   :  { %8101 = vst [vmem:[#allocation8 + $0x30] sm:$0xff] %v7821_v6  ;;  %6997 = vmatpush1.bf16.msra.mxu0 %v9974_v11  ;;  %7038 = vmatpush1.bf16.msra.mxu1 %v9977_v21  ;;  %v10027_v11 = vld [vmem:[#allocation5 + $0x16c] ss:$392 sps:$4 sm:$0xff]  }
 0x2db   :  { %6998 = vmatprep.subr.bf16.mxu0 %v9982_v22  ;;  %7039 = vmatprep.subr.bf16.mxu1 %v9985_v23  ;;  %v10022_v22 = vld [vmem:[#allocation5 + $0x160] ss:$392 sps:$4 sm:$0xff]   ;;  %v10030_v6 = vld [vmem:[#allocation5 + $0x474] ss:$392 sps:$4 sm:$0xff]  }
 0x2dc   :  { %7028 = vmatprep.mubr.bf16.mxu0 %v10245_v0  ;;  %7069 = vmatprep.mubr.bf16.mxu1 %v10245_v0  ;;  %v10025_v23 = vld [vmem:[#allocation5 + $0x168] ss:$392 sps:$4 sm:$0xff]  }
 0x2de   :  { %6999 = vmatpush1.bf16.msra.mxu0 %v9980_v45  ;;  %7040 = vmatpush1.bf16.msra.mxu1 %v9983_v13  ;;  %v10033_v45 = vld [vmem:[#allocation5 + $0x47c] ss:$392 sps:$4 sm:$0xff]   ;;  %v10028_v13 = vld [vmem:[#allocation5 + $0x470] ss:$392 sps:$4 sm:$0xff]  }
 0x2df   :  { %7000 = vmatprep.subr.bf16.mxu0 %v9988_v52  ;;  %7041 = vmatprep.subr.bf16.mxu1 %v9991_v25  ;;  %v10031_v52 = vld [vmem:[#allocation5 + $0x478] ss:$392 sps:$4 sm:$0xff]   ;;  %v10036_v25 = vld [vmem:[#allocation5 + $0x784] ss:$392 sps:$4 sm:$0xff]  }
 0x2e2   :  { %7001 = vmatpush1.bf16.msra.mxu0 %v9986_v27  ;;  %7042 = vmatpush1.bf16.msra.mxu1 %v9989_v28  ;;  %v10039_v27 = vld [vmem:[#allocation5 + $0x78c] ss:$392 sps:$4 sm:$0xff]   ;;  %v10034_v28 = vld [vmem:[#allocation5 + $0x780] ss:$392 sps:$4 sm:$0xff]  }
 0x2e3   :  { %7002 = vmatprep.subr.bf16.mxu0 %v9994_v29  ;;  %7043 = vmatprep.subr.bf16.mxu1 %v9997_v31  ;;  %v10037_v29 = vld [vmem:[#allocation5 + $0x788] ss:$392 sps:$4 sm:$0xff]   ;;  %v10042_v31 = vld [vmem:[#allocation5 + $0xa94] ss:$392 sps:$4 sm:$0xff]  }
 0x2e6   :  { %7003 = vmatpush1.bf16.msra.mxu0 %v9992_v63  ;;  %7044 = vmatpush1.bf16.msra.mxu1 %v9995_v32  ;;  %v10045_v63 = vld [vmem:[#allocation5 + $0xa9c] ss:$392 sps:$4 sm:$0xff]   ;;  %v10040_v32 = vld [vmem:[#allocation5 + $0xa90] ss:$392 sps:$4 sm:$0xff]  }
 0x2e7   :  { %7004 = vmatprep.subr.bf16.mxu0 %v10000_v34  ;;  %7045 = vmatprep.subr.bf16.mxu1 %v10003_v10  ;;  %v10043_v34 = vld [vmem:[#allocation5 + $0xa98] ss:$392 sps:$4 sm:$0xff]   ;;  %v10048_v10 = vld [vmem:[#allocation5 + $0xda4] ss:$392 sps:$4 sm:$0xff]  }
 0x2ea   :  { %7005 = vmatpush1.bf16.msra.mxu0 %v9998_v36  ;;  %7046 = vmatpush1.bf16.msra.mxu1 %v10001_v37  ;;  %v10051_v36 = vld [vmem:[#allocation5 + $0xdac] ss:$392 sps:$4 sm:$0xff]   ;;  %v10046_v37 = vld [vmem:[#allocation5 + $0xda0] ss:$392 sps:$4 sm:$0xff]  }
 0x2eb   :  { %7006 = vmatprep.subr.bf16.mxu0 %v10006_v41  ;;  %7047 = vmatprep.subr.bf16.mxu1 %v10009_v54  ;;  %v10049_v41 = vld [vmem:[#allocation5 + $0xda8] ss:$392 sps:$4 sm:$0xff]   ;;  %v10054_v54 = vld [vmem:[#allocation5 + $0x10b4] ss:$392 sps:$4 sm:$0xff]  }
 0x2ec   :  { %v6456_v55 = vpop.f32.mrb[56].mxu0  ;;  %v6497_v38 = vpop.f32.mrb[56].mxu1 }
 0x2ed   :  { %v6457_v43 = vadd.f32 %v6456_v55, %v1091_v42  ;;  %v6498_v30 = vadd.f32 %v6497_v38, %v1099_v19  ;;  %v6458_v57 = vpop.f32.mrb[57].mxu0  ;;  %v6499_v58 = vpop.f32.mrb[57].mxu1  ;;  %v10057_v42 = vld [vmem:[#allocation5 + $0x10bc] ss:$392 sps:$4 sm:$0xff]   ;;  %v1107_v19 = vrot.slane %v10660_v40, %v10378_v61  ;;  %v10063_v55 = vld [vmem:[#allocation5 + $0x13cc] ss:$392 sps:$4 sm:$0xff]  }
 0x2ee   :  { %v6459_v60 = vadd.f32 %v6458_v57, %v1095_v44  ;;  %v6500_v33 = vadd.f32 %v6499_v58, %v1103_v47  ;;  %v6460_v5 = vpop.f32.mrb[58].mxu0  ;;  %7007 = vmatpush1.bf16.msra.mxu0 %v10004_v48  ;;  %7048 = vmatpush1.bf16.msra.mxu1 %v10007_v50  ;;  %v6501_v53 = vpop.f32.mrb[58].mxu1  ;;  %v1115_v44 = vrot.slane %v10660_v40, %v10381_v2  ;;  %v10052_v50 = vld [vmem:[#allocation5 + $0x10b0] ss:$392 sps:$4 sm:$0xff]  }
 0x2ef   :  { %v6461_v56 = vpop.f32.mrb[59].mxu0  ;;  %7008 = vmatprep.subr.bf16.mxu0 %v10012_v24  ;;  %7049 = vmatprep.subr.bf16.mxu1 %v10015_v35  ;;  %v6502_v15 = vpop.f32.mrb[59].mxu1  ;;  %v1111_v47 = vrot.slane %v10660_v40, %v10384_v3  ;;  %v1119_v48 = vrot.slane %v10660_v40, %v10387_v7  ;;  %v10055_v24 = vld [vmem:[#allocation5 + $0x10b8] ss:$392 sps:$4 sm:$0xff]   ;;  %v10060_v35 = vld [vmem:[#allocation5 + $0x13c4] ss:$392 sps:$4 sm:$0xff]  }
 0x2f0   :  { %v8936_v46 = vpack.c.bf16 %v6459_v60, %v6457_v43  ;;  %v8937_v49 = vpack.c.bf16 %v6500_v33, %v6498_v30  ;;  %v10061_v53 = vld [vmem:[#allocation5 + $0x13c8] ss:$392 sps:$4 sm:$0xff]  }
 0x2f2   :  { %v10671_v16 = vrot.slane %v8936_v46, %v10363_v26  ;;  %v10674_v17 = vrot.slane %v8937_v49, %v10363_v26  ;;  %7009 = vmatpush1.bf16.msra.mxu0 %v10010_v8  ;;  %7050 = vmatpush1.bf16.msra.mxu1 %v10013_v51  ;;  %v10058_v51 = vld [vmem:[#allocation5 + $0x13c0] ss:$392 sps:$4 sm:$0xff]  }
 0x2f3   :  { %7010 = vmatprep.subr.bf16.mxu0 %v10018_v12  ;;  %7051 = vmatprep.subr.bf16.mxu1 %v10021_v14  ;;  %v10066_v12 = vld [vmem:[#allocation5 + $0x16d4] ss:$392 sps:$4 sm:$0xff]  }
 0x2f4   :  { %v7854_v21 = vcombine.low %v10671_v16, %v10674_v17  ;;  %v10069_v14 = vld [vmem:[#allocation5 + $0x16dc] ss:$392 sps:$4 sm:$0xff]   ;;  %v10076_v16 = vld [vmem:[#allocation5 + $0x480] ss:$392 sps:$4 sm:$0xff]  }
 0x2f5   :  { %v10079_v17 = vld [vmem:[#allocation5 + $0x488] ss:$392 sps:$4 sm:$0xff]  }
 0x2f6   :  { %7011 = vmatpush1.bf16.msra.mxu0 %v10016_v18  ;;  %7052 = vmatpush1.bf16.msra.mxu1 %v10019_v20 }
 0x2f7   :  { %7078 = vmatprep.subr.bf16.mxu0 %v10024_v9  ;;  %7119 = vmatprep.subr.bf16.mxu1 %v10027_v11  ;;  %v10064_v9 = vld [vmem:[#allocation5 + $0x16d0] ss:$392 sps:$4 sm:$0xff]  }
 0x2f8   :  { %v10067_v11 = vld [vmem:[#allocation5 + $0x16d8] ss:$392 sps:$4 sm:$0xff]  }
 0x2f9   :  { %7029 = vmatmul.mubr.bf16.vlgmr.msra.gmra.mrb[84].mxu0 %v10635_v39  ;;  %7070 = vmatmul.mubr.bf16.vlgmr.msra.gmra.mrb[84].mxu1 %v10635_v39 }
 0x2fa   :  { %7079 = vmatpush1.bf16.msra.mxu0 %v10022_v22  ;;  %7120 = vmatpush1.bf16.msra.mxu1 %v10025_v23  ;;  %v10072_v22 = vld [vmem:[#allocation5 + $0x174] ss:$392 sps:$4 sm:$0xff]  }
 0x2fb   :  { %7080 = vmatprep.subr.bf16.mxu0 %v10030_v6  ;;  %7121 = vmatprep.subr.bf16.mxu1 %v10033_v45  ;;  %v10075_v23 = vld [vmem:[#allocation5 + $0x17c] ss:$392 sps:$4 sm:$0xff]   ;;  %v7862_v45 = vrot.slane %v7854_v21, %v10363_v26 }
 0x2fc   :  { %7110 = vmatprep.mubr.bf16.mxu0 %v10245_v0  ;;  %7151 = vmatprep.mubr.bf16.mxu1 %v10245_v0  ;;  %v10084_v21 = vld [vmem:[#allocation5 + $0x794] ss:$392 sps:$4 sm:$0xff]  }
 0x2fe   :  { %7081 = vmatpush1.bf16.msra.mxu0 %v10028_v13  ;;  %7122 = vmatpush1.bf16.msra.mxu1 %v10031_v52  ;;  %v10070_v52 = vld [vmem:[#allocation5 + $0x170] ss:$392 sps:$4 sm:$0xff]  }
 0x2ff   :  { %7082 = vmatprep.subr.bf16.mxu0 %v10036_v25  ;;  %7123 = vmatprep.subr.bf16.mxu1 %v10039_v27  ;;  %v10073_v25 = vld [vmem:[#allocation5 + $0x178] ss:$392 sps:$4 sm:$0xff]   ;;  %v10078_v27 = vld [vmem:[#allocation5 + $0x484] ss:$392 sps:$4 sm:$0xff]  }
 0x302   :  { %7083 = vmatpush1.bf16.msra.mxu0 %v10034_v28  ;;  %7124 = vmatpush1.bf16.msra.mxu1 %v10037_v29  ;;  %v10081_v28 = vld [vmem:[#allocation5 + $0x48c] ss:$392 sps:$4 sm:$0xff]  }
 0x303   :  { %7084 = vmatprep.subr.bf16.mxu0 %v10042_v31  ;;  %7125 = vmatprep.subr.bf16.mxu1 %v10045_v63  ;;  %v10087_v31 = vld [vmem:[#allocation5 + $0x79c] ss:$392 sps:$4 sm:$0xff]   ;;  %v10082_v63 = vld [vmem:[#allocation5 + $0x790] ss:$392 sps:$4 sm:$0xff]  }
 0x306   :  { %7085 = vmatpush1.bf16.msra.mxu0 %v10040_v32  ;;  %7126 = vmatpush1.bf16.msra.mxu1 %v10043_v34  ;;  %v10085_v32 = vld [vmem:[#allocation5 + $0x798] ss:$392 sps:$4 sm:$0xff]   ;;  %v10090_v34 = vld [vmem:[#allocation5 + $0xaa4] ss:$392 sps:$4 sm:$0xff]  }
 0x307   :  { %7086 = vmatprep.subr.bf16.mxu0 %v10048_v10  ;;  %7127 = vmatprep.subr.bf16.mxu1 %v10051_v36  ;;  %v10093_v10 = vld [vmem:[#allocation5 + $0xaac] ss:$392 sps:$4 sm:$0xff]   ;;  %v10088_v36 = vld [vmem:[#allocation5 + $0xaa0] ss:$392 sps:$4 sm:$0xff]  }
 0x30a   :  { %7087 = vmatpush1.bf16.msra.mxu0 %v10046_v37  ;;  %7128 = vmatpush1.bf16.msra.mxu1 %v10049_v41  ;;  %v10091_v37 = vld [vmem:[#allocation5 + $0xaa8] ss:$392 sps:$4 sm:$0xff]   ;;  %v10096_v41 = vld [vmem:[#allocation5 + $0xdb4] ss:$392 sps:$4 sm:$0xff]  }
 0x30b   :  { %7088 = vmatprep.subr.bf16.mxu0 %v10054_v54  ;;  %7129 = vmatprep.subr.bf16.mxu1 %v10057_v42  ;;  %v10099_v54 = vld [vmem:[#allocation5 + $0xdbc] ss:$392 sps:$4 sm:$0xff]   ;;  %v10094_v42 = vld [vmem:[#allocation5 + $0xdb0] ss:$392 sps:$4 sm:$0xff]  }
 0x30c   :  { %v6538_v38 = vpop.f32.mrb[60].mxu0  ;;  %v6579_v43 = vpop.f32.mrb[60].mxu1 }
 0x30d   :  { %v6539_v30 = vadd.f32 %v6538_v38, %v1107_v19  ;;  %v6580_v57 = vadd.f32 %v6579_v43, %v1115_v44  ;;  %v6540_v58 = vpop.f32.mrb[61].mxu0  ;;  %v6581_v60 = vpop.f32.mrb[61].mxu1  ;;  %v10097_v19 = vld [vmem:[#allocation5 + $0xdb8] ss:$392 sps:$4 sm:$0xff]   ;;  %v10103_v43 = vld [vmem:[#allocation5 + $0x10c8] ss:$392 sps:$4 sm:$0xff]  }
 0x30e   :  { %v6541_v33 = vadd.f32 %v6540_v58, %v1111_v47  ;;  %v6582_v5 = vadd.f32 %v6581_v60, %v1119_v48  ;;  %v6542_v8 = vpop.f32.mrb[62].mxu0  ;;  %7089 = vmatpush1.bf16.msra.mxu0 %v10052_v50  ;;  %7130 = vmatpush1.bf16.msra.mxu1 %v10055_v24  ;;  %v6583_v40 = vpop.f32.mrb[62].mxu1  ;;  %v10701_v44 = vld [vmem:[#allocation7 + $0x40] sm:$0xff]  ;;  %v10105_v48 = vld [vmem:[#allocation5 + $0x10cc] ss:$392 sps:$4 sm:$0xff]  }
 0x30f   :  { %v6543_v56 = vpop.f32.mrb[63].mxu0  ;;  %7090 = vmatprep.subr.bf16.mxu0 %v10060_v35  ;;  %7131 = vmatprep.subr.bf16.mxu1 %v10063_v55  ;;  %v6584_v15 = vpop.f32.mrb[63].mxu1  ;;  %v10102_v47 = vld [vmem:[#allocation5 + $0x10c4] ss:$392 sps:$4 sm:$0xff]   ;;  %v1123_v50 = vrot.slane %v10701_v44, %v10341_v59  ;;  %v1131_v24 = vrot.slane %v10701_v44, %v10344_v62  ;;  %v1127_v35 = vrot.slane %v10701_v44, %v10349_v1  ;;  %v10100_v38 = vld [vmem:[#allocation5 + $0x10c0] ss:$392 sps:$4 sm:$0xff]  }
 0x310   :  { %v8938_v46 = vpack.c.bf16 %v6541_v33, %v6539_v30  ;;  %v8939_v49 = vpack.c.bf16 %v6582_v5, %v6580_v57  ;;  %v1135_v55 = vrot.slane %v10701_v44, %v10352_v4  ;;  %v10108_v30 = vld [vmem:[#allocation5 + $0x13d4] ss:$392 sps:$4 sm:$0xff]  }
 0x311   :  { %v10111_v57 = vld [vmem:[#allocation5 + $0x13dc] ss:$392 sps:$4 sm:$0xff]  }
 0x312   :  { %v7846_v18 = vrot.slane %v8938_v46, %v10363_v26  ;;  %v7853_v20 = vrot.slane %v8939_v49, %v10363_v26  ;;  %7091 = vmatpush1.bf16.msra.mxu0 %v10058_v51  ;;  %7132 = vmatpush1.bf16.msra.mxu1 %v10061_v53  ;;  %v10114_v49 = vld [vmem:[#allocation5 + $0x16e4] ss:$392 sps:$4 sm:$0xff]  }
 0x313   :  { %7092 = vmatprep.subr.bf16.mxu0 %v10066_v12  ;;  %7133 = vmatprep.subr.bf16.mxu1 %v10069_v14  ;;  %v10106_v12 = vld [vmem:[#allocation5 + $0x13d0] ss:$392 sps:$4 sm:$0xff]  }
 0x314   :  { %v7855_v6 = vcombine.low %v7846_v18, %v7853_v20  ;;  %v10109_v14 = vld [vmem:[#allocation5 + $0x13d8] ss:$392 sps:$4 sm:$0xff]   ;;  %v10117_v18 = vld [vmem:[#allocation5 + $0x16ec] ss:$392 sps:$4 sm:$0xff]  }
 0x316   :  { %v7869_v13 = vrot.slane %v7855_v6, %v10363_v26  ;;  %7093 = vmatpush1.bf16.msra.mxu0 %v10064_v9  ;;  %7134 = vmatpush1.bf16.msra.mxu1 %v10067_v11  ;;  %v10112_v6 = vld [vmem:[#allocation5 + $0x16e0] ss:$392 sps:$4 sm:$0xff]  }
 0x317   :  { %7160 = vmatprep.subr.bf16.mxu0 %v10072_v22  ;;  %7201 = vmatprep.subr.bf16.mxu1 %v10075_v23 }
 0x318   :  { %v7870_v29 = vcombine.low %v7862_v45, %v7869_v13  ;;  %v10115_v45 = vld [vmem:[#allocation5 + $0x16e8] ss:$392 sps:$4 sm:$0xff]   ;;  %v10120_v13 = vld [vmem:[#allocation5 + $0x184] ss:$392 sps:$4 sm:$0xff]  }
 0x319   :  { %7111 = vmatmul.mubr.bf16.vlgmr.msra.gmra.mrb[88].mxu0 %v10635_v39  ;;  %7152 = vmatmul.mubr.bf16.vlgmr.msra.gmra.mrb[88].mxu1 %v10635_v39 }
 0x31a   :  { %8102 = vst [vmem:[#allocation8 + $0x38] sm:$0xff] %v7870_v29  ;;  %7161 = vmatpush1.bf16.msra.mxu0 %v10070_v52  ;;  %7202 = vmatpush1.bf16.msra.mxu1 %v10073_v25  ;;  %v10118_v25 = vld [vmem:[#allocation5 + $0x180] ss:$392 sps:$4 sm:$0xff]   ;;  %v10126_v29 = vld [vmem:[#allocation5 + $0x7a4] ss:$392 sps:$4 sm:$0xff]  }
 0x31b   :  { %7162 = vmatprep.subr.bf16.mxu0 %v10078_v27  ;;  %7203 = vmatprep.subr.bf16.mxu1 %v10081_v28  ;;  %v10123_v27 = vld [vmem:[#allocation5 + $0x494] ss:$392 sps:$4 sm:$0xff]   ;;  %v10121_v28 = vld [vmem:[#allocation5 + $0x490] ss:$392 sps:$4 sm:$0xff]  }
 0x31c   :  { %7192 = vmatprep.mubr.bf16.mxu0 %v10245_v0  ;;  %7233 = vmatprep.mubr.bf16.mxu1 %v10245_v0 }
 0x31e   :  { %7163 = vmatpush1.bf16.msra.mxu0 %v10076_v16  ;;  %7204 = vmatpush1.bf16.msra.mxu1 %v10079_v17  ;;  %v10124_v16 = vld [vmem:[#allocation5 + $0x7a0] ss:$392 sps:$4 sm:$0xff]   ;;  %v10129_v17 = vld [vmem:[#allocation5 + $0xab4] ss:$392 sps:$4 sm:$0xff]  }
 0x31f   :  { %7164 = vmatprep.subr.bf16.mxu0 %v10084_v21  ;;  %7205 = vmatprep.subr.bf16.mxu1 %v10087_v31  ;;  %v10127_v21 = vld [vmem:[#allocation5 + $0xab0] ss:$392 sps:$4 sm:$0xff]   ;;  %v10132_v31 = vld [vmem:[#allocation5 + $0xdc4] ss:$392 sps:$4 sm:$0xff]  }
 0x322   :  { %7165 = vmatpush1.bf16.msra.mxu0 %v10082_v63  ;;  %7206 = vmatpush1.bf16.msra.mxu1 %v10085_v32  ;;  %v10130_v63 = vld [vmem:[#allocation5 + $0xdc0] ss:$392 sps:$4 sm:$0xff]   ;;  %v10135_v32 = vld [vmem:[#allocation5 + $0x10d4] ss:$392 sps:$4 sm:$0xff]  }
 0x323   :  { %7166 = vmatprep.subr.bf16.mxu0 %v10090_v34  ;;  %7207 = vmatprep.subr.bf16.mxu1 %v10093_v10  ;;  %v1139_v34 = vrot.slane %v10701_v44, %v10378_v61  ;;  %v1143_v10 = vrot.slane %v10701_v44, %v10384_v3 }
 0x326   :  { %7167 = vmatpush1.bf16.msra.mxu0 %v10088_v36  ;;  %7208 = vmatpush1.bf16.msra.mxu1 %v10091_v37  ;;  %v1151_v36 = vrot.slane %v10701_v44, %v10387_v7  ;;  %v10133_v37 = vld [vmem:[#allocation5 + $0x10d0] ss:$392 sps:$4 sm:$0xff]  }
 0x327   :  { %7168 = vmatprep.subr.bf16.mxu0 %v10096_v41  ;;  %7209 = vmatprep.subr.bf16.mxu1 %v10099_v54  ;;  %v10138_v41 = vld [vmem:[#allocation5 + $0x13e4] ss:$392 sps:$4 sm:$0xff]  }
 0x32a   :  { %7169 = vmatpush1.bf16.msra.mxu0 %v10094_v42  ;;  %7210 = vmatpush1.bf16.msra.mxu1 %v10097_v19 }
 0x32b   :  { %7170 = vmatprep.subr.bf16.mxu0 %v10102_v47  ;;  %7211 = vmatprep.subr.bf16.mxu1 %v10105_v48 }
 0x32c   :  { %v6620_v58 = vpop.f32.mrb[64].mxu0  ;;  %v6661_v60 = vpop.f32.mrb[64].mxu1 }
 0x32d   :  { %v6621_v33 = vadd.f32 %v6620_v58, %v1123_v50  ;;  %v6662_v5 = vadd.f32 %v6661_v60, %v1131_v24  ;;  %v6622_v8 = vpop.f32.mrb[65].mxu0  ;;  %v6663_v51 = vpop.f32.mrb[65].mxu1 }
 0x32e   :  { %v6623_v53 = vadd.f32 %v6622_v8, %v1127_v35  ;;  %v6664_v40 = vadd.f32 %v6663_v51, %v1135_v55  ;;  %v6624_v56 = vpop.f32.mrb[66].mxu0  ;;  %7171 = vmatpush1.bf16.msra.mxu0 %v10100_v38  ;;  %7212 = vmatpush1.bf16.msra.mxu1 %v10103_v43  ;;  %v6665_v15 = vpop.f32.mrb[66].mxu1  ;;  %v10136_v38 = vld [vmem:[#allocation5 + $0x13e0] ss:$392 sps:$4 sm:$0xff]   ;;  %v10139_v8 = vld [vmem:[#allocation5 + $0x16f0] ss:$392 sps:$4 sm:$0xff]  }
 0x32f   :  { %v6625_v46 = vpop.f32.mrb[67].mxu0  ;;  %7172 = vmatprep.subr.bf16.mxu0 %v10108_v30  ;;  %7213 = vmatprep.subr.bf16.mxu1 %v10111_v57  ;;  %v6666_v20 = vpop.f32.mrb[67].mxu1  ;;  %v10141_v57 = vld [vmem:[#allocation5 + $0x16f4] ss:$392 sps:$4 sm:$0xff]  }
 0x330   :  { %v8940_v9 = vpack.c.bf16 %v6623_v53, %v6621_v33  ;;  %v8941_v11 = vpack.c.bf16 %v6664_v40, %v6662_v5 }
 0x332   :  { %v10712_v22 = vrot.slane %v8940_v9, %v10363_v26  ;;  %v10715_v23 = vrot.slane %v8941_v11, %v10363_v26  ;;  %7173 = vmatpush1.bf16.msra.mxu0 %v10106_v12  ;;  %7214 = vmatpush1.bf16.msra.mxu1 %v10109_v14  ;;  %v847_v12 = vld [vmem:[#allocation7 + $0x48] sm:$0xff] }
 0x333   :  { %7174 = vmatprep.subr.bf16.mxu0 %v10114_v49  ;;  %7215 = vmatprep.subr.bf16.mxu1 %v10117_v18  ;;  %v1155_v14 = vrot.slane %v847_v12, %v10341_v59  ;;  %v1163_v15 = vrot.slane %v847_v12, %v10344_v62  ;;  %v1159_v46 = vrot.slane %v847_v12, %v10349_v1 }
 0x334   :  { %v7903_v52 = vcombine.low %v10712_v22, %v10715_v23  ;;  %v1167_v49 = vrot.slane %v847_v12, %v10352_v4 }
 0x336   :  { %7175 = vmatpush1.bf16.msra.mxu0 %v10112_v6  ;;  %7216 = vmatpush1.bf16.msra.mxu1 %v10115_v45  ;;  %v7911_v53 = vrot.slane %v7903_v52, %v10363_v26 }
 0x337   :  { %7242 = vmatprep.subr.bf16.mxu0 %v10120_v13 }
 0x339   :  { %7193 = vmatmul.mubr.bf16.vlgmr.msra.gmra.mrb[92].mxu0 %v10635_v39  ;;  %7234 = vmatmul.mubr.bf16.vlgmr.msra.gmra.mrb[92].mxu1 %v10635_v39 }
 0x33a   :  { %7243 = vmatpush1.bf16.msra.mxu0 %v10118_v25  ;;  %7274 = vmatprep.mubr.bf16.mxu0 %v10245_v0  ;;  %v1147_v0 = vrot.slane %v10701_v44, %v10381_v2 }
 0x33b   :  { %7244 = vmatprep.subr.bf16.mxu0 %v10123_v27 }
 0x33e   :  { %7245 = vmatpush1.bf16.msra.mxu0 %v10121_v28 }
 0x33f   :  { %7246 = vmatprep.subr.bf16.mxu0 %v10126_v29 }
 0x342   :  { %7247 = vmatpush1.bf16.msra.mxu0 %v10124_v16 }
 0x343   :  { %7248 = vmatprep.subr.bf16.mxu0 %v10129_v17 }
 0x346   :  { %7249 = vmatpush1.bf16.msra.mxu0 %v10127_v21  ;;  %v1171_v21 = vrot.slane %v847_v12, %v10378_v61 }
 0x347   :  { %7250 = vmatprep.subr.bf16.mxu0 %v10132_v31  ;;  %v1179_v31 = vrot.slane %v847_v12, %v10381_v2 }
 0x34a   :  { %7251 = vmatpush1.bf16.msra.mxu0 %v10130_v63  ;;  %v1175_v63 = vrot.slane %v847_v12, %v10384_v3 }
 0x34b   :  { %7252 = vmatprep.subr.bf16.mxu0 %v10135_v32  ;;  %v1183_v32 = vrot.slane %v847_v12, %v10387_v7 }
 0x34c   :  { %v6702_v54 = vpop.f32.mrb[68].mxu0  ;;  %v6743_v42 = vpop.f32.mrb[68].mxu1 }
 0x34d   :  { %v6703_v19 = vadd.f32 %v6702_v54, %v1139_v34  ;;  %v6744_v47 = vadd.f32 %v6743_v42, %v1147_v0  ;;  %v6704_v48 = vpop.f32.mrb[69].mxu0  ;;  %v6745_v50 = vpop.f32.mrb[69].mxu1 }
 0x34e   :  { %v6705_v24 = vadd.f32 %v6704_v48, %v1143_v10  ;;  %v6746_v35 = vadd.f32 %v6745_v50, %v1151_v36  ;;  %v6706_v55 = vpop.f32.mrb[70].mxu0  ;;  %7253 = vmatpush1.bf16.msra.mxu0 %v10133_v37  ;;  %v6747_v43 = vpop.f32.mrb[70].mxu1 }
 0x34f   :  { %v6707_v30 = vpop.f32.mrb[71].mxu0  ;;  %7254 = vmatprep.subr.bf16.mxu0 %v10138_v41  ;;  %v6748_v58 = vpop.f32.mrb[71].mxu1 }
 0x350   :  { %v8942_v44 = vpack.c.bf16 %v6705_v24, %v6703_v19  ;;  %v8943_v60 = vpack.c.bf16 %v6746_v35, %v6744_v47 }
 0x352   :  { %v7895_v33 = vrot.slane %v8942_v44, %v10363_v26  ;;  %v7902_v5 = vrot.slane %v8943_v60, %v10363_v26  ;;  %7255 = vmatpush1.bf16.msra.mxu0 %v10136_v38  ;;  %v848_v44 = vld [vmem:[#allocation7 + $0x50] sm:$0xff] }
 0x353   :  { %7256 = vmatprep.subr.bf16.mxu0 %v10141_v57  ;;  %v1187_v60 = vrot.slane %v848_v44, %v10341_v59 }
 0x354   :  { %v7904_v51 = vcombine.low %v7895_v33, %v7902_v5  ;;  %v1195_v33 = vrot.slane %v848_v44, %v10344_v62  ;;  %v1191_v5 = vrot.slane %v848_v44, %v10349_v1 }
 0x356   :  { %v7918_v40 = vrot.slane %v7904_v51, %v10363_v26  ;;  %7257 = vmatpush1.bf16.msra.mxu0 %v10139_v8  ;;  %v1199_v8 = vrot.slane %v848_v44, %v10352_v4 }
 0x358   :  { %v7919_v56 = vcombine.low %v7911_v53, %v7918_v40 }
 0x359   :  { %7275 = vmatmul.mubr.bf16.vlgmr.msra.gmra.mrb[96].mxu0 %v10635_v39 }
 0x35a   :  { %8103 = vst [vmem:[#allocation8 + $0x40] sm:$0xff] %v7919_v56 }
 0x36c   :  { %v6784_v18 = vpop.f32.mrb[72].mxu0  ;;  %v6825_v20 = vpop.f32.mrb[72].mxu1 }
 0x36d   :  { %v6785_v9 = vadd.f32 %v6784_v18, %v1155_v14  ;;  %v6826_v11 = vadd.f32 %v6825_v20, %v1163_v15  ;;  %v6786_v22 = vpop.f32.mrb[73].mxu0  ;;  %v6827_v23 = vpop.f32.mrb[73].mxu1 }
 0x36e   :  { %v6787_v6 = vadd.f32 %v6786_v22, %v1159_v46  ;;  %v6828_v45 = vadd.f32 %v6827_v23, %v1167_v49  ;;  %v6788_v13 = vpop.f32.mrb[74].mxu0  ;;  %v6829_v39 = vpop.f32.mrb[74].mxu1 }
 0x36f   :  { %v6789_v52 = vpop.f32.mrb[75].mxu0  ;;  %v6830_v25 = vpop.f32.mrb[75].mxu1  ;;  %v1203_v13 = vrot.slane %v848_v44, %v10378_v61  ;;  %v1211_v39 = vrot.slane %v848_v44, %v10381_v2 }
 0x370   :  { %v8944_v27 = vpack.c.bf16 %v6787_v6, %v6785_v9  ;;  %v8945_v28 = vpack.c.bf16 %v6828_v45, %v6826_v11  ;;  %v1207_v52 = vrot.slane %v848_v44, %v10384_v3  ;;  %v1215_v25 = vrot.slane %v848_v44, %v10387_v7 }
 0x372   :  { %v7930_v29 = vrot.slane %v8944_v27, %v10363_v26  ;;  %v7937_v16 = vrot.slane %v8945_v28, %v10363_v26 }
 0x374   :  { %v7952_v17 = vcombine.low %v7930_v29, %v7937_v16 }
 0x376   :  { %v7960_v30 = vrot.slane %v7952_v17, %v10363_v26 }
 0x38c   :  { %v6866_v34 = vpop.f32.mrb[76].mxu0  ;;  %v6907_v0 = vpop.f32.mrb[76].mxu1 }
 0x38d   :  { %v6867_v10 = vadd.f32 %v6866_v34, %v1171_v21  ;;  %v6908_v36 = vadd.f32 %v6907_v0, %v1179_v31  ;;  %v6868_v37 = vpop.f32.mrb[77].mxu0  ;;  %v6909_v41 = vpop.f32.mrb[77].mxu1 }
 0x38e   :  { %v6869_v54 = vadd.f32 %v6868_v37, %v1175_v63  ;;  %v6910_v42 = vadd.f32 %v6909_v41, %v1183_v32  ;;  %v6870_v19 = vpop.f32.mrb[78].mxu0  ;;  %v6911_v47 = vpop.f32.mrb[78].mxu1 }
 0x38f   :  { %v6871_v48 = vpop.f32.mrb[79].mxu0  ;;  %v6912_v50 = vpop.f32.mrb[79].mxu1 }
 0x390   :  { %v8946_v24 = vpack.c.bf16 %v6869_v54, %v6867_v10  ;;  %v8947_v35 = vpack.c.bf16 %v6910_v42, %v6908_v36  ;;  %v849_v50 = vld [vmem:[#allocation7 + $0x58] sm:$0xff] }
 0x392   :  { %v7944_v55 = vrot.slane %v8946_v24, %v10363_v26  ;;  %v7951_v38 = vrot.slane %v8947_v35, %v10363_v26  ;;  %v1219_v24 = vrot.slane %v849_v50, %v10341_v59  ;;  %v1227_v35 = vrot.slane %v849_v50, %v10344_v62 }
 0x394   :  { %v7953_v43 = vcombine.low %v7944_v55, %v7951_v38  ;;  %v1223_v55 = vrot.slane %v849_v50, %v10349_v1  ;;  %v1231_v38 = vrot.slane %v849_v50, %v10352_v4  ;;  %v1235_v4 = vrot.slane %v849_v50, %v10378_v61 }
 0x396   :  { %v7967_v57 = vrot.slane %v7953_v43, %v10363_v26 }
 0x398   :  { %v7968_v58 = vcombine.low %v7960_v30, %v7967_v57 }
 0x39a   :  { %8104 = vst [vmem:[#allocation8 + $0x48] sm:$0xff] %v7968_v58 }
 0x3ac   :  { %v6948_v51 = vpop.f32.mrb[80].mxu0  ;;  %v6989_v53 = vpop.f32.mrb[80].mxu1 }
 0x3ad   :  { %v6949_v40 = vadd.f32 %v6948_v51, %v1187_v60  ;;  %v6990_v56 = vadd.f32 %v6989_v53, %v1195_v33  ;;  %v6950_v12 = vpop.f32.mrb[81].mxu0  ;;  %v6991_v14 = vpop.f32.mrb[81].mxu1 }
 0x3ae   :  { %v6951_v15 = vadd.f32 %v6950_v12, %v1191_v5  ;;  %v6992_v46 = vadd.f32 %v6991_v14, %v1199_v8  ;;  %v6952_v49 = vpop.f32.mrb[82].mxu0  ;;  %v6993_v18 = vpop.f32.mrb[82].mxu1 }
 0x3af   :  { %v6953_v20 = vpop.f32.mrb[83].mxu0  ;;  %v6994_v9 = vpop.f32.mrb[83].mxu1  ;;  %v1239_v49 = vrot.slane %v849_v50, %v10384_v3  ;;  %v1247_v18 = vrot.slane %v849_v50, %v10387_v7 }
 0x3b0   :  { %v8948_v11 = vpack.c.bf16 %v6951_v15, %v6949_v40  ;;  %v8949_v22 = vpack.c.bf16 %v6992_v46, %v6990_v56  ;;  %v1243_v46 = vrot.slane %v849_v50, %v10381_v2 }
 0x3b2   :  { %v7979_v23 = vrot.slane %v8948_v11, %v10363_v26  ;;  %v7986_v6 = vrot.slane %v8949_v22, %v10363_v26 }
 0x3b4   :  { %v8001_v45 = vcombine.low %v7979_v23, %v7986_v6 }
 0x3b6   :  { %v8009_v19 = vrot.slane %v8001_v45, %v10363_v26 }
 0x3cc   :  { %v7030_v27 = vpop.f32.mrb[84].mxu0  ;;  %v7071_v28 = vpop.f32.mrb[84].mxu1 }
 0x3cd   :  { %v7031_v29 = vadd.f32 %v7030_v27, %v1203_v13  ;;  %v7072_v16 = vadd.f32 %v7071_v28, %v1211_v39  ;;  %v7032_v17 = vpop.f32.mrb[85].mxu0  ;;  %v7073_v21 = vpop.f32.mrb[85].mxu1 }
 0x3ce   :  { %v7033_v31 = vadd.f32 %v7032_v17, %v1207_v52  ;;  %v7074_v63 = vadd.f32 %v7073_v21, %v1215_v25  ;;  %v7034_v32 = vpop.f32.mrb[86].mxu0  ;;  %v7075_v34 = vpop.f32.mrb[86].mxu1  ;;  %v850_v21 = vld [vmem:[#allocation7 + $0x60] sm:$0x3] }
 0x3cf   :  { %v7035_v0 = vpop.f32.mrb[87].mxu0  ;;  %v7076_v10 = vpop.f32.mrb[87].mxu1 }
 0x3d0   :  { %v8950_v36 = vpack.c.bf16 %v7033_v31, %v7031_v29  ;;  %v8951_v37 = vpack.c.bf16 %v7074_v63, %v7072_v16  ;;  %v1251_v31 = vrot.slane %v850_v21, %v10341_v59  ;;  %v1255_v63 = vrot.slane %v850_v21, %v10349_v1 }
 0x3d2   :  { %v7993_v41 = vrot.slane %v8950_v36, %v10363_v26  ;;  %v8000_v54 = vrot.slane %v8951_v37, %v10363_v26 }
 0x3d4   :  { %v8002_v42 = vcombine.low %v7993_v41, %v8000_v54 }
 0x3d6   :  { %v8016_v47 = vrot.slane %v8002_v42, %v10363_v26 }
 0x3d8   :  { %v8017_v48 = vcombine.low %v8009_v19, %v8016_v47 }
 0x3da   :  { %8105 = vst [vmem:[#allocation8 + $0x50] sm:$0xff] %v8017_v48 }
 0x3ec   :  { %v7112_v43 = vpop.f32.mrb[88].mxu0  ;;  %v7153_v30 = vpop.f32.mrb[88].mxu1 }
 0x3ed   :  { %v7113_v57 = vadd.f32 %v7112_v43, %v1219_v24  ;;  %v7154_v58 = vadd.f32 %v7153_v30, %v1227_v35  ;;  %v7114_v44 = vpop.f32.mrb[89].mxu0  ;;  %v7155_v60 = vpop.f32.mrb[89].mxu1 }
 0x3ee   :  { %v7115_v33 = vadd.f32 %v7114_v44, %v1223_v55  ;;  %v7156_v5 = vadd.f32 %v7155_v60, %v1231_v38  ;;  %v7116_v8 = vpop.f32.mrb[90].mxu0  ;;  %v7157_v51 = vpop.f32.mrb[90].mxu1 }
 0x3ef   :  { %v7117_v53 = vpop.f32.mrb[91].mxu0  ;;  %v7158_v40 = vpop.f32.mrb[91].mxu1 }
 0x3f0   :  { %v8952_v56 = vpack.c.bf16 %v7115_v33, %v7113_v57  ;;  %v8953_v12 = vpack.c.bf16 %v7156_v5, %v7154_v58 }
 0x3f2   :  { %v8028_v62 = vrot.slane %v8952_v56, %v10363_v26  ;;  %v8035_v14 = vrot.slane %v8953_v12, %v10363_v26 }
 0x3f4   :  { %v8050_v15 = vcombine.low %v8028_v62, %v8035_v14 }
 0x3f6   :  { %v8058_v7 = vrot.slane %v8050_v15, %v10363_v26 }
 0x40c   :  { %v7194_v20 = vpop.f32.mrb[92].mxu0  ;;  %v7235_v9 = vpop.f32.mrb[92].mxu1 }
 0x40d   :  { %v7195_v11 = vadd.f32 %v7194_v20, %v1235_v4  ;;  %v7236_v22 = vadd.f32 %v7235_v9, %v1243_v46  ;;  %v7196_v23 = vpop.f32.mrb[93].mxu0  ;;  %v7237_v6 = vpop.f32.mrb[93].mxu1 }
 0x40e   :  { %v7197_v45 = vadd.f32 %v7196_v23, %v1239_v49  ;;  %v7238_v13 = vadd.f32 %v7237_v6, %v1247_v18  ;;  %v7198_v39 = vpop.f32.mrb[94].mxu0  ;;  %v7239_v52 = vpop.f32.mrb[94].mxu1 }
 0x40f   :  { %v7199_v25 = vpop.f32.mrb[95].mxu0  ;;  %v7240_v27 = vpop.f32.mrb[95].mxu1 }
 0x410   :  { %v8954_v28 = vpack.c.bf16 %v7197_v45, %v7195_v11  ;;  %v8955_v61 = vpack.c.bf16 %v7238_v13, %v7236_v22 }
 0x412   :  { %v8042_v2 = vrot.slane %v8954_v28, %v10363_v26  ;;  %v8049_v3 = vrot.slane %v8955_v61, %v10363_v26 }
 0x414   :  { %v8051_v29 = vcombine.low %v8042_v2, %v8049_v3 }
 0x416   :  { %v8065_v16 = vrot.slane %v8051_v29, %v10363_v26 }
 0x418   :  { %v8066_v17 = vcombine.low %v8058_v7, %v8065_v16 }
 0x41a   :  { %8106 = vst [vmem:[#allocation8 + $0x58] sm:$0xff] %v8066_v17 }
 0x42c   :  { %v7276_v32 = vpop.f32.mrb[96].mxu0 }
 0x42d   :  { %v7277_v34 = vadd.f32 %v7276_v32, %v1251_v31  ;;  %v7278_v0 = vpop.f32.mrb[97].mxu0 }
 0x42e   :  { %v7279_v10 = vadd.f32 %v7278_v0, %v1255_v63  ;;  %v7280_v36 = vpop.f32.mrb[98].mxu0 }
 0x42f   :  { %v7281_v37 = vpop.f32.mrb[99].mxu0 }
 0x430   :  { %v8956_v41 = vpack.c.bf16 %v7279_v10, %v7277_v34 }
 0x432   :  { %v8074_v54 = vrot.slane %v8956_v41, %v10363_v26 }
 0x434   :  { %8957 = vst.sshfl [vmem:[#allocation8 + $0x60] sm:$0x5 pattern:$0x73625140] %v8074_v54 }
 0x435   :  { %10223 = shalt.err (!%p10220_p0)
}
 0x436   :  { %s10224_s26 = scalar_lea.hbm %s10795_s3, 1568 }
 0x437   :  { %p10225_p1 = scmp.ne.s32.totalorder %s10795_s3, %s10224_s26  ;;  %p10228_p2 = scmp.lt.u32.totalorder %s10224_s26, %s10795_s3 }
 0x439   :  { %p10230_p3 = pnand %p10228_p2, %p10225_p1 }
 0x43b   :  { %10233 = shalt.err (!%p10230_p3)
}
 0x43c   :  { %8117 = dma.vmem_to_hbm [thread:$0]  %s8115_s22, 1568, %s10795_s3, [#allocation4]  }
 0x43d   :  { %10238 = dma.done.wait [#allocation4], 1568  }
 0x43e   :  { %10239 = vsyncadd [#allocation4], 4294965728 }
 0x43f   :  { %8121 = vsyncpa [#allocation3], 1 }
 0x440   :  { %8122 = vsyncpa [#allocation6], 1 }
 0x441   :  { %8123 = vsyncpa [#allocation4], 1 }

</bundles_post_ra>
